<compile_context>
chip_gen: v7x
topology: tpu7x:2x2x1
jax: 0.10.0
libtpu: 0.0.40
codegen_flags: <defaults>
</compile_context>

<pallas_src>
import jax
import jax.numpy as jnp
from jax import lax
from jax.experimental import pallas as pl
from jax.experimental.pallas import tpu as pltpu

EPS = 1e-5
ROW_CHUNK = 8  # sublane-aligned row chunk for the BN / store streaming loops


def _build_band_weights(w_hwio, W, dtype):
    """(3, 3, Cin, Cout) HWIO conv taps -> (3, W*Cin, W*Cout) banded matrices.

    band[di][w_in*C + ci, w_out*C + co] = w[di, dj, ci, co] with
    dj = w_in - w_out + 1 when 0 <= dj <= 2, else 0.  Right-multiplying a
    (rows, W*Cin) activation slab by band[di] applies all three W-taps of
    kernel row di (including SAME zero padding in W) in one K = W*C
    contraction.  Construction is exact in `dtype` (0/1 selectors, disjoint
    supports), so there is no f32 intermediate to build or cast.
    """
    C = w_hwio.shape[2]
    w = w_hwio.astype(dtype)
    bands = []
    for di in range(3):
        m = jnp.zeros((W * C, W * C), dtype)
        for dj in range(3):
            sel = jnp.eye(W, k=1 - dj, dtype=dtype)  # sel[w_in, w_out]
            m = m + jnp.einsum("ab,ij->aibj", sel, w[di, dj]).reshape(W * C, W * C)
        bands.append(m)
    return jnp.stack(bands, axis=0)


def prepare_resblock(params, W, *, mxu_dtype=jnp.bfloat16):
    """One-time parameter prep: banded weights (mxu_dtype) + lane-tiled BN params.

    Call once per ResBlock and reuse the result for every forward pass —
    rebuilding / re-DMAing the inflated bands every step dominated HBM traffic
    in the previous version.

    Conv biases are intentionally dropped: under training-mode BatchNorm the
    mean subtraction cancels any per-channel bias exactly.
    """
    w1, _b1, g1, be1, w2, _b2, g2, be2 = params
    C = w1.shape[2]

    def tile_c(v):  # per-channel (C,) -> (1, W*C) matching lane index w*C + c
        return jnp.tile(v.astype(jnp.float32).reshape(1, C), (1, W))

    band1 = _build_band_weights(w1, W, mxu_dtype)
    band2 = _build_band_weights(w2, W, mxu_dtype)
    return (band1, band2, tile_c(g1), tile_c(be1), tile_c(g2), tile_c(be2))


def resblock_forward(x_nchw, prepared):
    """ResBlock forward (training-mode BN semantics), NCHW in / NCHW out."""
    band1, band2, g1t, be1t, g2t, be2t = prepared
    N, C, H, W = x_nchw.shape
    WC = W * C
    NR = N * H
    mxu_dtype = band1.dtype

    assert WC % 128 == 0, "lane axis W*C must be a multiple of 128"
    assert NR % ROW_CHUNK == 0, "N*H must be a multiple of 8"
    assert W > 0 and (W & (W - 1)) == 0, "lane-butterfly BN reduction needs power-of-two W"
    assert band1.shape == (3, WC, WC) and band2.shape == (3, WC, WC)

    # Layout plumbing (XLA side): NCHW -> lane-dense (N*H, W*C) slab plus the
    # two (NR, 1) boundary-row masks.  Images are packed contiguously, so the
    # row that wraps across an image boundary in each +/-1 row-rolled matmul
    # operand must be zeroed — that is exactly the SAME zero padding along H.
    x2d = jnp.transpose(x_nchw, (0, 2, 3, 1)).astype(jnp.float32).reshape(NR, WC)
    row = jnp.arange(NR, dtype=jnp.int32) % H
    mask_top2d = (row != 0).astype(jnp.float32).reshape(NR, 1)      # for roll(+1)
    mask_bot2d = (row != H - 1).astype(jnp.float32).reshape(NR, 1)  # for roll(-1)

    inv_cnt = 1.0 / float(N * H * W)
    n_chunks = NR // ROW_CHUNK

    def kernel(x_ref, wb1_ref, wb2_ref, g1_ref, be1_ref, g2_ref, be2_ref,
               mt_ref, mb_ref, o_ref, h_ref, acc_ref):
        mtop = mt_ref[...]  # (NR, 1) f32
        mbot = mb_ref[...]

        def conv3x3(src_ref, wb_ref):
            # 3x3 SAME conv = 3 MXU matmuls against the banded weights.
            # The H-shift is a cyclic sublane roll (XLU, f32 to avoid packed
            # sublane-roll relayout); the wrapped boundary row is zero-masked;
            # the W-shift / W-padding are folded into the band.  The f32
            # accumulator lands directly in acc_ref (VMEM), never living as a
            # full-slab jnp value.
            a = src_ref[...]                                  # (NR, WC) f32
            a_bf = a.astype(mxu_dtype)                        # hoisted unshifted cast
            up = (pltpu.roll(a, 1, 0) * mtop).astype(mxu_dtype)
            dn = (pltpu.roll(a, NR - 1, 0) * mbot).astype(mxu_dtype)
            acc_ref[...] = jnp.dot(up, wb_ref[0], preferred_element_type=jnp.float32)
            acc_ref[...] += jnp.dot(a_bf, wb_ref[1], preferred_element_type=jnp.float32)
            acc_ref[...] += jnp.dot(dn, wb_ref[2], preferred_element_type=jnp.float32)

        def channel_totals(v):
            # v: (1, WC).  Sum the W lane-groups (stride C) with a log2(W)
            # cyclic lane-roll butterfly; the per-channel total ends up
            # broadcast back to every group (no reshape / relayout needed).
            s = v
            shift = C
            while shift < WC:
                s = s + pltpu.roll(s, shift, 1)
                shift *= 2
            return s

        def bn_fold(g_ref, be_ref):
            # Training-mode BatchNorm2d (biased stats over N,H,W) folded into a
            # per-channel scale/shift, streamed in 8-row chunks from acc_ref.
            def body(i, carry):
                s1, s2 = carry
                r0 = pl.multiple_of(i * ROW_CHUNK, ROW_CHUNK)
                blk = acc_ref[pl.ds(r0, ROW_CHUNK), :]
                return (s1 + jnp.sum(blk, axis=0, keepdims=True),
                        s2 + jnp.sum(blk * blk, axis=0, keepdims=True))

            s1, s2 = lax.fori_loop(
                0, n_chunks, body,
                (jnp.zeros((1, WC), jnp.float32), jnp.zeros((1, WC), jnp.float32)))
            mean = channel_totals(s1) * inv_cnt
            var = jnp.maximum(channel_totals(s2) * inv_cnt - mean * mean, 0.0)
            scale = g_ref[...] * lax.rsqrt(var + EPS)
            shift = be_ref[...] - mean * scale
            return scale, shift

        # h1 = relu(bn1(conv1(x))) -> h_ref (conv2's input).
        conv3x3(x_ref, wb1_ref)
        sc1, sh1 = bn_fold(g1_ref, be1_ref)

        def store_h(i, c):
            r0 = pl.multiple_of(i * ROW_CHUNK, ROW_CHUNK)
            blk = acc_ref[pl.ds(r0, ROW_CHUNK), :]
            h_ref[pl.ds(r0, ROW_CHUNK), :] = jnp.maximum(blk * sc1 + sh1, 0.0)
            return c

        lax.fori_loop(0, n_chunks, store_h, 0)

        # out = relu(bn2(conv2(h1)) + x); residual add + ReLU fused in the store.
        conv3x3(h_ref, wb2_ref)
        sc2, sh2 = bn_fold(g2_ref, be2_ref)

        def store_out(i, c):
            r0 = pl.multiple_of(i * ROW_CHUNK, ROW_CHUNK)
            blk = acc_ref[pl.ds(r0, ROW_CHUNK), :]
            res = x_ref[pl.ds(r0, ROW_CHUNK), :]
            o_ref[pl.ds(r0, ROW_CHUNK), :] = jnp.maximum(blk * sc2 + sh2 + res, 0.0)
            return c

        lax.fori_loop(0, n_chunks, store_out, 0)

    vmem_bytes = (2 * 3 * WC * WC * band1.dtype.itemsize   # weight bands (resident)
                  + 4 * NR * WC * 4                        # x, out, h1, acc
                  + 16 * WC * 4)                           # BN params / masks / slack
    out2d = pl.pallas_call(
        kernel,
        out_shape=jax.ShapeDtypeStruct((NR, WC), jnp.float32),
        in_specs=[pl.BlockSpec(memory_space=pltpu.MemorySpace.VMEM)] * 9,
        out_specs=pl.BlockSpec(memory_space=pltpu.MemorySpace.VMEM),
        scratch_shapes=[pltpu.VMEM((NR, WC), jnp.float32),   # h1 (conv2 input)
                        pltpu.VMEM((NR, WC), jnp.float32)],  # conv accumulator
        compiler_params=pltpu.CompilerParams(
            # Re-derive for the large-N batch-grid path (v7x caps at 64 MiB).
            vmem_limit_bytes=min(64 * 1024 * 1024,
                                 max(32 * 1024 * 1024, 2 * vmem_bytes))),
    )(x2d, band1, band2, g1t, be1t, g2t, be2t, mask_top2d, mask_bot2d)

    return jnp.transpose(out2d.reshape(N, H, W, C), (0, 3, 1, 2))


def resblock_reference(x_nchw, params, *, conv_operand_dtype=jnp.float32):
    """Pure-JAX reference of the PyTorch module (bias included, training-mode BN).

    conv_operand_dtype=jnp.bfloat16 rounds the conv operands the same way the
    kernel's bf16 MXU path does, giving an apples-to-apples structural check.
    """
    w1, b1, g1, be1, w2, b2, g2, be2 = params
    x = jnp.transpose(x_nchw, (0, 2, 3, 1)).astype(jnp.float32)

    def conv(h, w, b):
        h = h.astype(conv_operand_dtype).astype(jnp.float32)
        w = w.astype(conv_operand_dtype).astype(jnp.float32)
        y = lax.conv_general_dilated(h, w, (1, 1), "SAME",
                                     dimension_numbers=("NHWC", "HWIO", "NHWC"))
        return y + b

    def bn(y, g, be):
        mean = jnp.mean(y, axis=(0, 1, 2), keepdims=True)
        var = jnp.mean((y - mean) ** 2, axis=(0, 1, 2), keepdims=True)
        return (y - mean) * lax.rsqrt(var + EPS) * g + be

    h = jax.nn.relu(bn(conv(x, w1, b1), g1, be1))
    h = bn(conv(h, w2, b2), g2, be2)
    out = jax.nn.relu(h + x)
    return jnp.transpose(out, (0, 3, 1, 2))


if __name__ == "__main__":
    # Shapes consistent with ResBlock(num_hidden=32) on a 16x16 board.
    N, C, H, W = 2, 32, 16, 16
    key = jax.random.PRNGKey(0)
    ks = jax.random.split(key, 9)

    bound = 1.0 / float((C * 9) ** 0.5)  # ~PyTorch conv default init scale
    w1 = jax.random.uniform(ks[0], (3, 3, C, C), jnp.float32, -bound, bound)  # HWIO
    b1 = jax.random.uniform(ks[1], (C,), jnp.float32, -bound, bound)
    w2 = jax.random.uniform(ks[2], (3, 3, C, C), jnp.float32, -bound, bound)
    b2 = jax.random.uniform(ks[3], (C,), jnp.float32, -bound, bound)
    g1 = 1.0 + 0.1 * jax.random.normal(ks[4], (C,), jnp.float32)
    be1 = 0.1 * jax.random.normal(ks[5], (C,), jnp.float32)
    g2 = 1.0 + 0.1 * jax.random.normal(ks[6], (C,), jnp.float32)
    be2 = 0.1 * jax.random.normal(ks[7], (C,), jnp.float32)
    x = jax.random.normal(ks[8], (N, C, H, W), jnp.float32)

    params = (w1, b1, g1, be1, w2, b2, g2, be2)

    # One-time prep: banded weights + BN params, cached across every forward.
    prepared = jax.block_until_ready(prepare_resblock(params, W))

    out = jax.block_until_ready(resblock_forward(x, prepared))  # bf16 MXU operands
    assert out.shape == x.shape, f"shape mismatch: {out.shape} vs {x.shape}"

    # Structural check: reference with identically bf16-rounded conv operands.
    # Any real bug (band construction, roll/mask offsets, BN) gives O(0.1-1) error.
    ref_struct = jax.block_until_ready(
        resblock_reference(x, params, conv_operand_dtype=jnp.bfloat16))
    err_struct = float(jnp.max(jnp.abs(out - ref_struct)))
    assert err_struct < 1e-2, f"structural max abs err {err_struct}"

    # Fidelity vs the exact f32 module forward; the gap is only bf16 MXU rounding
    # through two convs, so a looser tolerance applies.
    ref_f32 = jax.block_until_ready(resblock_reference(x, params))
    err_full = float(jnp.max(jnp.abs(out - ref_f32)))
    assert err_full < 5e-2, f"full-precision max abs err {err_full}"

    print("KERNEL_OK")
</pallas_src>

<mosaic_0001>
module attributes {stable_mosaic.version = 11 : i64} {
  func.func @kernel(%arg0: memref<32x512xf32, #tpu.memory_space<vmem>>, %arg1: memref<3x512x512xbf16, #tpu.memory_space<vmem>>, %arg2: memref<3x512x512xbf16, #tpu.memory_space<vmem>>, %arg3: memref<1x512xf32, #tpu.memory_space<vmem>>, %arg4: memref<1x512xf32, #tpu.memory_space<vmem>>, %arg5: memref<1x512xf32, #tpu.memory_space<vmem>>, %arg6: memref<1x512xf32, #tpu.memory_space<vmem>>, %arg7: memref<32x1xf32, #tpu.memory_space<vmem>>, %arg8: memref<32x1xf32, #tpu.memory_space<vmem>>, %arg9: memref<32x512xf32, #tpu.memory_space<vmem>>, %arg10: memref<32x512xf32, #tpu.memory_space<vmem>>, %arg11: memref<32x512xf32, #tpu.memory_space<vmem>>) attributes {dimension_semantics = [], scalar_prefetch = 0 : i64, scratch_operands = 2 : i64, tpu.core_type = #tpu.core_type<tc>} {
    %c0 = arith.constant 0 : index
    %c0_0 = arith.constant 0 : index
    %0 = vector.load %arg7[%c0, %c0_0] : memref<32x1xf32, #tpu.memory_space<vmem>>, vector<32x1xf32>
    %c0_1 = arith.constant 0 : index
    %c0_2 = arith.constant 0 : index
    %1 = vector.load %arg8[%c0_1, %c0_2] : memref<32x1xf32, #tpu.memory_space<vmem>>, vector<32x1xf32>
    %c0_3 = arith.constant 0 : index
    %c0_4 = arith.constant 0 : index
    %2 = vector.load %arg0[%c0_3, %c0_4] : memref<32x512xf32, #tpu.memory_space<vmem>>, vector<32x512xf32>
    %3 = arith.truncf %2 : vector<32x512xf32> to vector<32x512xbf16>
    %c1_i32 = arith.constant 1 : i32
    %4 = tpu.dynamic_rotate %2 by %c1_i32 dim 0 : vector<32x512xf32>, i32 -> vector<32x512xf32>
    %5 = vector.broadcast %0 : vector<32x1xf32> to vector<32x512xf32>
    %6 = arith.mulf %4, %5 : vector<32x512xf32>
    %7 = arith.truncf %6 : vector<32x512xf32> to vector<32x512xbf16>
    %c31_i32 = arith.constant 31 : i32
    %8 = tpu.dynamic_rotate %2 by %c31_i32 dim 0 : vector<32x512xf32>, i32 -> vector<32x512xf32>
    %9 = vector.broadcast %1 : vector<32x1xf32> to vector<32x512xf32>
    %10 = arith.mulf %8, %9 : vector<32x512xf32>
    %11 = arith.truncf %10 : vector<32x512xf32> to vector<32x512xbf16>
    %c0_5 = arith.constant 0 : index
    %c0_6 = arith.constant 0 : index
    %c0_7 = arith.constant 0 : index
    %12 = vector.load %arg1[%c0_5, %c0_6, %c0_7] : memref<3x512x512xbf16, #tpu.memory_space<vmem>>, vector<1x512x512xbf16>
    %13 = vector.shape_cast %12 : vector<1x512x512xbf16> to vector<512x512xbf16>
    %cst = arith.constant dense<0.000000e+00> : vector<32x512xf32>
    %14 = tpu.matmul %7, %13, %cst {dimension_numbers = #tpu.dot_dimension_numbers<[1], [0], [0], [1], [0, 0, 1, 1], [], []>} : vector<32x512xbf16>, vector<512x512xbf16>, vector<32x512xf32> -> vector<32x512xf32>
    %c0_8 = arith.constant 0 : index
    %c0_9 = arith.constant 0 : index
    %15 = vector.load %arg11[%c0_8, %c0_9] : memref<32x512xf32, #tpu.memory_space<vmem>>, vector<32x512xf32>
    tpu.vector_store %arg11[%c0_8, %c0_9], %14 {strides = array<i32>} : memref<32x512xf32, #tpu.memory_space<vmem>>, vector<32x512xf32>,
    %c0_10 = arith.constant 0 : index
    %c0_11 = arith.constant 0 : index
    %16 = vector.load %arg11[%c0_10, %c0_11] : memref<32x512xf32, #tpu.memory_space<vmem>>, vector<32x512xf32>
    %c1 = arith.constant 1 : index
    %c0_12 = arith.constant 0 : index
    %c0_13 = arith.constant 0 : index
    %17 = vector.load %arg1[%c1, %c0_12, %c0_13] : memref<3x512x512xbf16, #tpu.memory_space<vmem>>, vector<1x512x512xbf16>
    %18 = vector.shape_cast %17 : vector<1x512x512xbf16> to vector<512x512xbf16>
    %cst_14 = arith.constant dense<0.000000e+00> : vector<32x512xf32>
    %19 = tpu.matmul %3, %18, %cst_14 {dimension_numbers = #tpu.dot_dimension_numbers<[1], [0], [0], [1], [0, 0, 1, 1], [], []>} : vector<32x512xbf16>, vector<512x512xbf16>, vector<32x512xf32> -> vector<32x512xf32>
    %20 = arith.addf %16, %19 : vector<32x512xf32>
    %c0_15 = arith.constant 0 : index
    %c0_16 = arith.constant 0 : index
    %21 = vector.load %arg11[%c0_15, %c0_16] : memref<32x512xf32, #tpu.memory_space<vmem>>, vector<32x512xf32>
    tpu.vector_store %arg11[%c0_15, %c0_16], %20 {strides = array<i32>} : memref<32x512xf32, #tpu.memory_space<vmem>>, vector<32x512xf32>,
    %c0_17 = arith.constant 0 : index
    %c0_18 = arith.constant 0 : index
    %22 = vector.load %arg11[%c0_17, %c0_18] : memref<32x512xf32, #tpu.memory_space<vmem>>, vector<32x512xf32>
    %c2 = arith.constant 2 : index
    %c0_19 = arith.constant 0 : index
    %c0_20 = arith.constant 0 : index
    %23 = vector.load %arg1[%c2, %c0_19, %c0_20] : memref<3x512x512xbf16, #tpu.memory_space<vmem>>, vector<1x512x512xbf16>
    %24 = vector.shape_cast %23 : vector<1x512x512xbf16> to vector<512x512xbf16>
    %cst_21 = arith.constant dense<0.000000e+00> : vector<32x512xf32>
    %25 = tpu.matmul %11, %24, %cst_21 {dimension_numbers = #tpu.dot_dimension_numbers<[1], [0], [0], [1], [0, 0, 1, 1], [], []>} : vector<32x512xbf16>, vector<512x512xbf16>, vector<32x512xf32> -> vector<32x512xf32>
    %26 = arith.addf %22, %25 : vector<32x512xf32>
    %c0_22 = arith.constant 0 : index
    %c0_23 = arith.constant 0 : index
    %27 = vector.load %arg11[%c0_22, %c0_23] : memref<32x512xf32, #tpu.memory_space<vmem>>, vector<32x512xf32>
    tpu.vector_store %arg11[%c0_22, %c0_23], %26 {strides = array<i32>} : memref<32x512xf32, #tpu.memory_space<vmem>>, vector<32x512xf32>,
    %cst_24 = arith.constant 0.000000e+00 : f32
    %28 = vector.broadcast %cst_24 : f32 to vector<1x512xf32>
    %cst_25 = arith.constant 0.000000e+00 : f32
    %29 = vector.broadcast %cst_25 : f32 to vector<1x512xf32>
    %c0_i32 = arith.constant 0 : i32
    %c4_i32 = arith.constant 4 : i32
    %30 = arith.addi %c0_i32, %c4_i32 : i32
    %c1_i32_26 = arith.constant 1 : i32
    %31:2 = scf.for %arg12 = %c0_i32 to %30 step %c1_i32_26 iter_args(%arg13 = %28, %arg14 = %29) -> (vector<1x512xf32>, vector<1x512xf32>)  : i32 {
      %c8_i32 = arith.constant 8 : i32
      %128 = arith.muli %arg12, %c8_i32 : i32
      %129 = tpu.assume_multiple %128, 8 : i32
      %130 = arith.index_cast %129 : i32 to index
      %c0_96 = arith.constant 0 : index
      %131 = vector.load %arg11[%130, %c0_96] : memref<32x512xf32, #tpu.memory_space<vmem>>, vector<8x512xf32>
      %cst_97 = arith.constant dense<0.000000e+00> : vector<512xf32>
      %132 = vector.multi_reduction <add>, %131, %cst_97 [0] : vector<8x512xf32> to vector<512xf32>
      %133 = vector.shape_cast %132 : vector<512xf32> to vector<1x512xf32>
      %134 = arith.addf %arg13, %133 : vector<1x512xf32>
      %135 = arith.mulf %131, %131 : vector<8x512xf32>
      %cst_98 = arith.constant dense<0.000000e+00> : vector<512xf32>
      %136 = vector.multi_reduction <add>, %135, %cst_98 [0] : vector<8x512xf32> to vector<512xf32>
      %137 = vector.shape_cast %136 : vector<512xf32> to vector<1x512xf32>
      %138 = arith.addf %arg14, %137 : vector<1x512xf32>
      scf.yield %134, %138 : vector<1x512xf32>, vector<1x512xf32>
    }
    %c4_i32_27 = arith.constant 4 : i32
    %c32_i32 = arith.constant 32 : i32
    %32 = tpu.dynamic_rotate %31#0 by %c32_i32 dim 1 : vector<1x512xf32>, i32 -> vector<1x512xf32>
    %33 = arith.addf %31#0, %32 : vector<1x512xf32>
    %c64_i32 = arith.constant 64 : i32
    %34 = tpu.dynamic_rotate %33 by %c64_i32 dim 1 : vector<1x512xf32>, i32 -> vector<1x512xf32>
    %35 = arith.addf %33, %34 : vector<1x512xf32>
    %c128_i32 = arith.constant 128 : i32
    %36 = tpu.dynamic_rotate %35 by %c128_i32 dim 1 : vector<1x512xf32>, i32 -> vector<1x512xf32>
    %37 = arith.addf %35, %36 : vector<1x512xf32>
    %c256_i32 = arith.constant 256 : i32
    %38 = tpu.dynamic_rotate %37 by %c256_i32 dim 1 : vector<1x512xf32>, i32 -> vector<1x512xf32>
    %39 = arith.addf %37, %38 : vector<1x512xf32>
    %cst_28 = arith.constant 0.001953125 : f32
    %40 = vector.broadcast %cst_28 : f32 to vector<1x512xf32>
    %41 = arith.mulf %39, %40 : vector<1x512xf32>
    %c32_i32_29 = arith.constant 32 : i32
    %42 = tpu.dynamic_rotate %31#1 by %c32_i32_29 dim 1 : vector<1x512xf32>, i32 -> vector<1x512xf32>
    %43 = arith.addf %31#1, %42 : vector<1x512xf32>
    %c64_i32_30 = arith.constant 64 : i32
    %44 = tpu.dynamic_rotate %43 by %c64_i32_30 dim 1 : vector<1x512xf32>, i32 -> vector<1x512xf32>
    %45 = arith.addf %43, %44 : vector<1x512xf32>
    %c128_i32_31 = arith.constant 128 : i32
    %46 = tpu.dynamic_rotate %45 by %c128_i32_31 dim 1 : vector<1x512xf32>, i32 -> vector<1x512xf32>
    %47 = arith.addf %45, %46 : vector<1x512xf32>
    %c256_i32_32 = arith.constant 256 : i32
    %48 = tpu.dynamic_rotate %47 by %c256_i32_32 dim 1 : vector<1x512xf32>, i32 -> vector<1x512xf32>
    %49 = arith.addf %47, %48 : vector<1x512xf32>
    %cst_33 = arith.constant 0.001953125 : f32
    %50 = vector.broadcast %cst_33 : f32 to vector<1x512xf32>
    %51 = arith.mulf %49, %50 : vector<1x512xf32>
    %52 = arith.mulf %41, %41 : vector<1x512xf32>
    %53 = arith.subf %51, %52 : vector<1x512xf32>
    %cst_34 = arith.constant 0.000000e+00 : f32
    %54 = vector.broadcast %cst_34 : f32 to vector<1x512xf32>
    %55 = arith.maximumf %53, %54 : vector<1x512xf32>
    %c0_35 = arith.constant 0 : index
    %c0_36 = arith.constant 0 : index
    %56 = vector.load %arg3[%c0_35, %c0_36] : memref<1x512xf32, #tpu.memory_space<vmem>>, vector<1x512xf32>
    %cst_37 = arith.constant 9.99999974E-6 : f32
    %57 = vector.broadcast %cst_37 : f32 to vector<1x512xf32>
    %58 = arith.addf %55, %57 : vector<1x512xf32>
    %59 = math.rsqrt %58 : vector<1x512xf32>
    %60 = arith.mulf %56, %59 : vector<1x512xf32>
    %c0_38 = arith.constant 0 : index
    %c0_39 = arith.constant 0 : index
    %61 = vector.load %arg4[%c0_38, %c0_39] : memref<1x512xf32, #tpu.memory_space<vmem>>, vector<1x512xf32>
    %62 = arith.mulf %41, %60 : vector<1x512xf32>
    %63 = arith.subf %61, %62 : vector<1x512xf32>
    %c0_i32_40 = arith.constant 0 : i32
    %c4_i32_41 = arith.constant 4 : i32
    %64 = arith.addi %c0_i32_40, %c4_i32_41 : i32
    %c1_i32_42 = arith.constant 1 : i32
    scf.for %arg12 = %c0_i32_40 to %64 step %c1_i32_42  : i32 {
      %c8_i32 = arith.constant 8 : i32
      %128 = arith.muli %arg12, %c8_i32 : i32
      %129 = tpu.assume_multiple %128, 8 : i32
      %130 = arith.index_cast %129 : i32 to index
      %c0_96 = arith.constant 0 : index
      %131 = vector.load %arg11[%130, %c0_96] : memref<32x512xf32, #tpu.memory_space<vmem>>, vector<8x512xf32>
      %132 = vector.broadcast %60 : vector<1x512xf32> to vector<8x512xf32>
      %133 = arith.mulf %131, %132 : vector<8x512xf32>
      %134 = vector.broadcast %63 : vector<1x512xf32> to vector<8x512xf32>
      %135 = arith.addf %133, %134 : vector<8x512xf32>
      %cst_97 = arith.constant 0.000000e+00 : f32
      %136 = vector.broadcast %cst_97 : f32 to vector<8x512xf32>
      %137 = arith.maximumf %135, %136 : vector<8x512xf32>
      %138 = arith.index_cast %129 : i32 to index
      %c0_98 = arith.constant 0 : index
      %139 = vector.load %arg10[%138, %c0_98] : memref<32x512xf32, #tpu.memory_space<vmem>>, vector<8x512xf32>
      tpu.vector_store %arg10[%138, %c0_98], %137 {strides = array<i32>} : memref<32x512xf32, #tpu.memory_space<vmem>>, vector<8x512xf32>,
    }
    %c4_i32_43 = arith.constant 4 : i32
    %c0_44 = arith.constant 0 : index
    %c0_45 = arith.constant 0 : index
    %65 = vector.load %arg10[%c0_44, %c0_45] : memref<32x512xf32, #tpu.memory_space<vmem>>, vector<32x512xf32>
    %66 = arith.truncf %65 : vector<32x512xf32> to vector<32x512xbf16>
    %c1_i32_46 = arith.constant 1 : i32
    %67 = tpu.dynamic_rotate %65 by %c1_i32_46 dim 0 : vector<32x512xf32>, i32 -> vector<32x512xf32>
    %68 = vector.broadcast %0 : vector<32x1xf32> to vector<32x512xf32>
    %69 = arith.mulf %67, %68 : vector<32x512xf32>
    %70 = arith.truncf %69 : vector<32x512xf32> to vector<32x512xbf16>
    %c31_i32_47 = arith.constant 31 : i32
    %71 = tpu.dynamic_rotate %65 by %c31_i32_47 dim 0 : vector<32x512xf32>, i32 -> vector<32x512xf32>
    %72 = vector.broadcast %1 : vector<32x1xf32> to vector<32x512xf32>
    %73 = arith.mulf %71, %72 : vector<32x512xf32>
    %74 = arith.truncf %73 : vector<32x512xf32> to vector<32x512xbf16>
    %c0_48 = arith.constant 0 : index
    %c0_49 = arith.constant 0 : index
    %c0_50 = arith.constant 0 : index
    %75 = vector.load %arg2[%c0_48, %c0_49, %c0_50] : memref<3x512x512xbf16, #tpu.memory_space<vmem>>, vector<1x512x512xbf16>
    %76 = vector.shape_cast %75 : vector<1x512x512xbf16> to vector<512x512xbf16>
    %cst_51 = arith.constant dense<0.000000e+00> : vector<32x512xf32>
    %77 = tpu.matmul %70, %76, %cst_51 {dimension_numbers = #tpu.dot_dimension_numbers<[1], [0], [0], [1], [0, 0, 1, 1], [], []>} : vector<32x512xbf16>, vector<512x512xbf16>, vector<32x512xf32> -> vector<32x512xf32>
    %c0_52 = arith.constant 0 : index
    %c0_53 = arith.constant 0 : index
    %78 = vector.load %arg11[%c0_52, %c0_53] : memref<32x512xf32, #tpu.memory_space<vmem>>, vector<32x512xf32>
    tpu.vector_store %arg11[%c0_52, %c0_53], %77 {strides = array<i32>} : memref<32x512xf32, #tpu.memory_space<vmem>>, vector<32x512xf32>,
    %c0_54 = arith.constant 0 : index
    %c0_55 = arith.constant 0 : index
    %79 = vector.load %arg11[%c0_54, %c0_55] : memref<32x512xf32, #tpu.memory_space<vmem>>, vector<32x512xf32>
    %c1_56 = arith.constant 1 : index
    %c0_57 = arith.constant 0 : index
    %c0_58 = arith.constant 0 : index
    %80 = vector.load %arg2[%c1_56, %c0_57, %c0_58] : memref<3x512x512xbf16, #tpu.memory_space<vmem>>, vector<1x512x512xbf16>
    %81 = vector.shape_cast %80 : vector<1x512x512xbf16> to vector<512x512xbf16>
    %cst_59 = arith.constant dense<0.000000e+00> : vector<32x512xf32>
    %82 = tpu.matmul %66, %81, %cst_59 {dimension_numbers = #tpu.dot_dimension_numbers<[1], [0], [0], [1], [0, 0, 1, 1], [], []>} : vector<32x512xbf16>, vector<512x512xbf16>, vector<32x512xf32> -> vector<32x512xf32>
    %83 = arith.addf %79, %82 : vector<32x512xf32>
    %c0_60 = arith.constant 0 : index
    %c0_61 = arith.constant 0 : index
    %84 = vector.load %arg11[%c0_60, %c0_61] : memref<32x512xf32, #tpu.memory_space<vmem>>, vector<32x512xf32>
    tpu.vector_store %arg11[%c0_60, %c0_61], %83 {strides = array<i32>} : memref<32x512xf32, #tpu.memory_space<vmem>>, vector<32x512xf32>,
    %c0_62 = arith.constant 0 : index
    %c0_63 = arith.constant 0 : index
    %85 = vector.load %arg11[%c0_62, %c0_63] : memref<32x512xf32, #tpu.memory_space<vmem>>, vector<32x512xf32>
    %c2_64 = arith.constant 2 : index
    %c0_65 = arith.constant 0 : index
    %c0_66 = arith.constant 0 : index
    %86 = vector.load %arg2[%c2_64, %c0_65, %c0_66] : memref<3x512x512xbf16, #tpu.memory_space<vmem>>, vector<1x512x512xbf16>
    %87 = vector.shape_cast %86 : vector<1x512x512xbf16> to vector<512x512xbf16>
    %cst_67 = arith.constant dense<0.000000e+00> : vector<32x512xf32>
    %88 = tpu.matmul %74, %87, %cst_67 {dimension_numbers = #tpu.dot_dimension_numbers<[1], [0], [0], [1], [0, 0, 1, 1], [], []>} : vector<32x512xbf16>, vector<512x512xbf16>, vector<32x512xf32> -> vector<32x512xf32>
    %89 = arith.addf %85, %88 : vector<32x512xf32>
    %c0_68 = arith.constant 0 : index
    %c0_69 = arith.constant 0 : index
    %90 = vector.load %arg11[%c0_68, %c0_69] : memref<32x512xf32, #tpu.memory_space<vmem>>, vector<32x512xf32>
    tpu.vector_store %arg11[%c0_68, %c0_69], %89 {strides = array<i32>} : memref<32x512xf32, #tpu.memory_space<vmem>>, vector<32x512xf32>,
    %cst_70 = arith.constant 0.000000e+00 : f32
    %91 = vector.broadcast %cst_70 : f32 to vector<1x512xf32>
    %cst_71 = arith.constant 0.000000e+00 : f32
    %92 = vector.broadcast %cst_71 : f32 to vector<1x512xf32>
    %c0_i32_72 = arith.constant 0 : i32
    %c4_i32_73 = arith.constant 4 : i32
    %93 = arith.addi %c0_i32_72, %c4_i32_73 : i32
    %c1_i32_74 = arith.constant 1 : i32
    %94:2 = scf.for %arg12 = %c0_i32_72 to %93 step %c1_i32_74 iter_args(%arg13 = %91, %arg14 = %92) -> (vector<1x512xf32>, vector<1x512xf32>)  : i32 {
      %c8_i32 = arith.constant 8 : i32
      %128 = arith.muli %arg12, %c8_i32 : i32
      %129 = tpu.assume_multiple %128, 8 : i32
      %130 = arith.index_cast %129 : i32 to index
      %c0_96 = arith.constant 0 : index
      %131 = vector.load %arg11[%130, %c0_96] : memref<32x512xf32, #tpu.memory_space<vmem>>, vector<8x512xf32>
      %cst_97 = arith.constant dense<0.000000e+00> : vector<512xf32>
      %132 = vector.multi_reduction <add>, %131, %cst_97 [0] : vector<8x512xf32> to vector<512xf32>
      %133 = vector.shape_cast %132 : vector<512xf32> to vector<1x512xf32>
      %134 = arith.addf %arg13, %133 : vector<1x512xf32>
      %135 = arith.mulf %131, %131 : vector<8x512xf32>
      %cst_98 = arith.constant dense<0.000000e+00> : vector<512xf32>
      %136 = vector.multi_reduction <add>, %135, %cst_98 [0] : vector<8x512xf32> to vector<512xf32>
      %137 = vector.shape_cast %136 : vector<512xf32> to vector<1x512xf32>
      %138 = arith.addf %arg14, %137 : vector<1x512xf32>
      scf.yield %134, %138 : vector<1x512xf32>, vector<1x512xf32>
    }
    %c4_i32_75 = arith.constant 4 : i32
    %c32_i32_76 = arith.constant 32 : i32
    %95 = tpu.dynamic_rotate %94#0 by %c32_i32_76 dim 1 : vector<1x512xf32>, i32 -> vector<1x512xf32>
    %96 = arith.addf %94#0, %95 : vector<1x512xf32>
    %c64_i32_77 = arith.constant 64 : i32
    %97 = tpu.dynamic_rotate %96 by %c64_i32_77 dim 1 : vector<1x512xf32>, i32 -> vector<1x512xf32>
    %98 = arith.addf %96, %97 : vector<1x512xf32>
    %c128_i32_78 = arith.constant 128 : i32
    %99 = tpu.dynamic_rotate %98 by %c128_i32_78 dim 1 : vector<1x512xf32>, i32 -> vector<1x512xf32>
    %100 = arith.addf %98, %99 : vector<1x512xf32>
    %c256_i32_79 = arith.constant 256 : i32
    %101 = tpu.dynamic_rotate %100 by %c256_i32_79 dim 1 : vector<1x512xf32>, i32 -> vector<1x512xf32>
    %102 = arith.addf %100, %101 : vector<1x512xf32>
    %cst_80 = arith.constant 0.001953125 : f32
    %103 = vector.broadcast %cst_80 : f32 to vector<1x512xf32>
    %104 = arith.mulf %102, %103 : vector<1x512xf32>
    %c32_i32_81 = arith.constant 32 : i32
    %105 = tpu.dynamic_rotate %94#1 by %c32_i32_81 dim 1 : vector<1x512xf32>, i32 -> vector<1x512xf32>
    %106 = arith.addf %94#1, %105 : vector<1x512xf32>
    %c64_i32_82 = arith.constant 64 : i32
    %107 = tpu.dynamic_rotate %106 by %c64_i32_82 dim 1 : vector<1x512xf32>, i32 -> vector<1x512xf32>
    %108 = arith.addf %106, %107 : vector<1x512xf32>
    %c128_i32_83 = arith.constant 128 : i32
    %109 = tpu.dynamic_rotate %108 by %c128_i32_83 dim 1 : vector<1x512xf32>, i32 -> vector<1x512xf32>
    %110 = arith.addf %108, %109 : vector<1x512xf32>
    %c256_i32_84 = arith.constant 256 : i32
    %111 = tpu.dynamic_rotate %110 by %c256_i32_84 dim 1 : vector<1x512xf32>, i32 -> vector<1x512xf32>
    %112 = arith.addf %110, %111 : vector<1x512xf32>
    %cst_85 = arith.constant 0.001953125 : f32
    %113 = vector.broadcast %cst_85 : f32 to vector<1x512xf32>
    %114 = arith.mulf %112, %113 : vector<1x512xf32>
    %115 = arith.mulf %104, %104 : vector<1x512xf32>
    %116 = arith.subf %114, %115 : vector<1x512xf32>
    %cst_86 = arith.constant 0.000000e+00 : f32
    %117 = vector.broadcast %cst_86 : f32 to vector<1x512xf32>
    %118 = arith.maximumf %116, %117 : vector<1x512xf32>
    %c0_87 = arith.constant 0 : index
    %c0_88 = arith.constant 0 : index
    %119 = vector.load %arg5[%c0_87, %c0_88] : memref<1x512xf32, #tpu.memory_space<vmem>>, vector<1x512xf32>
    %cst_89 = arith.constant 9.99999974E-6 : f32
    %120 = vector.broadcast %cst_89 : f32 to vector<1x512xf32>
    %121 = arith.addf %118, %120 : vector<1x512xf32>
    %122 = math.rsqrt %121 : vector<1x512xf32>
    %123 = arith.mulf %119, %122 : vector<1x512xf32>
    %c0_90 = arith.constant 0 : index
    %c0_91 = arith.constant 0 : index
    %124 = vector.load %arg6[%c0_90, %c0_91] : memref<1x512xf32, #tpu.memory_space<vmem>>, vector<1x512xf32>
    %125 = arith.mulf %104, %123 : vector<1x512xf32>
    %126 = arith.subf %124, %125 : vector<1x512xf32>
    %c0_i32_92 = arith.constant 0 : i32
    %c4_i32_93 = arith.constant 4 : i32
    %127 = arith.addi %c0_i32_92, %c4_i32_93 : i32
    %c1_i32_94 = arith.constant 1 : i32
    scf.for %arg12 = %c0_i32_92 to %127 step %c1_i32_94  : i32 {
      %c8_i32 = arith.constant 8 : i32
      %128 = arith.muli %arg12, %c8_i32 : i32
      %129 = tpu.assume_multiple %128, 8 : i32
      %130 = arith.index_cast %129 : i32 to index
      %c0_96 = arith.constant 0 : index
      %131 = vector.load %arg11[%130, %c0_96] : memref<32x512xf32, #tpu.memory_space<vmem>>, vector<8x512xf32>
      %132 = arith.index_cast %129 : i32 to index
      %c0_97 = arith.constant 0 : index
      %133 = vector.load %arg0[%132, %c0_97] : memref<32x512xf32, #tpu.memory_space<vmem>>, vector<8x512xf32>
      %134 = vector.broadcast %123 : vector<1x512xf32> to vector<8x512xf32>
      %135 = arith.mulf %131, %134 : vector<8x512xf32>
      %136 = vector.broadcast %126 : vector<1x512xf32> to vector<8x512xf32>
      %137 = arith.addf %135, %136 : vector<8x512xf32>
      %138 = arith.addf %137, %133 : vector<8x512xf32>
      %cst_98 = arith.constant 0.000000e+00 : f32
      %139 = vector.broadcast %cst_98 : f32 to vector<8x512xf32>
      %140 = arith.maximumf %138, %139 : vector<8x512xf32>
      %141 = arith.index_cast %129 : i32 to index
      %c0_99 = arith.constant 0 : index
      %142 = vector.load %arg9[%141, %c0_99] : memref<32x512xf32, #tpu.memory_space<vmem>>, vector<8x512xf32>
      tpu.vector_store %arg9[%141, %c0_99], %140 {strides = array<i32>} : memref<32x512xf32, #tpu.memory_space<vmem>>, vector<8x512xf32>,
    }
    %c4_i32_95 = arith.constant 4 : i32
    return
  }
}

</mosaic_0001>

<bundles_post_ra>
// kernel: tpu_custom_call.1
= control target key start
LH: loop header
LB: loop body
LE: loop exit
PB: predicated region body
PF: predicated region fallthrough
CT: control target
= control target key end

     0   :  { %14 = vsyncpa [#allocation5], 0  ;;  %s10907_s0 = inlined_call_operand.hbm [shape: f32[32,512], index: 0, kind: input, shape index: {}]   ;;  %s10908_s1 = inlined_call_operand.hbm [shape: bf16[3,512,512], index: 1, kind: input, shape index: {}]   ;;  %s10909_s2 = inlined_call_operand.hbm [shape: bf16[3,512,512], index: 2, kind: input, shape index: {}]   ;;  %s10910_s3 = inlined_call_operand.hbm [shape: f32[1,512], index: 3, kind: input, shape index: {}]   ;;  %s10911_s4 = inlined_call_operand.hbm [shape: f32[1,512], index: 4, kind: input, shape index: {}]   ;;  %s10912_s5 = inlined_call_operand.hbm [shape: f32[1,512], index: 5, kind: input, shape index: {}]   ;;  %s10913_s6 = inlined_call_operand.hbm [shape: f32[1,512], index: 6, kind: input, shape index: {}]   ;;  %s10914_s7 = inlined_call_operand.vmem [shape: f32[32,1], index: 7, kind: input, shape index: {}]   ;;  %s10915_s8 = inlined_call_operand.vmem [shape: f32[32,1], index: 8, kind: input, shape index: {}]   ;;  %s10916_s9 = inlined_call_operand.hbm [shape: f32[32,512], index: 9, kind: output, shape index: {}]  }
   0x1   :  { %15 = vsyncpa [#allocation8], 0 }
   0x2   :  { %16 = vsyncpa [#allocation11], 0 }
   0x3   :  { %17 = vsyncpa [#allocation14], 0 }
   0x4   :  { %18 = vsyncpa [#allocation6], 0  ;;  %s9944_s30 = smov [#allocation7]   ;;  %s9598_s13 = scalar_lea.hbm %s10908_s1, 49152 }
   0x5   :  { %s36_s10 = sshll.u32 %s9944_s30, 4  ;;  %p9599_p0 = scmp.ne.s32.totalorder %s10908_s1, %s9598_s13  ;;  %s37_s10 = int_to_ptr.vmem [resolvable:$true] %s36_s10 }
   0x6   :  { %p9602_p1 = scmp.lt.u32.totalorder %s9598_s13, %s10908_s1 }
   0x8   :  { %p9604_p2 = pnand %p9602_p1, %p9599_p0 }
   0xa   :  { %9607 = shalt.err (!%p9604_p2)
}
   0xb   :  { %s9608_s18 = scalar_lea.vmem %s37_s10, 49152  ;;  %p9613_p4 = scmp.lt.s32.totalorder %s37_s10, %s37_s10 }
   0xc   :  { %p9609_p3 = scmp.ne.s32.totalorder %s37_s10, %s9608_s18  ;;  %p9614_p5 = scmp.lt.s32.totalorder %s9608_s18, %s9608_s18 }
   0xe   :  { %p9615_p6 = por %p9614_p5, %p9613_p4 }
  0x10   :  { %p9616_p7 = pnand %p9615_p6, %p9609_p3 }
  0x12   :  { %9619 = shalt.err (!%p9616_p7)
}
  0x13   :  { %s9945_s19 = smov 256   ;;  %s9946_s20 = smov 16  }
  0x14   :  { %42 = dma.hbm_to_vmem [thread:$0]  %s10908_s1, 49152, %s37_s10, [#allocation8], %s9945_s19, %s9945_s19, %s9946_s20  }
  0x15   :  { %s9947_s23 = smov [#allocation10]   ;;  %s9948_s25 = smov [#allocation13]  }
  0x16   :  { %s61_s24 = sshll.u32 %s9947_s23, 4  ;;  %s81_s26 = sshll.u32 %s9948_s25, 4  ;;  %s62_s24 = int_to_ptr.vmem [resolvable:$true] %s61_s24  ;;  %s82_s26 = int_to_ptr.vmem [resolvable:$true] %s81_s26 }
  0x17   :  { %s9620_s29 = scalar_lea.hbm %s10910_s3, 64 }
  0x18   :  { %p9621_p8 = scmp.ne.s32.totalorder %s10910_s3, %s9620_s29  ;;  %p9624_p9 = scmp.lt.u32.totalorder %s9620_s29, %s10910_s3 }
  0x1a   :  { %p9626_p10 = pnand %p9624_p9, %p9621_p8 }
  0x1c   :  { %9629 = shalt.err (!%p9626_p10)
}
  0x1d   :  { %s9630_s1 = scalar_lea.vmem %s62_s24, 64  ;;  %p9635_p12 = scmp.lt.s32.totalorder %s62_s24, %s62_s24 }
  0x1e   :  { %p9631_p11 = scmp.ne.s32.totalorder %s62_s24, %s9630_s1  ;;  %p9636_p13 = scmp.lt.s32.totalorder %s9630_s1, %s9630_s1 }
  0x20   :  { %p9637_p0 = por %p9636_p13, %p9635_p12 }
  0x22   :  { %p9638_p1 = pnand %p9637_p0, %p9631_p11 }
  0x24   :  { %9641 = shalt.err (!%p9638_p1)
}
  0x25   :  { %64 = dma.hbm_to_vmem [thread:$0]  %s10910_s3, 64, %s62_s24, [#allocation11]  }
  0x26   :  { %s9642_s17 = scalar_lea.hbm %s10912_s5, 64 }
  0x27   :  { %p9643_p2 = scmp.ne.s32.totalorder %s10912_s5, %s9642_s17  ;;  %p9646_p3 = scmp.lt.u32.totalorder %s9642_s17, %s10912_s5 }
  0x29   :  { %p9648_p4 = pnand %p9646_p3, %p9643_p2 }
  0x2b   :  { %9651 = shalt.err (!%p9648_p4)
}
  0x2c   :  { %s9652_s25 = scalar_lea.vmem %s82_s26, 64  ;;  %p9657_p6 = scmp.lt.s32.totalorder %s82_s26, %s82_s26 }
  0x2d   :  { %p9653_p5 = scmp.ne.s32.totalorder %s82_s26, %s9652_s25  ;;  %p9658_p7 = scmp.lt.s32.totalorder %s9652_s25, %s9652_s25 }
  0x2f   :  { %p9659_p8 = por %p9658_p7, %p9657_p6 }
  0x31   :  { %p9660_p9 = pnand %p9659_p8, %p9653_p5 }
  0x33   :  { %9663 = shalt.err (!%p9660_p9)
}
  0x34   :  { %84 = dma.hbm_to_vmem [thread:$0]  %s10912_s5, 64, %s82_s26, [#allocation14]  }
  0x35   :  { %s9949_s27 = smov [#allocation4]   ;;  %s9664_s11 = scalar_lea.hbm %s10907_s0, 2048 }
  0x36   :  { %s24_s28 = sshll.u32 %s9949_s27, 4  ;;  %p9665_p10 = scmp.ne.s32.totalorder %s10907_s0, %s9664_s11  ;;  %s25_s28 = int_to_ptr.vmem [resolvable:$true] %s24_s28 }
  0x37   :  { %p9668_p11 = scmp.lt.u32.totalorder %s9664_s11, %s10907_s0 }
  0x39   :  { %p9670_p12 = pnand %p9668_p11, %p9665_p10 }
  0x3b   :  { %9673 = shalt.err (!%p9670_p12)
}
  0x3c   :  { %s9674_s14 = scalar_lea.vmem %s25_s28, 2048  ;;  %p9679_p0 = scmp.lt.s32.totalorder %s25_s28, %s25_s28 }
  0x3d   :  { %p9675_p13 = scmp.ne.s32.totalorder %s25_s28, %s9674_s14  ;;  %p9680_p1 = scmp.lt.s32.totalorder %s9674_s14, %s9674_s14 }
  0x3f   :  { %p9681_p2 = por %p9680_p1, %p9679_p0 }
  0x41   :  { %p9682_p3 = pnand %p9681_p2, %p9675_p13 }
  0x43   :  { %9685 = shalt.err (!%p9682_p3)
}
  0x44   :  { %s9950_s5 = smov 512   ;;  %s9951_s26 = smov 32  }
  0x45   :  { %30 = dma.hbm_to_vmem [thread:$0]  %s10907_s0, 2048, %s25_s28, [#allocation5], %s9950_s5, %s9950_s5, %s9951_s26  }
  0x46   :  { %s9952_s17 = smov [#allocation9]   ;;  %s9953_s21 = smov [#allocation12]  }
  0x47   :  { %s48_s18 = sshll.u32 %s9952_s17, 4  ;;  %s71_s22 = sshll.u32 %s9953_s21, 4  ;;  %s49_s18 = int_to_ptr.vmem [resolvable:$true] %s48_s18  ;;  %s72_s22 = int_to_ptr.vmem [resolvable:$true] %s71_s22 }
  0x48   :  { %s9686_s3 = scalar_lea.hbm %s10909_s2, 49152 }
  0x49   :  { %p9687_p4 = scmp.ne.s32.totalorder %s10909_s2, %s9686_s3  ;;  %p9690_p5 = scmp.lt.u32.totalorder %s9686_s3, %s10909_s2 }
  0x4b   :  { %p9692_p6 = pnand %p9690_p5, %p9687_p4 }
  0x4d   :  { %9695 = shalt.err (!%p9692_p6)
}
  0x4e   :  { %s9696_s0 = scalar_lea.vmem %s49_s18, 49152  ;;  %p9701_p8 = scmp.lt.s32.totalorder %s49_s18, %s49_s18 }
  0x4f   :  { %p9697_p7 = scmp.ne.s32.totalorder %s49_s18, %s9696_s0  ;;  %p9702_p9 = scmp.lt.s32.totalorder %s9696_s0, %s9696_s0 }
  0x51   :  { %p9703_p10 = por %p9702_p9, %p9701_p8 }
  0x53   :  { %p9704_p11 = pnand %p9703_p10, %p9697_p7 }
  0x55   :  { %9707 = shalt.err (!%p9704_p11)
}
  0x56   :  { %54 = dma.hbm_to_vmem [thread:$0]  %s10909_s2, 49152, %s49_s18, [#allocation8], %s9945_s19, %s9945_s19, %s9946_s20  }
  0x57   :  { %s9708_s1 = scalar_lea.hbm %s10911_s4, 64 }
  0x58   :  { %p9709_p12 = scmp.ne.s32.totalorder %s10911_s4, %s9708_s1  ;;  %p9712_p13 = scmp.lt.u32.totalorder %s9708_s1, %s10911_s4 }
  0x5a   :  { %p9714_p0 = pnand %p9712_p13, %p9709_p12 }
  0x5c   :  { %9717 = shalt.err (!%p9714_p0)
}
  0x5d   :  { %s9718_s17 = scalar_lea.vmem %s72_s22, 64  ;;  %p9723_p2 = scmp.lt.s32.totalorder %s72_s22, %s72_s22 }
  0x5e   :  { %p9719_p1 = scmp.ne.s32.totalorder %s72_s22, %s9718_s17  ;;  %p9724_p3 = scmp.lt.s32.totalorder %s9718_s17, %s9718_s17 }
  0x60   :  { %p9725_p4 = por %p9724_p3, %p9723_p2 }
  0x62   :  { %p9726_p5 = pnand %p9725_p4, %p9719_p1 }
  0x64   :  { %9729 = shalt.err (!%p9726_p5)
}
  0x65   :  { %74 = dma.hbm_to_vmem [thread:$0]  %s10911_s4, 64, %s72_s22, [#allocation11]  }
  0x66   :  { %s9954_s20 = smov [#allocation15]   ;;  %s9730_s25 = scalar_lea.hbm %s10913_s6, 64 }
  0x67   :  { %s91_s18 = sshll.u32 %s9954_s20, 4  ;;  %p9731_p6 = scmp.ne.s32.totalorder %s10913_s6, %s9730_s25  ;;  %s92_s18 = int_to_ptr.vmem [resolvable:$true] %s91_s18 }
  0x68   :  { %p9734_p7 = scmp.lt.u32.totalorder %s9730_s25, %s10913_s6 }
  0x6a   :  { %p9736_p8 = pnand %p9734_p7, %p9731_p6 }
  0x6c   :  { %9739 = shalt.err (!%p9736_p8)
}
  0x6d   :  { %s9740_s30 = scalar_lea.vmem %s92_s18, 64  ;;  %p9745_p10 = scmp.lt.s32.totalorder %s92_s18, %s92_s18 }
  0x6e   :  { %p9741_p9 = scmp.ne.s32.totalorder %s92_s18, %s9740_s30  ;;  %p9746_p11 = scmp.lt.s32.totalorder %s9740_s30, %s9740_s30 }
  0x70   :  { %p9747_p12 = por %p9746_p11, %p9745_p10 }
  0x72   :  { %p9748_p13 = pnand %p9747_p12, %p9741_p9 }
  0x74   :  { %9751 = shalt.err (!%p9748_p13)
}
  0x75   :  { %94 = dma.hbm_to_vmem [thread:$0]  %s10913_s6, 64, %s92_s18, [#allocation14]  }
  0x76   :  { %9854 = dma.done.wait [#allocation5], 2048  }
  0x77   :  { %9855 = vsyncadd [#allocation5], 4294965248 }
  0x78   :  { %9856 = dma.done.wait [#allocation8], 98304  }
  0x79   :  { %9857 = vsyncadd [#allocation8], 4294868992 }
  0x7a   :  { %9858 = dma.done.wait [#allocation11], 128  }
  0x7b   :  { %9859 = vsyncadd [#allocation11], 4294967168 }
  0x7c   :  { %9860 = dma.done.wait [#allocation14], 128  }
  0x7d   :  { %9861 = vsyncadd [#allocation14], 4294967168  ;;  %v9955_v0 = vmov 0   ;;  %v122_v1 = vld [vmem:[%s10914_s7 + $0x10] sm:$0xff]  ;;  %v120_v2 = vld [vmem:[%s10914_s7] sm:$0xff] }
  0x7e   :  { %8406 = vset.pattern.permute.xlu1 %v9955_v0  ;;  %8405 = vset.pattern.permute.xlu0 %v9955_v0  ;;  %v123_v3 = vld [vmem:[%s10914_s7 + $0x18] sm:$0xff]  ;;  %v121_v4 = vld [vmem:[%s10914_s7 + $0x8] sm:$0xff]  ;;  %v8407_v5 = vld [vmem:[#allocation7 + $0x4] ss:$16 sps:$4 sm:$0xff]  }
  0x7f   :  { %199 = vperm.xlu1 %8406, %v122_v1   ;;  %189 = vperm.xlu0 %8405, %v120_v2   ;;  %v125_v6 = vld [vmem:[%s10915_s8 + $0x8] sm:$0xff]  ;;  %v124_v7 = vld [vmem:[%s10915_s8] sm:$0xff]  ;;  %v127_v15 = vld [vmem:[%s10915_s8 + $0x18] sm:$0xff] }
  0x80   :  { %v8409_v8 = vld [vmem:[#allocation7 + $0xc] ss:$16 sps:$4 sm:$0xff]   ;;  %v8411_v9 = vld [vmem:[#allocation7] ss:$16 sps:$4 sm:$0xff]   ;;  %v8412_v10 = vld [vmem:[#allocation7 + $0x8] ss:$16 sps:$4 sm:$0xff]   ;;  %1076 = vmatprep.subr.bf16.mxu0 %v8407_v5 }
  0x81   :  { %1182 = vmatprep.subr.bf16.mxu1 %v8409_v8  ;;  %v8413_v11 = vld [vmem:[#allocation7 + $0x24] ss:$16 sps:$4 sm:$0xff]   ;;  %1077 = vmatpush1.bf16.msra.mxu0 %v8411_v9  ;;  %v8415_v12 = vld [vmem:[#allocation7 + $0x2c] ss:$16 sps:$4 sm:$0xff]   ;;  %v8417_v13 = vld [vmem:[#allocation7 + $0x20] ss:$16 sps:$4 sm:$0xff]  }
  0x82   :  { %1183 = vmatpush1.bf16.msra.mxu1 %v8412_v10  ;;  %v8418_v14 = vld [vmem:[#allocation7 + $0x28] ss:$16 sps:$4 sm:$0xff]   ;;  %1078 = vmatprep.subr.bf16.mxu0 %v8413_v11  ;;  %v8419_v16 = vld [vmem:[#allocation7 + $0x44] ss:$16 sps:$4 sm:$0xff]   ;;  %v8421_v17 = vld [vmem:[#allocation7 + $0x4c] ss:$16 sps:$4 sm:$0xff]   ;;  %v168_v11 = vlaneseq }
  0x83   :  { %204 = vperm.xlu1 %8406, %v123_v3   ;;  %194 = vperm.xlu0 %8405, %v121_v4   ;;  %v126_v18 = vld [vmem:[%s10915_s8 + $0x10] sm:$0xff]  ;;  %v8424_v20 = vld [vmem:[#allocation7 + $0x48] ss:$16 sps:$4 sm:$0xff]   ;;  %v8427_v22 = vld [vmem:[#allocation7 + $0x6c] ss:$16 sps:$4 sm:$0xff]   ;;  %s10376_s8 = smov 0  }
  0x84   :  { %1184 = vmatprep.subr.bf16.mxu1 %v8415_v12  ;;  %v8423_v19 = vld [vmem:[#allocation7 + $0x40] ss:$16 sps:$4 sm:$0xff]   ;;  %v8425_v21 = vld [vmem:[#allocation7 + $0x64] ss:$16 sps:$4 sm:$0xff]   ;;  %v8430_v24 = vld [vmem:[#allocation7 + $0x68] ss:$16 sps:$4 sm:$0xff]  }
  0x85   :  { %1079 = vmatpush1.bf16.msra.mxu0 %v8417_v13  ;;  %v8429_v23 = vld [vmem:[#allocation7 + $0x60] ss:$16 sps:$4 sm:$0xff]   ;;  %v8431_v25 = vld [vmem:[#allocation7 + $0x84] ss:$16 sps:$4 sm:$0xff]   ;;  %v8433_v26 = vld [vmem:[#allocation7 + $0x8c] ss:$16 sps:$4 sm:$0xff]  }
  0x86   :  { %1185 = vmatpush1.bf16.msra.mxu1 %v8418_v14  ;;  %1080 = vmatprep.subr.bf16.mxu0 %v8419_v16  ;;  %v8435_v27 = vld [vmem:[#allocation7 + $0x80] ss:$16 sps:$4 sm:$0xff]   ;;  %v8436_v28 = vld [vmem:[#allocation7 + $0x88] ss:$16 sps:$4 sm:$0xff]   ;;  %v8437_v29 = vld [vmem:[#allocation7 + $0xa4] ss:$16 sps:$4 sm:$0xff]  }
  0x87   :  { %271 = vperm.xlu1 %8406, %v125_v6   ;;  %266 = vperm.xlu0 %8405, %v124_v7   ;;  %v8439_v30 = vld [vmem:[#allocation7 + $0xac] ss:$16 sps:$4 sm:$0xff]   ;;  %v8441_v31 = vld [vmem:[#allocation7 + $0xa0] ss:$16 sps:$4 sm:$0xff]   ;;  %v8442_v32 = vld [vmem:[#allocation7 + $0xa8] ss:$16 sps:$4 sm:$0xff]  }
  0x88   :  { %1186 = vmatprep.subr.bf16.mxu1 %v8421_v17  ;;  %v8443_v33 = vld [vmem:[#allocation7 + $0xc4] ss:$16 sps:$4 sm:$0xff]   ;;  %v8445_v34 = vld [vmem:[#allocation7 + $0xcc] ss:$16 sps:$4 sm:$0xff]   ;;  %v8447_v35 = vld [vmem:[#allocation7 + $0xc0] ss:$16 sps:$4 sm:$0xff]  }
  0x89   :  { %1081 = vmatpush1.bf16.msra.mxu0 %v8423_v19  ;;  %v8448_v36 = vld [vmem:[#allocation7 + $0xc8] ss:$16 sps:$4 sm:$0xff]   ;;  %v8449_v37 = vld [vmem:[#allocation7 + $0xe4] ss:$16 sps:$4 sm:$0xff]   ;;  %v8451_v38 = vld [vmem:[#allocation7 + $0xec] ss:$16 sps:$4 sm:$0xff]  }
  0x8a   :  { %1187 = vmatpush1.bf16.msra.mxu1 %v8424_v20  ;;  %1082 = vmatprep.subr.bf16.mxu0 %v8425_v21  ;;  %v8453_v39 = vld [vmem:[#allocation7 + $0xe0] ss:$16 sps:$4 sm:$0xff]   ;;  %v8454_v40 = vld [vmem:[#allocation7 + $0xe8] ss:$16 sps:$4 sm:$0xff]   ;;  %v8455_v41 = vld [vmem:[#allocation7 + $0x104] ss:$16 sps:$4 sm:$0xff]  }
  0x8b   :  { %281 = vperm.xlu1 %8406, %v127_v15   ;;  %276 = vperm.xlu0 %8405, %v126_v18   ;;  %v8457_v42 = vld [vmem:[#allocation7 + $0x10c] ss:$16 sps:$4 sm:$0xff]   ;;  %v8459_v43 = vld [vmem:[#allocation7 + $0x100] ss:$16 sps:$4 sm:$0xff]   ;;  %v8460_v44 = vld [vmem:[#allocation7 + $0x108] ss:$16 sps:$4 sm:$0xff]  }
  0x8c   :  { %1188 = vmatprep.subr.bf16.mxu1 %v8427_v22  ;;  %v8461_v45 = vld [vmem:[#allocation7 + $0x124] ss:$16 sps:$4 sm:$0xff]   ;;  %v8463_v46 = vld [vmem:[#allocation7 + $0x12c] ss:$16 sps:$4 sm:$0xff]   ;;  %v8465_v47 = vld [vmem:[#allocation7 + $0x120] ss:$16 sps:$4 sm:$0xff]  }
  0x8d   :  { %1083 = vmatpush1.bf16.msra.mxu0 %v8429_v23  ;;  %v8466_v48 = vld [vmem:[#allocation7 + $0x128] ss:$16 sps:$4 sm:$0xff]   ;;  %v8467_v49 = vld [vmem:[#allocation7 + $0x144] ss:$16 sps:$4 sm:$0xff]   ;;  %v8469_v50 = vld [vmem:[#allocation7 + $0x14c] ss:$16 sps:$4 sm:$0xff]  }
  0x8e   :  { %1189 = vmatpush1.bf16.msra.mxu1 %v8430_v24  ;;  %1084 = vmatprep.subr.bf16.mxu0 %v8431_v25  ;;  %v8471_v51 = vld [vmem:[#allocation7 + $0x140] ss:$16 sps:$4 sm:$0xff]   ;;  %v8472_v52 = vld [vmem:[#allocation7 + $0x148] ss:$16 sps:$4 sm:$0xff]   ;;  %v8473_v53 = vld [vmem:[#allocation7 + $0x164] ss:$16 sps:$4 sm:$0xff]  }
  0x8f   :  { %1190 = vmatprep.subr.bf16.mxu1 %v8433_v26  ;;  %v8475_v54 = vld [vmem:[#allocation7 + $0x16c] ss:$16 sps:$4 sm:$0xff]   ;;  %v8477_v55 = vld [vmem:[#allocation7 + $0x160] ss:$16 sps:$4 sm:$0xff]   ;;  %v8478_v56 = vld [vmem:[#allocation7 + $0x168] ss:$16 sps:$4 sm:$0xff]  }
  0x90   :  { %v8479_v57 = vld [vmem:[#allocation7 + $0x184] ss:$16 sps:$4 sm:$0xff]   ;;  %v8481_v58 = vld [vmem:[#allocation7 + $0x18c] ss:$16 sps:$4 sm:$0xff]   ;;  %v8483_v59 = vld [vmem:[#allocation7 + $0x180] ss:$16 sps:$4 sm:$0xff]  }
  0x91   :  { %1085 = vmatpush1.bf16.msra.mxu0 %v8435_v27  ;;  %v8484_v60 = vld [vmem:[#allocation7 + $0x188] ss:$16 sps:$4 sm:$0xff]   ;;  %v8485_v61 = vld [vmem:[#allocation7 + $0x1a4] ss:$16 sps:$4 sm:$0xff]   ;;  %v8487_v62 = vld [vmem:[#allocation7 + $0x1ac] ss:$16 sps:$4 sm:$0xff]  }
  0x92   :  { %1191 = vmatpush1.bf16.msra.mxu1 %v8436_v28  ;;  %1086 = vmatprep.subr.bf16.mxu0 %v8437_v29  ;;  %v8489_v63 = vld [vmem:[#allocation7 + $0x1a0] ss:$16 sps:$4 sm:$0xff]   ;;  %v8490_v0 = vld [vmem:[#allocation7 + $0x1a8] ss:$16 sps:$4 sm:$0xff]   ;;  %v8491_v1 = vld [vmem:[#allocation7 + $0x1c4] ss:$16 sps:$4 sm:$0xff]  }
  0x93   :  { %1192 = vmatprep.subr.bf16.mxu1 %v8439_v30  ;;  %v8493_v2 = vld [vmem:[#allocation7 + $0x1cc] ss:$16 sps:$4 sm:$0xff]   ;;  %v8495_v3 = vld [vmem:[#allocation7 + $0x1c0] ss:$16 sps:$4 sm:$0xff]   ;;  %v8496_v4 = vld [vmem:[#allocation7 + $0x1c8] ss:$16 sps:$4 sm:$0xff]  }
  0x94   :  { %v8497_v5 = vld [vmem:[#allocation7 + $0x1e4] ss:$16 sps:$4 sm:$0xff]   ;;  %v8499_v6 = vld [vmem:[#allocation7 + $0x1ec] ss:$16 sps:$4 sm:$0xff]   ;;  %v8501_v7 = vld [vmem:[#allocation7 + $0x1e0] ss:$16 sps:$4 sm:$0xff]  }
  0x95   :  { %1087 = vmatpush1.bf16.msra.mxu0 %v8441_v31  ;;  %v8502_v8 = vld [vmem:[#allocation7 + $0x1e8] ss:$16 sps:$4 sm:$0xff]   ;;  %v8505_v9 = vld [vmem:[#allocation7 + $0x204] ss:$16 sps:$4 sm:$0xff]   ;;  %v8508_v10 = vld [vmem:[#allocation7 + $0x20c] ss:$16 sps:$4 sm:$0xff]  }
  0x96   :  { %1193 = vmatpush1.bf16.msra.mxu1 %v8442_v32  ;;  %1088 = vmatprep.subr.bf16.mxu0 %v8443_v33  ;;  %v10127_v12 = vshrl.u32 %v168_v11, 7  ;;  %v132_v13 = vld [vmem:[#allocation4 + $0x20] sm:$0xff]  ;;  %v134_v14 = vld [vmem:[#allocation4 + $0x30] sm:$0xff]  ;;  %v10129_v15 = vld [vmem:[#allocation4 + $0x38] sm:$0xff] }
  0x97   :  { %1194 = vmatprep.subr.bf16.mxu1 %v8445_v34  ;;  %v136_v16 = vld [vmem:[#allocation4 + $0x40] sm:$0xff]  ;;  %v10131_v17 = vld [vmem:[#allocation4 + $0x10] sm:$0xff]  ;;  %v10133_v18 = vld [vmem:[#allocation4 + $0x28] sm:$0xff]  ;;  %v156_v32 = vrot.slane %v132_v13, 7  ;;  %v158_v33 = vrot.slane %v134_v14, 7  ;;  %v159_v34 = vrot.slane %v10129_v15, 7 }
  0x98   :  { %v137_v19 = vld [vmem:[#allocation4 + $0x48] sm:$0xff]  ;;  %v10135_v20 = vld [vmem:[#allocation4 + $0x70] sm:$0xff]  ;;  %v10139_v22 = vld [vmem:[#allocation4 + $0x58] sm:$0xff]  ;;  %vm170_vm0 = vcmp.lt.s32.totalorder %v10127_v12, 1  ;;  %v160_v23 = vrot.slane %v136_v16, 7  ;;  %v154_v29 = vrot.slane %v10131_v17, 7 }
  0x99   :  { %1089 = vmatpush1.bf16.msra.mxu0 %v8447_v35  ;;  %v10137_v21 = vld [vmem:[#allocation4 + $0x50] sm:$0xff]  ;;  %v163_v25 = vrot.slane %v10139_v22, 7  ;;  %v128_v26 = vld [vmem:[#allocation4] sm:$0xff]  ;;  %v161_v28 = vrot.slane %v137_v19, 7  ;;  %v166_v30 = vrot.slane %v10135_v20, 7  ;;  %v141_v31 = vld [vmem:[#allocation4 + $0x68] sm:$0xff] }
  0x9a   :  { %1195 = vmatpush1.bf16.msra.mxu1 %v8448_v36  ;;  %1090 = vmatprep.subr.bf16.mxu0 %v8449_v37  ;;  %v162_v24 = vrot.slane %v10137_v21, 7  ;;  %v140_v27 = vld [vmem:[#allocation4 + $0x60] sm:$0xff]  ;;  %v10147_v35 = vld [vmem:[#allocation4 + $0x8] sm:$0xff]  ;;  %v157_v36 = vrot.slane %v10133_v18, 7  ;;  %v10150_v37 = vld [vmem:[#allocation4 + $0x78] sm:$0xff]  ;;  %vm247_vm1 = vcmp.lt.s32.totalorder %v10127_v12, 7 }
  0x9b   :  { %1196 = vmatprep.subr.bf16.mxu1 %v8451_v38  ;;  %v152_v38 = vrot.slane %v128_v26, 7  ;;  %v10212_v13 = vld [vmem:[#allocation4 + $0x18] sm:$0xff] }
  0x9d   :  { %1091 = vmatpush1.bf16.msra.mxu0 %v8453_v39  ;;  %v10155_v39 = vsel %vm170_vm0, %v156_v32, %v160_v23 }
  0x9e   :  { %1197 = vmatpush1.bf16.msra.mxu1 %v8454_v40  ;;  %1092 = vmatprep.subr.bf16.mxu0 %v8455_v41  ;;  %v177_v40 = vsel %vm170_vm0, %v158_v33, %v162_v24  ;;  %v178_v41 = vsel %vm170_vm0, %v159_v34, %v163_v25 }
  0x9f   :  { %1198 = vmatprep.subr.bf16.mxu1 %v8457_v42  ;;  %v164_v42 = vrot.slane %v140_v27, 7  ;;  %v234_v27 = vrot.slane %v10212_v13, 1 }
  0xa1   :  { %1093 = vmatpush1.bf16.msra.mxu0 %v8459_v43  ;;  %v176_v43 = vsel %vm170_vm0, %v157_v36, %v161_v28 }
  0xa2   :  { %1199 = vmatpush1.bf16.msra.mxu1 %v8460_v44  ;;  %1094 = vmatprep.subr.bf16.mxu0 %v8461_v45  ;;  %v185_v44 = vsel %vm170_vm0, %v166_v30, %v154_v29  ;;  %v165_v45 = vrot.slane %v141_v31, 7 }
  0xa3   :  { %1200 = vmatprep.subr.bf16.mxu1 %v8463_v46  ;;  %v153_v46 = vrot.slane %v10147_v35, 7 }
  0xa5   :  { %1095 = vmatpush1.bf16.msra.mxu0 %v8465_v47 }
  0xa6   :  { %1201 = vmatpush1.bf16.msra.mxu1 %v8466_v48  ;;  %1096 = vmatprep.subr.bf16.mxu0 %v8467_v49  ;;  %v167_v48 = vrot.slane %v10150_v37, 7 }
  0xa7   :  { %1202 = vmatprep.subr.bf16.mxu1 %v8469_v50  ;;  %v237_v50 = vrot.slane %v134_v14, 1 }
  0xa9   :  { %1097 = vmatpush1.bf16.msra.mxu0 %v8471_v51  ;;  %v241_v51 = vrot.slane %v10137_v21, 1 }
  0xaa   :  { %1203 = vmatpush1.bf16.msra.mxu1 %v8472_v52  ;;  %1098 = vmatprep.subr.bf16.mxu0 %v8473_v53  ;;  %v233_v52 = vrot.slane %v10131_v17, 1 }
  0xab   :  { %1204 = vmatprep.subr.bf16.mxu1 %v8475_v54 }
  0xad   :  { %1099 = vmatpush1.bf16.msra.mxu0 %v8477_v55  ;;  %v179_v55 = vsel %vm170_vm0, %v152_v38, %v156_v32  ;;  %v155_v32 = vrot.slane %v10212_v13, 7  ;;  %v8896_v13 = vld [vmem:[#allocation7 + $0xa28] ss:$16 sps:$4 sm:$0xff]  }
  0xae   :  { %1205 = vmatpush1.bf16.msra.mxu1 %v8478_v56  ;;  %1100 = vmatprep.subr.bf16.mxu0 %v8479_v57  ;;  %v181_v56 = vsel %vm170_vm0, %v154_v29, %v158_v33  ;;  %v183_v57 = vsel %vm170_vm0, %v164_v42, %v152_v38 }
  0xaf   :  { %1206 = vmatprep.subr.bf16.mxu1 %v8481_v58  ;;  %v186_v15 = vsel %vm170_vm0, %v167_v48, %v155_v32 }
  0xb1   :  { %1101 = vmatpush1.bf16.msra.mxu0 %v8483_v59  ;;  %v173_v59 = vsel %vm170_vm0, %v162_v24, %v166_v30  ;;  %v8503_v30 = vld [vmem:[#allocation7 + $0x200] ss:$16 sps:$4 sm:$0xff]  }
  0xb2   :  { %1207 = vmatpush1.bf16.msra.mxu1 %v8484_v60  ;;  %1102 = vmatprep.subr.bf16.mxu0 %v8485_v61  ;;  %v174_v60 = vsel %vm170_vm0, %v163_v25, %v167_v48  ;;  %v171_v61 = vsel %vm170_vm0, %v160_v23, %v164_v42 }
  0xb3   :  { %1208 = vmatprep.subr.bf16.mxu1 %v8487_v62  ;;  %v172_v62 = vsel %vm170_vm0, %v161_v28, %v165_v45 }
  0xb5   :  { %1103 = vmatpush1.bf16.msra.mxu0 %v8489_v63  ;;  %v180_v63 = vsel %vm170_vm0, %v153_v46, %v157_v36  ;;  %v8506_v36 = vld [vmem:[#allocation7 + $0x208] ss:$16 sps:$4 sm:$0xff]  }
  0xb6   :  { %1209 = vmatpush1.bf16.msra.mxu1 %v8490_v0  ;;  %1104 = vmatprep.subr.bf16.mxu0 %v8491_v1  ;;  %v184_v0 = vsel %vm170_vm0, %v165_v45, %v153_v46  ;;  %v8511_v45 = vld [vmem:[#allocation7 + $0x224] ss:$16 sps:$4 sm:$0xff]  }
  0xb7   :  { %1210 = vmatprep.subr.bf16.mxu1 %v8493_v2 }
  0xb9   :  { %1105 = vmatpush1.bf16.msra.mxu0 %v8495_v3  ;;  %v242_v3 = vrot.slane %v10139_v22, 1 }
  0xba   :  { %1211 = vmatpush1.bf16.msra.mxu1 %v8496_v4  ;;  %1106 = vmatprep.subr.bf16.mxu0 %v8497_v5  ;;  %v254_v4 = vsel %vm247_vm1, %v237_v50, %v241_v51  ;;  %v258_v5 = vsel %vm247_vm1, %v233_v52, %v237_v50 }
  0xbb   :  { %1212 = vmatprep.subr.bf16.mxu1 %v8499_v6  ;;  %v245_v6 = vrot.slane %v10135_v20, 1 }
  0xbd   :  { %1107 = vmatpush1.bf16.msra.mxu0 %v8501_v7  ;;  %v262_v38 = vsel %vm247_vm1, %v245_v6, %v233_v52  ;;  %v250_v42 = vsel %vm247_vm1, %v241_v51, %v245_v6  ;;  %v8512_v52 = vld [vmem:[#allocation7 + $0x228] ss:$16 sps:$4 sm:$0xff]   ;;  %v182_v51 = vsel %vm170_vm0, %v155_v32, %v159_v34  ;;  %v8521_v6 = vld [vmem:[#allocation7 + $0x260] ss:$16 sps:$4 sm:$0xff]  }
  0xbe   :  { %1213 = vmatpush1.bf16.msra.mxu1 %v8502_v8  ;;  %1129 = vmatprep.subr.bf16.mxu0 %v8505_v9  ;;  %v8539_v32 = vld [vmem:[#allocation7 + $0x2c0] ss:$16 sps:$4 sm:$0xff]  }
  0xbf   :  { %1235 = vmatprep.subr.bf16.mxu1 %v8508_v10  ;;  %v246_v10 = vrot.slane %v10150_v37, 1 }
  0xfe   :  { %v10168_v47 = vpop.permute.xlu1 %199  ;;  %v10171_v49 = vpop.permute.xlu0 %189 }
  0xff   :  { %v217_v53 = vmul.f32 %v10168_v47, %v177_v40  ;;  %v218_v54 = vmul.f32 %v10168_v47, %v178_v41  ;;  %v209_v58 = vmul.f32 %v10171_v49, %v185_v44  ;;  %v207_v7 = vmul.f32 %v10171_v49, %v183_v57  ;;  %v8509_v44 = vld [vmem:[#allocation7 + $0x220] ss:$16 sps:$4 sm:$0xff]  }
 0x100   :  { %v208_v17 = vmul.f32 %v10171_v49, %v184_v0  ;;  %v216_v20 = vmul.f32 %v10168_v47, %v176_v43  ;;  %v263_v41 = vsel %vm247_vm1, %v246_v10, %v234_v27  ;;  %v251_v43 = vsel %vm247_vm1, %v242_v3, %v246_v10  ;;  %v8518_v0 = vld [vmem:[#allocation7 + $0x248] ss:$16 sps:$4 sm:$0xff]  }
 0x101   :  { %v215_v46 = vmul.f32 %v10168_v47, %v10155_v39  ;;  %v8517_v39 = vld [vmem:[#allocation7 + $0x244] ss:$16 sps:$4 sm:$0xff]   ;;  %v210_v37 = vmul.f32 %v10171_v49, %v186_v15  ;;  %v8524_v10 = vld [vmem:[#allocation7 + $0x268] ss:$16 sps:$4 sm:$0xff]  }
 0x102   :  { %v10198_v1 = vpop.permute.xlu1 %204  ;;  %v10200_v2 = vpop.permute.xlu0 %194  ;;  %v8571_v15 = vld [vmem:[#allocation7 + $0x364] ss:$16 sps:$4 sm:$0xff]  }
 0x103   :  { %v221_v8 = vmul.f32 %v10198_v1, %v173_v59  ;;  %v222_v9 = vmul.f32 %v10198_v1, %v174_v60  ;;  %v211_v14 = vmul.f32 %v10200_v2, %v179_v55  ;;  %v213_v16 = vmul.f32 %v10200_v2, %v181_v56 }
 0x104   :  { %v212_v19 = vmul.f32 %v10200_v2, %v180_v63  ;;  %v220_v21 = vmul.f32 %v10198_v1, %v172_v62  ;;  %v219_v50 = vmul.f32 %v10198_v1, %v171_v61  ;;  %v8515_v61 = vld [vmem:[#allocation7 + $0x240] ss:$16 sps:$4 sm:$0xff]   ;;  %v8520_v62 = vld [vmem:[#allocation7 + $0x24c] ss:$16 sps:$4 sm:$0xff]   ;;  %v214_v63 = vmul.f32 %v10200_v2, %v182_v51  ;;  %v8565_v51 = vld [vmem:[#allocation7 + $0x344] ss:$16 sps:$4 sm:$0xff]  }
 0x105   :  { %v10220_v23 = vpack.c.bf16 %v222_v9, %v218_v54  ;;  %v10222_v24 = vpack.c.bf16 %v221_v8, %v217_v53  ;;  %v10224_v25 = vpack.c.bf16 %v213_v16, %v209_v58  ;;  %v223_v31 = vpack.c.bf16 %v211_v14, %v207_v7  ;;  %v8514_v53 = vld [vmem:[#allocation7 + $0x22c] ss:$16 sps:$4 sm:$0xff]   ;;  %v8523_v7 = vld [vmem:[#allocation7 + $0x264] ss:$16 sps:$4 sm:$0xff]   ;;  %v8527_v16 = vld [vmem:[#allocation7 + $0x280] ss:$16 sps:$4 sm:$0xff]  }
 0x106   :  { %v10226_v26 = vpop.permute.xlu1 %271  ;;  %v10229_v28 = vpop.permute.xlu0 %266  ;;  %v224_v29 = vpack.c.bf16 %v212_v19, %v208_v17  ;;  %v228_v54 = vpack.c.bf16 %v220_v21, %v216_v20  ;;  %v8526_v8 = vld [vmem:[#allocation7 + $0x26c] ss:$16 sps:$4 sm:$0xff]   ;;  %v226_v9 = vpack.c.bf16 %v214_v63, %v210_v37  ;;  %v8529_v14 = vld [vmem:[#allocation7 + $0x284] ss:$16 sps:$4 sm:$0xff]   ;;  %v8530_v19 = vld [vmem:[#allocation7 + $0x288] ss:$16 sps:$4 sm:$0xff]  }
 0x107   :  { %v290_v33 = vmul.f32 %v10226_v26, %v254_v4  ;;  %v286_v40 = vmul.f32 %v10229_v28, %v258_v5  ;;  %v227_v4 = vpack.c.bf16 %v219_v50, %v215_v46  ;;  %v8532_v17 = vld [vmem:[#allocation7 + $0x28c] ss:$16 sps:$4 sm:$0xff]   ;;  %v8535_v20 = vld [vmem:[#allocation7 + $0x2a4] ss:$16 sps:$4 sm:$0xff]   ;;  %v8533_v21 = vld [vmem:[#allocation7 + $0x2a0] ss:$16 sps:$4 sm:$0xff]  }
 0x108   :  { %1108 = vmatprep.mubr.bf16.mxu0 %v224_v29  ;;  %1214 = vmatprep.mubr.bf16.mxu1 %v224_v29  ;;  %v8538_v29 = vld [vmem:[#allocation7 + $0x2ac] ss:$16 sps:$4 sm:$0xff]   ;;  %v8554_v46 = vld [vmem:[#allocation7 + $0x308] ss:$16 sps:$4 sm:$0xff]   ;;  %v8559_v50 = vld [vmem:[#allocation7 + $0x324] ss:$16 sps:$4 sm:$0xff]  }
 0x109   :  { %1109 = vmatmul.mubr.bf16.vlgmr.msra.gmra.mrb[0].mxu0 %v223_v31  ;;  %v10253_v55 = vpack.c.bf16 %v290_v33, %v286_v40  ;;  %1215 = vmatmul.mubr.bf16.vlgmr.msra.gmra.mrb[0].mxu1 %v223_v31  ;;  %v8541_v31 = vld [vmem:[#allocation7 + $0x2c4] ss:$16 sps:$4 sm:$0xff]   ;;  %v8544_v33 = vld [vmem:[#allocation7 + $0x2cc] ss:$16 sps:$4 sm:$0xff]   ;;  %v8545_v40 = vld [vmem:[#allocation7 + $0x2e0] ss:$16 sps:$4 sm:$0xff]  }
 0x10a   :  { %1130 = vmatpush1.bf16.msra.mxu0 %v8503_v30  ;;  %v10255_v56 = vpop.permute.xlu1 %281  ;;  %v10257_v57 = vpop.permute.xlu0 %276  ;;  %1236 = vmatpush1.bf16.msra.mxu1 %v8506_v36  ;;  %v8536_v30 = vld [vmem:[#allocation7 + $0x2a8] ss:$16 sps:$4 sm:$0xff]   ;;  %v8575_v63 = vld [vmem:[#allocation7 + $0x380] ss:$16 sps:$4 sm:$0xff]   ;;  %v8583_v37 = vld [vmem:[#allocation7 + $0x3a4] ss:$16 sps:$4 sm:$0xff]  }
 0x10b   :  { %v298_v58 = vmul.f32 %v10255_v56, %v262_v38  ;;  %v299_v59 = vmul.f32 %v10255_v56, %v263_v41  ;;  %v294_v34 = vmul.f32 %v10257_v57, %v250_v42  ;;  %v295_v60 = vmul.f32 %v10257_v57, %v251_v43  ;;  %1131 = vmatprep.subr.bf16.mxu0 %v8511_v45  ;;  %v8542_v36 = vld [vmem:[#allocation7 + $0x2c8] ss:$16 sps:$4 sm:$0xff]   ;;  %v8547_v38 = vld [vmem:[#allocation7 + $0x2e4] ss:$16 sps:$4 sm:$0xff]   ;;  %v8550_v41 = vld [vmem:[#allocation7 + $0x2ec] ss:$16 sps:$4 sm:$0xff]  }
 0x10c   :  { %1237 = vmatprep.subr.bf16.mxu1 %v8514_v53  ;;  %1118 = vmatprep.mubr.bf16.mxu0 %v228_v54  ;;  %v8548_v42 = vld [vmem:[#allocation7 + $0x2e8] ss:$16 sps:$4 sm:$0xff]   ;;  %v8553_v43 = vld [vmem:[#allocation7 + $0x304] ss:$16 sps:$4 sm:$0xff]   ;;  %v8556_v45 = vld [vmem:[#allocation7 + $0x30c] ss:$16 sps:$4 sm:$0xff]  }
 0x10d   :  { %1224 = vmatprep.mubr.bf16.mxu1 %v228_v54  ;;  %v10268_v5 = vpack.c.bf16 %v299_v59, %v295_v60  ;;  %v10271_v48 = vpack.c.bf16 %v298_v58, %v294_v34  ;;  %v8562_v53 = vld [vmem:[#allocation7 + $0x32c] ss:$16 sps:$4 sm:$0xff]   ;;  %v8560_v54 = vld [vmem:[#allocation7 + $0x328] ss:$16 sps:$4 sm:$0xff]   ;;  %v8569_v34 = vld [vmem:[#allocation7 + $0x360] ss:$16 sps:$4 sm:$0xff]  }
 0x10e   :  { %1132 = vmatpush1.bf16.msra.mxu0 %v8509_v44  ;;  %1238 = vmatpush1.bf16.msra.mxu1 %v8512_v52  ;;  %v8551_v44 = vld [vmem:[#allocation7 + $0x300] ss:$16 sps:$4 sm:$0xff]   ;;  %v8568_v58 = vld [vmem:[#allocation7 + $0x34c] ss:$16 sps:$4 sm:$0xff]   ;;  %v8566_v59 = vld [vmem:[#allocation7 + $0x348] ss:$16 sps:$4 sm:$0xff]  }
 0x10f   :  { %1133 = vmatprep.subr.bf16.mxu0 %v8517_v39  ;;  %1239 = vmatprep.subr.bf16.mxu1 %v8520_v62  ;;  %v8557_v52 = vld [vmem:[#allocation7 + $0x320] ss:$16 sps:$4 sm:$0xff]   ;;  %v8574_v60 = vld [vmem:[#allocation7 + $0x36c] ss:$16 sps:$4 sm:$0xff]   ;;  %v8577_v62 = vld [vmem:[#allocation7 + $0x384] ss:$16 sps:$4 sm:$0xff]  }
 0x110   :  { %v8563_v39 = vld [vmem:[#allocation7 + $0x340] ss:$16 sps:$4 sm:$0xff]  }
 0x111   :  { %1119 = vmatmul.mubr.bf16.gmra.mrb[4].mxu0 %v227_v4  ;;  %1225 = vmatmul.mubr.bf16.gmra.mrb[4].mxu1 %v227_v4  ;;  %v8578_v4 = vld [vmem:[#allocation7 + $0x388] ss:$16 sps:$4 sm:$0xff]  }
 0x112   :  { %1134 = vmatpush1.bf16.msra.mxu0 %v8515_v61  ;;  %1240 = vmatpush1.bf16.msra.mxu1 %v8518_v0  ;;  %v8572_v61 = vld [vmem:[#allocation7 + $0x368] ss:$16 sps:$4 sm:$0xff]   ;;  %v8580_v0 = vld [vmem:[#allocation7 + $0x38c] ss:$16 sps:$4 sm:$0xff]  }
 0x113   :  { %1161 = vmatprep.mubr.bf16.mxu0 %v226_v9  ;;  %1267 = vmatprep.mubr.bf16.mxu1 %v226_v9  ;;  %v8589_v9 = vld [vmem:[#allocation7 + $0x3c4] ss:$16 sps:$4 sm:$0xff]  }
 0x114   :  { %1135 = vmatprep.subr.bf16.mxu0 %v8523_v7  ;;  %1241 = vmatprep.subr.bf16.mxu1 %v8526_v8  ;;  %v8586_v7 = vld [vmem:[#allocation7 + $0x3ac] ss:$16 sps:$4 sm:$0xff]   ;;  %v8584_v8 = vld [vmem:[#allocation7 + $0x3a8] ss:$16 sps:$4 sm:$0xff]  }
 0x116   :  { %1136 = vmatpush1.bf16.msra.mxu0 %v8521_v6  ;;  %1242 = vmatpush1.bf16.msra.mxu1 %v8524_v10  ;;  %v8581_v6 = vld [vmem:[#allocation7 + $0x3a0] ss:$16 sps:$4 sm:$0xff]  }
 0x117   :  { %1137 = vmatprep.subr.bf16.mxu0 %v8529_v14  ;;  %1243 = vmatprep.subr.bf16.mxu1 %v8532_v17  ;;  %v8587_v10 = vld [vmem:[#allocation7 + $0x3c0] ss:$16 sps:$4 sm:$0xff]   ;;  %v8592_v14 = vld [vmem:[#allocation7 + $0x3cc] ss:$16 sps:$4 sm:$0xff]   ;;  %v8595_v17 = vld [vmem:[#allocation7 + $0x3e4] ss:$16 sps:$4 sm:$0xff]  }
 0x11a   :  { %1138 = vmatpush1.bf16.msra.mxu0 %v8527_v16  ;;  %1244 = vmatpush1.bf16.msra.mxu1 %v8530_v19  ;;  %v8590_v16 = vld [vmem:[#allocation7 + $0x3c8] ss:$16 sps:$4 sm:$0xff]   ;;  %v8593_v19 = vld [vmem:[#allocation7 + $0x3e0] ss:$16 sps:$4 sm:$0xff]  }
 0x11b   :  { %1139 = vmatprep.subr.bf16.mxu0 %v8535_v20  ;;  %1245 = vmatprep.subr.bf16.mxu1 %v8538_v29  ;;  %v8598_v20 = vld [vmem:[#allocation7 + $0x3ec] ss:$16 sps:$4 sm:$0xff]   ;;  %v8601_v29 = vld [vmem:[#allocation7 + $0x404] ss:$16 sps:$4 sm:$0xff]  }
 0x11e   :  { %1140 = vmatpush1.bf16.msra.mxu0 %v8533_v21  ;;  %1246 = vmatpush1.bf16.msra.mxu1 %v8536_v30  ;;  %v8596_v21 = vld [vmem:[#allocation7 + $0x3e8] ss:$16 sps:$4 sm:$0xff]   ;;  %v8604_v30 = vld [vmem:[#allocation7 + $0x40c] ss:$16 sps:$4 sm:$0xff]  }
 0x11f   :  { %1141 = vmatprep.subr.bf16.mxu0 %v8541_v31  ;;  %1247 = vmatprep.subr.bf16.mxu1 %v8544_v33  ;;  %v8599_v31 = vld [vmem:[#allocation7 + $0x400] ss:$16 sps:$4 sm:$0xff]   ;;  %v8607_v33 = vld [vmem:[#allocation7 + $0x424] ss:$16 sps:$4 sm:$0xff]  }
 0x122   :  { %1142 = vmatpush1.bf16.msra.mxu0 %v8539_v32  ;;  %1248 = vmatpush1.bf16.msra.mxu1 %v8542_v36  ;;  %v8602_v32 = vld [vmem:[#allocation7 + $0x408] ss:$16 sps:$4 sm:$0xff]   ;;  %v8610_v36 = vld [vmem:[#allocation7 + $0x42c] ss:$16 sps:$4 sm:$0xff]  }
 0x123   :  { %1143 = vmatprep.subr.bf16.mxu0 %v8547_v38  ;;  %1249 = vmatprep.subr.bf16.mxu1 %v8550_v41  ;;  %v8605_v38 = vld [vmem:[#allocation7 + $0x420] ss:$16 sps:$4 sm:$0xff]   ;;  %v8613_v41 = vld [vmem:[#allocation7 + $0x444] ss:$16 sps:$4 sm:$0xff]  }
 0x126   :  { %1144 = vmatpush1.bf16.msra.mxu0 %v8545_v40  ;;  %1250 = vmatpush1.bf16.msra.mxu1 %v8548_v42  ;;  %v8608_v40 = vld [vmem:[#allocation7 + $0x428] ss:$16 sps:$4 sm:$0xff]   ;;  %v8611_v42 = vld [vmem:[#allocation7 + $0x440] ss:$16 sps:$4 sm:$0xff]  }
 0x127   :  { %1145 = vmatprep.subr.bf16.mxu0 %v8553_v43  ;;  %1251 = vmatprep.subr.bf16.mxu1 %v8556_v45  ;;  %v8616_v43 = vld [vmem:[#allocation7 + $0x44c] ss:$16 sps:$4 sm:$0xff]   ;;  %v8619_v45 = vld [vmem:[#allocation7 + $0x464] ss:$16 sps:$4 sm:$0xff]  }
 0x12a   :  { %1146 = vmatpush1.bf16.msra.mxu0 %v8551_v44  ;;  %1252 = vmatpush1.bf16.msra.mxu1 %v8554_v46  ;;  %v8614_v44 = vld [vmem:[#allocation7 + $0x448] ss:$16 sps:$4 sm:$0xff]   ;;  %v145_v46 = vpack.c.bf16 %v10133_v18, %v10147_v35  ;;  %v8623_v18 = vld [vmem:[#allocation7 + $0x480] ss:$16 sps:$4 sm:$0xff]  }
 0x12b   :  { %1147 = vmatprep.subr.bf16.mxu0 %v8559_v50  ;;  %1253 = vmatprep.subr.bf16.mxu1 %v8562_v53  ;;  %v8620_v50 = vld [vmem:[#allocation7 + $0x468] ss:$16 sps:$4 sm:$0xff]   ;;  %v8628_v53 = vld [vmem:[#allocation7 + $0x48c] ss:$16 sps:$4 sm:$0xff]  }
 0x12c   :  { %v8626_v35 = vld [vmem:[#allocation7 + $0x488] ss:$16 sps:$4 sm:$0xff]  }
 0x12e   :  { %1148 = vmatpush1.bf16.msra.mxu0 %v8557_v52  ;;  %1254 = vmatpush1.bf16.msra.mxu1 %v8560_v54  ;;  %v8625_v52 = vld [vmem:[#allocation7 + $0x484] ss:$16 sps:$4 sm:$0xff]  }
 0x12f   :  { %1149 = vmatprep.subr.bf16.mxu0 %v8565_v51  ;;  %1255 = vmatprep.subr.bf16.mxu1 %v8568_v58  ;;  %v8631_v54 = vld [vmem:[#allocation7 + $0x4a4] ss:$16 sps:$4 sm:$0xff]   ;;  %v8629_v51 = vld [vmem:[#allocation7 + $0x4a0] ss:$16 sps:$4 sm:$0xff]  }
 0x130   :  { %v8637_v58 = vld [vmem:[#allocation7 + $0x4c4] ss:$16 sps:$4 sm:$0xff]  }
 0x132   :  { %1150 = vmatpush1.bf16.msra.mxu0 %v8563_v39  ;;  %1256 = vmatpush1.bf16.msra.mxu1 %v8566_v59  ;;  %v8634_v39 = vld [vmem:[#allocation7 + $0x4ac] ss:$16 sps:$4 sm:$0xff]   ;;  %v8635_v59 = vld [vmem:[#allocation7 + $0x4c0] ss:$16 sps:$4 sm:$0xff]  }
 0x133   :  { %1151 = vmatprep.subr.bf16.mxu0 %v8571_v15  ;;  %1257 = vmatprep.subr.bf16.mxu1 %v8574_v60  ;;  %v8640_v15 = vld [vmem:[#allocation7 + $0x4cc] ss:$16 sps:$4 sm:$0xff]   ;;  %v8643_v60 = vld [vmem:[#allocation7 + $0x4e4] ss:$16 sps:$4 sm:$0xff]  }
 0x136   :  { %1152 = vmatpush1.bf16.msra.mxu0 %v8569_v34  ;;  %1258 = vmatpush1.bf16.msra.mxu1 %v8572_v61  ;;  %v8638_v34 = vld [vmem:[#allocation7 + $0x4c8] ss:$16 sps:$4 sm:$0xff]   ;;  %v8641_v61 = vld [vmem:[#allocation7 + $0x4e0] ss:$16 sps:$4 sm:$0xff]  }
 0x137   :  { %1153 = vmatprep.subr.bf16.mxu0 %v8577_v62  ;;  %1259 = vmatprep.subr.bf16.mxu1 %v8580_v0  ;;  %v8646_v62 = vld [vmem:[#allocation7 + $0x4ec] ss:$16 sps:$4 sm:$0xff]   ;;  %v8649_v0 = vld [vmem:[#allocation7 + $0x504] ss:$16 sps:$4 sm:$0xff]  }
 0x13a   :  { %1154 = vmatpush1.bf16.msra.mxu0 %v8575_v63  ;;  %1260 = vmatpush1.bf16.msra.mxu1 %v8578_v4  ;;  %v8644_v63 = vld [vmem:[#allocation7 + $0x4e8] ss:$16 sps:$4 sm:$0xff]   ;;  %v8652_v4 = vld [vmem:[#allocation7 + $0x50c] ss:$16 sps:$4 sm:$0xff]  }
 0x13b   :  { %1155 = vmatprep.subr.bf16.mxu0 %v8583_v37  ;;  %1261 = vmatprep.subr.bf16.mxu1 %v8586_v7  ;;  %v8647_v37 = vld [vmem:[#allocation7 + $0x500] ss:$16 sps:$4 sm:$0xff]   ;;  %v8655_v7 = vld [vmem:[#allocation7 + $0x524] ss:$16 sps:$4 sm:$0xff]  }
 0x13e   :  { %1156 = vmatpush1.bf16.msra.mxu0 %v8581_v6  ;;  %1262 = vmatpush1.bf16.msra.mxu1 %v8584_v8  ;;  %v8650_v6 = vld [vmem:[#allocation7 + $0x508] ss:$16 sps:$4 sm:$0xff]   ;;  %v8658_v8 = vld [vmem:[#allocation7 + $0x52c] ss:$16 sps:$4 sm:$0xff]  }
 0x13f   :  { %1157 = vmatprep.subr.bf16.mxu0 %v8589_v9  ;;  %1263 = vmatprep.subr.bf16.mxu1 %v8592_v14  ;;  %v8653_v9 = vld [vmem:[#allocation7 + $0x520] ss:$16 sps:$4 sm:$0xff]   ;;  %v8661_v14 = vld [vmem:[#allocation7 + $0x544] ss:$16 sps:$4 sm:$0xff]  }
 0x142   :  { %1158 = vmatpush1.bf16.msra.mxu0 %v8587_v10  ;;  %1264 = vmatpush1.bf16.msra.mxu1 %v8590_v16  ;;  %v8656_v10 = vld [vmem:[#allocation7 + $0x528] ss:$16 sps:$4 sm:$0xff]   ;;  %v8664_v16 = vld [vmem:[#allocation7 + $0x54c] ss:$16 sps:$4 sm:$0xff]  }
 0x143   :  { %1159 = vmatprep.subr.bf16.mxu0 %v8595_v17  ;;  %1265 = vmatprep.subr.bf16.mxu1 %v8598_v20  ;;  %v8659_v17 = vld [vmem:[#allocation7 + $0x540] ss:$16 sps:$4 sm:$0xff]   ;;  %v8667_v20 = vld [vmem:[#allocation7 + $0x564] ss:$16 sps:$4 sm:$0xff]  }
 0x146   :  { %1160 = vmatpush1.bf16.msra.mxu0 %v8593_v19  ;;  %1266 = vmatpush1.bf16.msra.mxu1 %v8596_v21  ;;  %v8662_v19 = vld [vmem:[#allocation7 + $0x548] ss:$16 sps:$4 sm:$0xff]   ;;  %v8670_v21 = vld [vmem:[#allocation7 + $0x56c] ss:$16 sps:$4 sm:$0xff]  }
 0x147   :  { %2089 = vmatprep.subr.bf16.mxu0 %v8601_v29  ;;  %2195 = vmatprep.subr.bf16.mxu1 %v8604_v30  ;;  %v8665_v29 = vld [vmem:[#allocation7 + $0x560] ss:$16 sps:$4 sm:$0xff]   ;;  %v8668_v30 = vld [vmem:[#allocation7 + $0x568] ss:$16 sps:$4 sm:$0xff]  }
 0x149   :  { %1162 = vmatmul.mubr.bf16.vlgmr.msra.gmra.mrb[0].mxu0 %v10224_v25  ;;  %1268 = vmatmul.mubr.bf16.vlgmr.msra.gmra.mrb[0].mxu1 %v10224_v25  ;;  %v8622_v25 = vld [vmem:[#allocation7 + $0x46c] ss:$16 sps:$4 sm:$0xff]  }
 0x14a   :  { %1171 = vmatprep.mubr.bf16.mxu0 %v10220_v23  ;;  %1277 = vmatprep.mubr.bf16.mxu1 %v10220_v23  ;;  %v8617_v23 = vld [vmem:[#allocation7 + $0x460] ss:$16 sps:$4 sm:$0xff]  }
 0x14b   :  { %2090 = vmatpush1.bf16.msra.mxu0 %v8599_v31  ;;  %2196 = vmatpush1.bf16.msra.mxu1 %v8602_v32  ;;  %v8673_v31 = vld [vmem:[#allocation7 + $0x584] ss:$16 sps:$4 sm:$0xff]   ;;  %v8676_v32 = vld [vmem:[#allocation7 + $0x58c] ss:$16 sps:$4 sm:$0xff]  }
 0x14c   :  { %2091 = vmatprep.subr.bf16.mxu0 %v8607_v33  ;;  %2197 = vmatprep.subr.bf16.mxu1 %v8610_v36  ;;  %v8671_v33 = vld [vmem:[#allocation7 + $0x580] ss:$16 sps:$4 sm:$0xff]   ;;  %v8674_v36 = vld [vmem:[#allocation7 + $0x588] ss:$16 sps:$4 sm:$0xff]  }
 0x14f   :  { %2092 = vmatpush1.bf16.msra.mxu0 %v8605_v38  ;;  %2198 = vmatpush1.bf16.msra.mxu1 %v8608_v40  ;;  %v8679_v38 = vld [vmem:[#allocation7 + $0x5a4] ss:$16 sps:$4 sm:$0xff]   ;;  %v8682_v40 = vld [vmem:[#allocation7 + $0x5ac] ss:$16 sps:$4 sm:$0xff]  }
 0x150   :  { %2093 = vmatprep.subr.bf16.mxu0 %v8613_v41  ;;  %2199 = vmatprep.subr.bf16.mxu1 %v8616_v43  ;;  %v8677_v41 = vld [vmem:[#allocation7 + $0x5a0] ss:$16 sps:$4 sm:$0xff]   ;;  %v8685_v43 = vld [vmem:[#allocation7 + $0x5c4] ss:$16 sps:$4 sm:$0xff]  }
 0x151   :  { %1172 = vmatmul.mubr.bf16.gmra.mrb[4].mxu0 %v10222_v24  ;;  %1278 = vmatmul.mubr.bf16.gmra.mrb[4].mxu1 %v10222_v24  ;;  %v8632_v24 = vld [vmem:[#allocation7 + $0x4a8] ss:$16 sps:$4 sm:$0xff]  }
 0x152   :  { %2121 = vmatprep.mubr.bf16.mxu0 %v145_v46  ;;  %2227 = vmatprep.mubr.bf16.mxu1 %v145_v46  ;;  %v8686_v46 = vld [vmem:[#allocation7 + $0x5c8] ss:$16 sps:$4 sm:$0xff]  }
 0x153   :  { %2094 = vmatpush1.bf16.msra.mxu0 %v8611_v42  ;;  %2200 = vmatpush1.bf16.msra.mxu1 %v8614_v44  ;;  %v8680_v42 = vld [vmem:[#allocation7 + $0x5a8] ss:$16 sps:$4 sm:$0xff]   ;;  %v8688_v44 = vld [vmem:[#allocation7 + $0x5cc] ss:$16 sps:$4 sm:$0xff]  }
 0x154   :  { %2095 = vmatprep.subr.bf16.mxu0 %v8619_v45  ;;  %2201 = vmatprep.subr.bf16.mxu1 %v8622_v25  ;;  %v8683_v45 = vld [vmem:[#allocation7 + $0x5c0] ss:$16 sps:$4 sm:$0xff]   ;;  %v8694_v25 = vld [vmem:[#allocation7 + $0x5ec] ss:$16 sps:$4 sm:$0xff]  }
 0x157   :  { %2096 = vmatpush1.bf16.msra.mxu0 %v8617_v23  ;;  %2202 = vmatpush1.bf16.msra.mxu1 %v8620_v50  ;;  %v8691_v23 = vld [vmem:[#allocation7 + $0x5e4] ss:$16 sps:$4 sm:$0xff]   ;;  %v8689_v50 = vld [vmem:[#allocation7 + $0x5e0] ss:$16 sps:$4 sm:$0xff]  }
 0x158   :  { %2097 = vmatprep.subr.bf16.mxu0 %v8625_v52  ;;  %2203 = vmatprep.subr.bf16.mxu1 %v8628_v53  ;;  %v8692_v52 = vld [vmem:[#allocation7 + $0x5e8] ss:$16 sps:$4 sm:$0xff]   ;;  %v8697_v53 = vld [vmem:[#allocation7 + $0x604] ss:$16 sps:$4 sm:$0xff]  }
 0x15b   :  { %2098 = vmatpush1.bf16.msra.mxu0 %v8623_v18  ;;  %2204 = vmatpush1.bf16.msra.mxu1 %v8626_v35  ;;  %v8700_v18 = vld [vmem:[#allocation7 + $0x60c] ss:$16 sps:$4 sm:$0xff]   ;;  %v10281_v35 = vld [vmem:[#allocation4 + $0x20] sm:$0xff] }
 0x15c   :  { %2099 = vmatprep.subr.bf16.mxu0 %v8631_v54  ;;  %2205 = vmatprep.subr.bf16.mxu1 %v8634_v39  ;;  %v10283_v54 = vld [vmem:[#allocation4] sm:$0xff] }
 0x15d   :  { %v8695_v39 = vld [vmem:[#allocation7 + $0x600] ss:$16 sps:$4 sm:$0xff]  }
 0x15f   :  { %2100 = vmatpush1.bf16.msra.mxu0 %v8629_v51  ;;  %2206 = vmatpush1.bf16.msra.mxu1 %v8632_v24  ;;  %v144_v51 = vpack.c.bf16 %v10281_v35, %v10283_v54  ;;  %v8698_v24 = vld [vmem:[#allocation7 + $0x608] ss:$16 sps:$4 sm:$0xff]  }
 0x160   :  { %2101 = vmatprep.subr.bf16.mxu0 %v8637_v58  ;;  %2207 = vmatprep.subr.bf16.mxu1 %v8640_v15  ;;  %v8703_v58 = vld [vmem:[#allocation7 + $0x624] ss:$16 sps:$4 sm:$0xff]   ;;  %v10287_v15 = vld [vmem:[#allocation4 + $0x48] sm:$0xff] }
 0x163   :  { %2102 = vmatpush1.bf16.msra.mxu0 %v8635_v59  ;;  %2208 = vmatpush1.bf16.msra.mxu1 %v8638_v34  ;;  %v8706_v59 = vld [vmem:[#allocation7 + $0x62c] ss:$16 sps:$4 sm:$0xff]  }
 0x164   :  { %2103 = vmatprep.subr.bf16.mxu0 %v8643_v60  ;;  %2209 = vmatprep.subr.bf16.mxu1 %v8646_v62  ;;  %v10289_v34 = vld [vmem:[#allocation4 + $0x68] sm:$0xff] }
 0x165   :  { %v149_v60 = vpack.c.bf16 %v10289_v34, %v10287_v15  ;;  %v8704_v62 = vld [vmem:[#allocation7 + $0x628] ss:$16 sps:$4 sm:$0xff]  }
 0x167   :  { %2104 = vmatpush1.bf16.msra.mxu0 %v8641_v61  ;;  %2210 = vmatpush1.bf16.msra.mxu1 %v8644_v63  ;;  %v8701_v61 = vld [vmem:[#allocation7 + $0x620] ss:$16 sps:$4 sm:$0xff]   ;;  %v8709_v63 = vld [vmem:[#allocation7 + $0x644] ss:$16 sps:$4 sm:$0xff]  }
 0x168   :  { %2105 = vmatprep.subr.bf16.mxu0 %v8649_v0  ;;  %2211 = vmatprep.subr.bf16.mxu1 %v8652_v4  ;;  %v8712_v0 = vld [vmem:[#allocation7 + $0x64c] ss:$16 sps:$4 sm:$0xff]   ;;  %v10293_v4 = vld [vmem:[#allocation4 + $0x40] sm:$0xff] }
 0x16b   :  { %2106 = vmatpush1.bf16.msra.mxu0 %v8647_v37  ;;  %2212 = vmatpush1.bf16.msra.mxu1 %v8650_v6  ;;  %v10295_v37 = vld [vmem:[#allocation4 + $0x60] sm:$0xff] }
 0x16c   :  { %2107 = vmatprep.subr.bf16.mxu0 %v8655_v7  ;;  %2213 = vmatprep.subr.bf16.mxu1 %v8658_v8  ;;  %v148_v6 = vpack.c.bf16 %v10295_v37, %v10293_v4  ;;  %v8707_v7 = vld [vmem:[#allocation7 + $0x640] ss:$16 sps:$4 sm:$0xff]   ;;  %v8710_v8 = vld [vmem:[#allocation7 + $0x648] ss:$16 sps:$4 sm:$0xff]  }
 0x16f   :  { %2108 = vmatpush1.bf16.msra.mxu0 %v8653_v9  ;;  %2214 = vmatpush1.bf16.msra.mxu1 %v8656_v10  ;;  %v8715_v9 = vld [vmem:[#allocation7 + $0x664] ss:$16 sps:$4 sm:$0xff]   ;;  %v8718_v10 = vld [vmem:[#allocation7 + $0x66c] ss:$16 sps:$4 sm:$0xff]  }
 0x170   :  { %2109 = vmatprep.subr.bf16.mxu0 %v8661_v14  ;;  %2215 = vmatprep.subr.bf16.mxu1 %v8664_v16  ;;  %v10299_v14 = vld [vmem:[#allocation4 + $0x38] sm:$0xff] }
 0x171   :  { %v8990_v16 = vld [vmem:[#allocation4 + $0x18] sm:$0xff] }
 0x173   :  { %2110 = vmatpush1.bf16.msra.mxu0 %v8659_v17  ;;  %2216 = vmatpush1.bf16.msra.mxu1 %v8662_v19  ;;  %v147_v17 = vpack.c.bf16 %v10299_v14, %v8990_v16  ;;  %v8713_v19 = vld [vmem:[#allocation7 + $0x660] ss:$16 sps:$4 sm:$0xff]   ;;  %v8775_v16 = vld [vmem:[#allocation7 + $0x7a4] ss:$16 sps:$4 sm:$0xff]  }
 0x174   :  { %2111 = vmatprep.subr.bf16.mxu0 %v8667_v20  ;;  %2217 = vmatprep.subr.bf16.mxu1 %v8670_v21  ;;  %v8716_v20 = vld [vmem:[#allocation7 + $0x668] ss:$16 sps:$4 sm:$0xff]   ;;  %v8721_v21 = vld [vmem:[#allocation7 + $0x684] ss:$16 sps:$4 sm:$0xff]  }
 0x177   :  { %2112 = vmatpush1.bf16.msra.mxu0 %v8665_v29  ;;  %2218 = vmatpush1.bf16.msra.mxu1 %v8668_v30  ;;  %v8724_v29 = vld [vmem:[#allocation7 + $0x68c] ss:$16 sps:$4 sm:$0xff]   ;;  %v8719_v30 = vld [vmem:[#allocation7 + $0x680] ss:$16 sps:$4 sm:$0xff]  }
 0x178   :  { %2113 = vmatprep.subr.bf16.mxu0 %v8673_v31  ;;  %2219 = vmatprep.subr.bf16.mxu1 %v8676_v32  ;;  %v8722_v31 = vld [vmem:[#allocation7 + $0x688] ss:$16 sps:$4 sm:$0xff]   ;;  %v8727_v32 = vld [vmem:[#allocation7 + $0x6a4] ss:$16 sps:$4 sm:$0xff]  }
 0x17b   :  { %2114 = vmatpush1.bf16.msra.mxu0 %v8671_v33  ;;  %2220 = vmatpush1.bf16.msra.mxu1 %v8674_v36  ;;  %v8730_v33 = vld [vmem:[#allocation7 + $0x6ac] ss:$16 sps:$4 sm:$0xff]   ;;  %v8725_v36 = vld [vmem:[#allocation7 + $0x6a0] ss:$16 sps:$4 sm:$0xff]  }
 0x17c   :  { %2115 = vmatprep.subr.bf16.mxu0 %v8679_v38  ;;  %2221 = vmatprep.subr.bf16.mxu1 %v8682_v40  ;;  %v8728_v38 = vld [vmem:[#allocation7 + $0x6a8] ss:$16 sps:$4 sm:$0xff]   ;;  %v8733_v40 = vld [vmem:[#allocation7 + $0x6c4] ss:$16 sps:$4 sm:$0xff]  }
 0x17f   :  { %2116 = vmatpush1.bf16.msra.mxu0 %v8677_v41  ;;  %2222 = vmatpush1.bf16.msra.mxu1 %v8680_v42  ;;  %v8736_v41 = vld [vmem:[#allocation7 + $0x6cc] ss:$16 sps:$4 sm:$0xff]   ;;  %v8731_v42 = vld [vmem:[#allocation7 + $0x6c0] ss:$16 sps:$4 sm:$0xff]  }
 0x180   :  { %2117 = vmatprep.subr.bf16.mxu0 %v8685_v43  ;;  %2223 = vmatprep.subr.bf16.mxu1 %v8688_v44  ;;  %v8734_v43 = vld [vmem:[#allocation7 + $0x6c8] ss:$16 sps:$4 sm:$0xff]   ;;  %v8739_v44 = vld [vmem:[#allocation7 + $0x6e4] ss:$16 sps:$4 sm:$0xff]  }
 0x183   :  { %2118 = vmatpush1.bf16.msra.mxu0 %v8683_v45  ;;  %2224 = vmatpush1.bf16.msra.mxu1 %v8686_v46  ;;  %v8742_v45 = vld [vmem:[#allocation7 + $0x6ec] ss:$16 sps:$4 sm:$0xff]   ;;  %v8737_v46 = vld [vmem:[#allocation7 + $0x6e0] ss:$16 sps:$4 sm:$0xff]  }
 0x184   :  { %2119 = vmatprep.subr.bf16.mxu0 %v8691_v23  ;;  %2225 = vmatprep.subr.bf16.mxu1 %v8694_v25  ;;  %v8740_v23 = vld [vmem:[#allocation7 + $0x6e8] ss:$16 sps:$4 sm:$0xff]   ;;  %v8745_v25 = vld [vmem:[#allocation7 + $0x704] ss:$16 sps:$4 sm:$0xff]  }
 0x187   :  { %2120 = vmatpush1.bf16.msra.mxu0 %v8689_v50  ;;  %2226 = vmatpush1.bf16.msra.mxu1 %v8692_v52  ;;  %v8748_v50 = vld [vmem:[#allocation7 + $0x70c] ss:$16 sps:$4 sm:$0xff]   ;;  %v8743_v52 = vld [vmem:[#allocation7 + $0x700] ss:$16 sps:$4 sm:$0xff]  }
 0x188   :  { %2142 = vmatprep.subr.bf16.mxu0 %v8697_v53  ;;  %2248 = vmatprep.subr.bf16.mxu1 %v8700_v18  ;;  %v8746_v53 = vld [vmem:[#allocation7 + $0x708] ss:$16 sps:$4 sm:$0xff]   ;;  %v8751_v18 = vld [vmem:[#allocation7 + $0x724] ss:$16 sps:$4 sm:$0xff]  }
 0x18a   :  { %2122 = vmatmul.mubr.bf16.vlgmr.msra.gmra.mrb[0].mxu0 %v144_v51  ;;  %2228 = vmatmul.mubr.bf16.vlgmr.msra.gmra.mrb[0].mxu1 %v144_v51  ;;  %v8754_v51 = vld [vmem:[#allocation7 + $0x72c] ss:$16 sps:$4 sm:$0xff]  }
 0x18b   :  { %2143 = vmatpush1.bf16.msra.mxu0 %v8695_v39  ;;  %2249 = vmatpush1.bf16.msra.mxu1 %v8698_v24  ;;  %v8749_v39 = vld [vmem:[#allocation7 + $0x720] ss:$16 sps:$4 sm:$0xff]   ;;  %v8752_v24 = vld [vmem:[#allocation7 + $0x728] ss:$16 sps:$4 sm:$0xff]  }
 0x18c   :  { %2144 = vmatprep.subr.bf16.mxu0 %v8703_v58  ;;  %2250 = vmatprep.subr.bf16.mxu1 %v8706_v59  ;;  %v8757_v58 = vld [vmem:[#allocation7 + $0x744] ss:$16 sps:$4 sm:$0xff]   ;;  %v8760_v59 = vld [vmem:[#allocation7 + $0x74c] ss:$16 sps:$4 sm:$0xff]  }
 0x18d   :  { %2131 = vmatprep.mubr.bf16.mxu0 %v149_v60  ;;  %2237 = vmatprep.mubr.bf16.mxu1 %v149_v60  ;;  %v8755_v60 = vld [vmem:[#allocation7 + $0x740] ss:$16 sps:$4 sm:$0xff]  }
 0x18f   :  { %2145 = vmatpush1.bf16.msra.mxu0 %v8701_v61  ;;  %2251 = vmatpush1.bf16.msra.mxu1 %v8704_v62  ;;  %v8758_v61 = vld [vmem:[#allocation7 + $0x748] ss:$16 sps:$4 sm:$0xff]   ;;  %v8763_v62 = vld [vmem:[#allocation7 + $0x764] ss:$16 sps:$4 sm:$0xff]  }
 0x190   :  { %2146 = vmatprep.subr.bf16.mxu0 %v8709_v63  ;;  %2252 = vmatprep.subr.bf16.mxu1 %v8712_v0  ;;  %v8766_v63 = vld [vmem:[#allocation7 + $0x76c] ss:$16 sps:$4 sm:$0xff]   ;;  %v8761_v0 = vld [vmem:[#allocation7 + $0x760] ss:$16 sps:$4 sm:$0xff]  }
 0x192   :  { %2132 = vmatmul.mubr.bf16.gmra.mrb[4].mxu0 %v148_v6  ;;  %2238 = vmatmul.mubr.bf16.gmra.mrb[4].mxu1 %v148_v6  ;;  %v8764_v6 = vld [vmem:[#allocation7 + $0x768] ss:$16 sps:$4 sm:$0xff]  }
 0x193   :  { %2147 = vmatpush1.bf16.msra.mxu0 %v8707_v7  ;;  %2253 = vmatpush1.bf16.msra.mxu1 %v8710_v8  ;;  %v8769_v7 = vld [vmem:[#allocation7 + $0x784] ss:$16 sps:$4 sm:$0xff]   ;;  %v8772_v8 = vld [vmem:[#allocation7 + $0x78c] ss:$16 sps:$4 sm:$0xff]  }
 0x194   :  { %2148 = vmatprep.subr.bf16.mxu0 %v8715_v9  ;;  %2254 = vmatprep.subr.bf16.mxu1 %v8718_v10  ;;  %v8767_v9 = vld [vmem:[#allocation7 + $0x780] ss:$16 sps:$4 sm:$0xff]   ;;  %v8770_v10 = vld [vmem:[#allocation7 + $0x788] ss:$16 sps:$4 sm:$0xff]  }
 0x195   :  { %2174 = vmatprep.mubr.bf16.mxu0 %v147_v17  ;;  %2280 = vmatprep.mubr.bf16.mxu1 %v147_v17  ;;  %v8778_v17 = vld [vmem:[#allocation7 + $0x7ac] ss:$16 sps:$4 sm:$0xff]  }
 0x197   :  { %2149 = vmatpush1.bf16.msra.mxu0 %v8713_v19  ;;  %2255 = vmatpush1.bf16.msra.mxu1 %v8716_v20  ;;  %v8773_v19 = vld [vmem:[#allocation7 + $0x7a0] ss:$16 sps:$4 sm:$0xff]   ;;  %v8776_v20 = vld [vmem:[#allocation7 + $0x7a8] ss:$16 sps:$4 sm:$0xff]  }
 0x198   :  { %2150 = vmatprep.subr.bf16.mxu0 %v8721_v21  ;;  %2256 = vmatprep.subr.bf16.mxu1 %v8724_v29  ;;  %v8781_v21 = vld [vmem:[#allocation7 + $0x7c4] ss:$16 sps:$4 sm:$0xff]   ;;  %v8784_v29 = vld [vmem:[#allocation7 + $0x7cc] ss:$16 sps:$4 sm:$0xff]  }
 0x19b   :  { %2151 = vmatpush1.bf16.msra.mxu0 %v8719_v30  ;;  %2257 = vmatpush1.bf16.msra.mxu1 %v8722_v31  ;;  %v8779_v30 = vld [vmem:[#allocation7 + $0x7c0] ss:$16 sps:$4 sm:$0xff]   ;;  %v8782_v31 = vld [vmem:[#allocation7 + $0x7c8] ss:$16 sps:$4 sm:$0xff]  }
 0x19c   :  { %2152 = vmatprep.subr.bf16.mxu0 %v8727_v32  ;;  %2258 = vmatprep.subr.bf16.mxu1 %v8730_v33  ;;  %v8787_v32 = vld [vmem:[#allocation7 + $0x7e4] ss:$16 sps:$4 sm:$0xff]   ;;  %v8790_v33 = vld [vmem:[#allocation7 + $0x7ec] ss:$16 sps:$4 sm:$0xff]  }
 0x19f   :  { %2153 = vmatpush1.bf16.msra.mxu0 %v8725_v36  ;;  %2259 = vmatpush1.bf16.msra.mxu1 %v8728_v38  ;;  %v8785_v36 = vld [vmem:[#allocation7 + $0x7e0] ss:$16 sps:$4 sm:$0xff]   ;;  %v8788_v38 = vld [vmem:[#allocation7 + $0x7e8] ss:$16 sps:$4 sm:$0xff]  }
 0x1a0   :  { %2154 = vmatprep.subr.bf16.mxu0 %v8733_v40  ;;  %2260 = vmatprep.subr.bf16.mxu1 %v8736_v41  ;;  %v8793_v40 = vld [vmem:[#allocation7 + $0x804] ss:$16 sps:$4 sm:$0xff]   ;;  %v8796_v41 = vld [vmem:[#allocation7 + $0x80c] ss:$16 sps:$4 sm:$0xff]  }
 0x1a3   :  { %2155 = vmatpush1.bf16.msra.mxu0 %v8731_v42  ;;  %2261 = vmatpush1.bf16.msra.mxu1 %v8734_v43  ;;  %v8991_v42 = vld [vmem:[#allocation4 + $0x30] sm:$0xff] }
 0x1a4   :  { %2156 = vmatprep.subr.bf16.mxu0 %v8739_v44  ;;  %2262 = vmatprep.subr.bf16.mxu1 %v8742_v45  ;;  %v8992_v43 = vld [vmem:[#allocation4 + $0x10] sm:$0xff]  ;;  %v8993_v45 = vld [vmem:[#allocation4 + $0x28] sm:$0xff] }
 0x1a5   :  { %v146_v44 = vpack.c.bf16 %v8991_v42, %v8992_v43  ;;  %v8824_v42 = vld [vmem:[#allocation7 + $0x8a8] ss:$16 sps:$4 sm:$0xff]   ;;  %v8829_v43 = vld [vmem:[#allocation7 + $0x8c4] ss:$16 sps:$4 sm:$0xff]  }
 0x1a7   :  { %2157 = vmatpush1.bf16.msra.mxu0 %v8737_v46  ;;  %2263 = vmatpush1.bf16.msra.mxu1 %v8740_v23  ;;  %v236_v46 = vrot.slane %v8993_v45, 1  ;;  %v240_v23 = vrot.slane %v10287_v15, 1  ;;  %v8827_v45 = vld [vmem:[#allocation7 + $0x8c0] ss:$16 sps:$4 sm:$0xff]   ;;  %v8892_v15 = vld [vmem:[#allocation7 + $0xa0c] ss:$16 sps:$4 sm:$0xff]  }
 0x1a8   :  { %2158 = vmatprep.subr.bf16.mxu0 %v8745_v25  ;;  %2264 = vmatprep.subr.bf16.mxu1 %v8748_v50  ;;  %v10303_v25 = vld [vmem:[#allocation4 + $0x8] sm:$0xff] }
 0x1a9   :  { %v232_v50 = vrot.slane %v10303_v25, 1  ;;  %v243_v25 = vrot.slane %v10295_v37, 1  ;;  %v8890_v37 = vld [vmem:[#allocation7 + $0xa08] ss:$16 sps:$4 sm:$0xff]  }
 0x1ab   :  { %2159 = vmatpush1.bf16.msra.mxu0 %v8743_v52  ;;  %2265 = vmatpush1.bf16.msra.mxu1 %v8746_v53  ;;  %v8791_v52 = vld [vmem:[#allocation7 + $0x800] ss:$16 sps:$4 sm:$0xff]   ;;  %v8794_v53 = vld [vmem:[#allocation7 + $0x808] ss:$16 sps:$4 sm:$0xff]  }
 0x1ac   :  { %2160 = vmatprep.subr.bf16.mxu0 %v8751_v18  ;;  %2266 = vmatprep.subr.bf16.mxu1 %v8754_v51  ;;  %v8799_v18 = vld [vmem:[#allocation7 + $0x824] ss:$16 sps:$4 sm:$0xff]   ;;  %v8802_v51 = vld [vmem:[#allocation7 + $0x82c] ss:$16 sps:$4 sm:$0xff]  }
 0x1af   :  { %2161 = vmatpush1.bf16.msra.mxu0 %v8749_v39  ;;  %2267 = vmatpush1.bf16.msra.mxu1 %v8752_v24  ;;  %v8995_v39 = vld [vmem:[#allocation4 + $0x58] sm:$0xff] }
 0x1b0   :  { %2162 = vmatprep.subr.bf16.mxu0 %v8757_v58  ;;  %2268 = vmatprep.subr.bf16.mxu1 %v8760_v59  ;;  %v8996_v24 = vld [vmem:[#allocation4 + $0x78] sm:$0xff]  ;;  %v253_v59 = vsel %vm247_vm1, %v236_v46, %v240_v23 }
 0x1b1   :  { %v151_v58 = vpack.c.bf16 %v8996_v24, %v8995_v39  ;;  %v8841_v39 = vld [vmem:[#allocation7 + $0x904] ss:$16 sps:$4 sm:$0xff]   ;;  %v8844_v24 = vld [vmem:[#allocation7 + $0x90c] ss:$16 sps:$4 sm:$0xff]  }
 0x1b3   :  { %2163 = vmatpush1.bf16.msra.mxu0 %v8755_v60  ;;  %2269 = vmatpush1.bf16.msra.mxu1 %v8758_v61  ;;  %v257_v60 = vsel %vm247_vm1, %v232_v50, %v236_v46  ;;  %v8797_v61 = vld [vmem:[#allocation7 + $0x820] ss:$16 sps:$4 sm:$0xff]   ;;  %v8830_v46 = vld [vmem:[#allocation7 + $0x8c8] ss:$16 sps:$4 sm:$0xff]  }
 0x1b4   :  { %2164 = vmatprep.subr.bf16.mxu0 %v8763_v62  ;;  %2270 = vmatprep.subr.bf16.mxu1 %v8766_v63  ;;  %v8800_v62 = vld [vmem:[#allocation7 + $0x828] ss:$16 sps:$4 sm:$0xff]   ;;  %v8805_v63 = vld [vmem:[#allocation7 + $0x844] ss:$16 sps:$4 sm:$0xff]  }
 0x1b7   :  { %2165 = vmatpush1.bf16.msra.mxu0 %v8761_v0  ;;  %2271 = vmatpush1.bf16.msra.mxu1 %v8764_v6  ;;  %v8808_v0 = vld [vmem:[#allocation7 + $0x84c] ss:$16 sps:$4 sm:$0xff]   ;;  %v289_v6 = vmul.f32 %v10226_v26, %v253_v59  ;;  %v8842_v59 = vld [vmem:[#allocation7 + $0x908] ss:$16 sps:$4 sm:$0xff]  }
 0x1b8   :  { %2166 = vmatprep.subr.bf16.mxu0 %v8769_v7  ;;  %2272 = vmatprep.subr.bf16.mxu1 %v8772_v8  ;;  %v285_v7 = vmul.f32 %v10229_v28, %v257_v60  ;;  %v8997_v8 = vld [vmem:[#allocation4 + $0x70] sm:$0xff] }
 0x1b9   :  { %v8847_v60 = vld [vmem:[#allocation7 + $0x924] ss:$16 sps:$4 sm:$0xff]  }
 0x1bb   :  { %2167 = vmatpush1.bf16.msra.mxu0 %v8767_v9  ;;  %2273 = vmatpush1.bf16.msra.mxu1 %v8770_v10  ;;  %v8998_v9 = vld [vmem:[#allocation4 + $0x50] sm:$0xff] }
 0x1bc   :  { %2168 = vmatprep.subr.bf16.mxu0 %v8775_v16  ;;  %2274 = vmatprep.subr.bf16.mxu1 %v8778_v17  ;;  %v150_v10 = vpack.c.bf16 %v8997_v8, %v8998_v9  ;;  %v8803_v16 = vld [vmem:[#allocation7 + $0x840] ss:$16 sps:$4 sm:$0xff]   ;;  %v8806_v17 = vld [vmem:[#allocation7 + $0x848] ss:$16 sps:$4 sm:$0xff]   ;;  %v8859_v9 = vld [vmem:[#allocation7 + $0x964] ss:$16 sps:$4 sm:$0xff]  }
 0x1bd   :  { %v8854_v8 = vld [vmem:[#allocation7 + $0x948] ss:$16 sps:$4 sm:$0xff]  }
 0x1bf   :  { %2169 = vmatpush1.bf16.msra.mxu0 %v8773_v19  ;;  %2275 = vmatpush1.bf16.msra.mxu1 %v8776_v20  ;;  %v8811_v19 = vld [vmem:[#allocation7 + $0x864] ss:$16 sps:$4 sm:$0xff]   ;;  %v301_v20 = vpack.c.bf16 %v289_v6, %v285_v7  ;;  %v8856_v6 = vld [vmem:[#allocation7 + $0x94c] ss:$16 sps:$4 sm:$0xff]   ;;  %v8851_v7 = vld [vmem:[#allocation7 + $0x940] ss:$16 sps:$4 sm:$0xff]  }
 0x1c0   :  { %2170 = vmatprep.subr.bf16.mxu0 %v8781_v21  ;;  %2276 = vmatprep.subr.bf16.mxu1 %v8784_v29  ;;  %v8814_v21 = vld [vmem:[#allocation7 + $0x86c] ss:$16 sps:$4 sm:$0xff]   ;;  %v8809_v29 = vld [vmem:[#allocation7 + $0x860] ss:$16 sps:$4 sm:$0xff]  }
 0x1c3   :  { %2171 = vmatpush1.bf16.msra.mxu0 %v8779_v30  ;;  %2277 = vmatpush1.bf16.msra.mxu1 %v8782_v31  ;;  %v8812_v30 = vld [vmem:[#allocation7 + $0x868] ss:$16 sps:$4 sm:$0xff]   ;;  %v8817_v31 = vld [vmem:[#allocation7 + $0x884] ss:$16 sps:$4 sm:$0xff]  }
 0x1c4   :  { %2172 = vmatprep.subr.bf16.mxu0 %v8787_v32  ;;  %2278 = vmatprep.subr.bf16.mxu1 %v8790_v33  ;;  %v8820_v32 = vld [vmem:[#allocation7 + $0x88c] ss:$16 sps:$4 sm:$0xff]   ;;  %v8815_v33 = vld [vmem:[#allocation7 + $0x880] ss:$16 sps:$4 sm:$0xff]  }
 0x1c7   :  { %2173 = vmatpush1.bf16.msra.mxu0 %v8785_v36  ;;  %2279 = vmatpush1.bf16.msra.mxu1 %v8788_v38  ;;  %v8818_v36 = vld [vmem:[#allocation7 + $0x888] ss:$16 sps:$4 sm:$0xff]   ;;  %v8823_v38 = vld [vmem:[#allocation7 + $0x8a4] ss:$16 sps:$4 sm:$0xff]  }
 0x1c8   :  { %3118 = vmatprep.subr.bf16.mxu0 %v8793_v40  ;;  %3224 = vmatprep.subr.bf16.mxu1 %v8796_v41  ;;  %v8826_v40 = vld [vmem:[#allocation7 + $0x8ac] ss:$16 sps:$4 sm:$0xff]   ;;  %v8821_v41 = vld [vmem:[#allocation7 + $0x8a0] ss:$16 sps:$4 sm:$0xff]  }
 0x1ca   :  { %2175 = vmatmul.mubr.bf16.vlgmr.msra.gmra.mrb[0].mxu0 %v146_v44  ;;  %2281 = vmatmul.mubr.bf16.vlgmr.msra.gmra.mrb[0].mxu1 %v146_v44  ;;  %v8832_v44 = vld [vmem:[#allocation7 + $0x8cc] ss:$16 sps:$4 sm:$0xff]  }
 0x1cb   :  { %3119 = vmatpush1.bf16.msra.mxu0 %v8791_v52  ;;  %3225 = vmatpush1.bf16.msra.mxu1 %v8794_v53  ;;  %v8835_v52 = vld [vmem:[#allocation7 + $0x8e4] ss:$16 sps:$4 sm:$0xff]   ;;  %v8838_v53 = vld [vmem:[#allocation7 + $0x8ec] ss:$16 sps:$4 sm:$0xff]  }
 0x1cc   :  { %3120 = vmatprep.subr.bf16.mxu0 %v8799_v18  ;;  %3226 = vmatprep.subr.bf16.mxu1 %v8802_v51  ;;  %v8833_v18 = vld [vmem:[#allocation7 + $0x8e0] ss:$16 sps:$4 sm:$0xff]   ;;  %v8836_v51 = vld [vmem:[#allocation7 + $0x8e8] ss:$16 sps:$4 sm:$0xff]  }
 0x1cd   :  { %2184 = vmatprep.mubr.bf16.mxu0 %v151_v58  ;;  %2290 = vmatprep.mubr.bf16.mxu1 %v151_v58  ;;  %v8839_v58 = vld [vmem:[#allocation7 + $0x900] ss:$16 sps:$4 sm:$0xff]  }
 0x1cf   :  { %3121 = vmatpush1.bf16.msra.mxu0 %v8797_v61  ;;  %3227 = vmatpush1.bf16.msra.mxu1 %v8800_v62  ;;  %v8850_v61 = vld [vmem:[#allocation7 + $0x92c] ss:$16 sps:$4 sm:$0xff]   ;;  %v8845_v62 = vld [vmem:[#allocation7 + $0x920] ss:$16 sps:$4 sm:$0xff]  }
 0x1d0   :  { %3122 = vmatprep.subr.bf16.mxu0 %v8805_v63  ;;  %3228 = vmatprep.subr.bf16.mxu1 %v8808_v0  ;;  %v8848_v63 = vld [vmem:[#allocation7 + $0x928] ss:$16 sps:$4 sm:$0xff]   ;;  %v8853_v0 = vld [vmem:[#allocation7 + $0x944] ss:$16 sps:$4 sm:$0xff]  }
 0x1d2   :  { %2185 = vmatmul.mubr.bf16.gmra.mrb[4].mxu0 %v150_v10  ;;  %2291 = vmatmul.mubr.bf16.gmra.mrb[4].mxu1 %v150_v10  ;;  %v8862_v10 = vld [vmem:[#allocation7 + $0x96c] ss:$16 sps:$4 sm:$0xff]  }
 0x1d3   :  { %3123 = vmatpush1.bf16.msra.mxu0 %v8803_v16  ;;  %3150 = vmatprep.mubr.bf16.mxu0 %v301_v20  ;;  %v8857_v16 = vld [vmem:[#allocation7 + $0x960] ss:$16 sps:$4 sm:$0xff]  }
 0x1d4   :  { %3229 = vmatpush1.bf16.msra.mxu1 %v8806_v17  ;;  %3256 = vmatprep.mubr.bf16.mxu1 %v301_v20  ;;  %v8860_v17 = vld [vmem:[#allocation7 + $0x968] ss:$16 sps:$4 sm:$0xff]   ;;  %v8868_v20 = vld [vmem:[#allocation7 + $0x98c] ss:$16 sps:$4 sm:$0xff]  }
 0x1d5   :  { %3124 = vmatprep.subr.bf16.mxu0 %v8811_v19  ;;  %3230 = vmatprep.subr.bf16.mxu1 %v8814_v21  ;;  %v8865_v19 = vld [vmem:[#allocation7 + $0x984] ss:$16 sps:$4 sm:$0xff]   ;;  %v8863_v21 = vld [vmem:[#allocation7 + $0x980] ss:$16 sps:$4 sm:$0xff]  }
 0x1d7   :  { %3125 = vmatpush1.bf16.msra.mxu0 %v8809_v29  ;;  %v8866_v29 = vld [vmem:[#allocation7 + $0x988] ss:$16 sps:$4 sm:$0xff]  }
 0x1d8   :  { %3231 = vmatpush1.bf16.msra.mxu1 %v8812_v30  ;;  %3126 = vmatprep.subr.bf16.mxu0 %v8817_v31  ;;  %v8871_v30 = vld [vmem:[#allocation7 + $0x9a4] ss:$16 sps:$4 sm:$0xff]   ;;  %v8874_v31 = vld [vmem:[#allocation7 + $0x9ac] ss:$16 sps:$4 sm:$0xff]  }
 0x1d9   :  { %3232 = vmatprep.subr.bf16.mxu1 %v8820_v32  ;;  %v8869_v32 = vld [vmem:[#allocation7 + $0x9a0] ss:$16 sps:$4 sm:$0xff]  }
 0x1db   :  { %3127 = vmatpush1.bf16.msra.mxu0 %v8815_v33  ;;  %v8872_v33 = vld [vmem:[#allocation7 + $0x9a8] ss:$16 sps:$4 sm:$0xff]  }
 0x1dc   :  { %3233 = vmatpush1.bf16.msra.mxu1 %v8818_v36  ;;  %3128 = vmatprep.subr.bf16.mxu0 %v8823_v38  ;;  %v8877_v36 = vld [vmem:[#allocation7 + $0x9c4] ss:$16 sps:$4 sm:$0xff]   ;;  %v235_v38 = vrot.slane %v10281_v35, 1 }
 0x1dd   :  { %3234 = vmatprep.subr.bf16.mxu1 %v8826_v40  ;;  %v239_v40 = vrot.slane %v10293_v4, 1  ;;  %v8886_v4 = vld [vmem:[#allocation7 + $0x9ec] ss:$16 sps:$4 sm:$0xff]  }
 0x1df   :  { %3129 = vmatpush1.bf16.msra.mxu0 %v8821_v41  ;;  %v231_v41 = vrot.slane %v10283_v54, 1 }
 0x1e0   :  { %3235 = vmatpush1.bf16.msra.mxu1 %v8824_v42  ;;  %3130 = vmatprep.subr.bf16.mxu0 %v8829_v43  ;;  %v8880_v42 = vld [vmem:[#allocation7 + $0x9cc] ss:$16 sps:$4 sm:$0xff]   ;;  %v244_v43 = vrot.slane %v10289_v34, 1 }
 0x1e1   :  { %3236 = vmatprep.subr.bf16.mxu1 %v8832_v44  ;;  %v8875_v44 = vld [vmem:[#allocation7 + $0x9c0] ss:$16 sps:$4 sm:$0xff]   ;;  %v256_v35 = vsel %vm247_vm1, %v231_v41, %v235_v38 }
 0x1e2   :  { %v261_v54 = vsel %vm247_vm1, %v244_v43, %v232_v50  ;;  %v249_v34 = vsel %vm247_vm1, %v240_v23, %v244_v43  ;;  %v238_v23 = vrot.slane %v10299_v14, 1  ;;  %v8917_v43 = vld [vmem:[#allocation7 + $0xaa0] ss:$16 sps:$4 sm:$0xff]  }
 0x1e3   :  { %3131 = vmatpush1.bf16.msra.mxu0 %v8827_v45  ;;  %v8878_v45 = vld [vmem:[#allocation7 + $0x9c8] ss:$16 sps:$4 sm:$0xff]   ;;  %v293_v50 = vmul.f32 %v10257_v57, %v249_v34  ;;  %v8929_v34 = vld [vmem:[#allocation7 + $0xae0] ss:$16 sps:$4 sm:$0xff]  }
 0x1e4   :  { %3237 = vmatpush1.bf16.msra.mxu1 %v8830_v46  ;;  %3132 = vmatprep.subr.bf16.mxu0 %v8835_v52  ;;  %v8883_v46 = vld [vmem:[#allocation7 + $0x9e4] ss:$16 sps:$4 sm:$0xff]   ;;  %v252_v52 = vsel %vm247_vm1, %v235_v38, %v239_v40  ;;  %v255_v14 = vsel %vm247_vm1, %v238_v23, %v242_v3  ;;  %v8911_v38 = vld [vmem:[#allocation7 + $0xa80] ss:$16 sps:$4 sm:$0xff]  }
 0x1e5   :  { %3238 = vmatprep.subr.bf16.mxu1 %v8838_v53  ;;  %v8881_v53 = vld [vmem:[#allocation7 + $0x9e0] ss:$16 sps:$4 sm:$0xff]   ;;  %v291_v22 = vmul.f32 %v10226_v26, %v255_v14  ;;  %v8961_v14 = vld [vmem:[#allocation7 + $0xb84] ss:$16 sps:$4 sm:$0xff]  }
 0x1e7   :  { %3133 = vmatpush1.bf16.msra.mxu0 %v8833_v18  ;;  %v288_v18 = vmul.f32 %v10226_v26, %v252_v52  ;;  %v8923_v52 = vld [vmem:[#allocation7 + $0xac0] ss:$16 sps:$4 sm:$0xff]  }
 0x1e8   :  { %3239 = vmatpush1.bf16.msra.mxu1 %v8836_v51  ;;  %3134 = vmatprep.subr.bf16.mxu0 %v8841_v39  ;;  %v284_v51 = vmul.f32 %v10229_v28, %v256_v35  ;;  %v8884_v39 = vld [vmem:[#allocation7 + $0x9e8] ss:$16 sps:$4 sm:$0xff]  }
 0x1e9   :  { %3240 = vmatprep.subr.bf16.mxu1 %v8844_v24  ;;  %v8889_v24 = vld [vmem:[#allocation7 + $0xa04] ss:$16 sps:$4 sm:$0xff]   ;;  %v8926_v35 = vld [vmem:[#allocation7 + $0xac8] ss:$16 sps:$4 sm:$0xff]  }
 0x1eb   :  { %3135 = vmatpush1.bf16.msra.mxu0 %v8839_v58  ;;  %v297_v58 = vmul.f32 %v10255_v56, %v261_v54  ;;  %v8934_v54 = vld [vmem:[#allocation7 + $0xaec] ss:$16 sps:$4 sm:$0xff]  }
 0x1ec   :  { %3241 = vmatpush1.bf16.msra.mxu1 %v8842_v59  ;;  %3136 = vmatprep.subr.bf16.mxu0 %v8847_v60  ;;  %v300_v59 = vpack.c.bf16 %v288_v18, %v284_v51  ;;  %v8887_v60 = vld [vmem:[#allocation7 + $0xa00] ss:$16 sps:$4 sm:$0xff]   ;;  %v8937_v18 = vld [vmem:[#allocation7 + $0xb04] ss:$16 sps:$4 sm:$0xff]   ;;  %v8940_v51 = vld [vmem:[#allocation7 + $0xb0c] ss:$16 sps:$4 sm:$0xff]  }
 0x1ed   :  { %3242 = vmatprep.subr.bf16.mxu1 %v8850_v61  ;;  %v260_v61 = vsel %vm247_vm1, %v243_v25, %v231_v41  ;;  %v8919_v41 = vld [vmem:[#allocation7 + $0xaa4] ss:$16 sps:$4 sm:$0xff]  }
 0x1ef   :  { %3137 = vmatpush1.bf16.msra.mxu0 %v8845_v62  ;;  %v248_v62 = vsel %vm247_vm1, %v239_v40, %v243_v25  ;;  %v8914_v40 = vld [vmem:[#allocation7 + $0xa88] ss:$16 sps:$4 sm:$0xff]   ;;  %v8943_v25 = vld [vmem:[#allocation7 + $0xb24] ss:$16 sps:$4 sm:$0xff]  }
 0x1f0   :  { %3243 = vmatpush1.bf16.msra.mxu1 %v8848_v63  ;;  %3138 = vmatprep.subr.bf16.mxu0 %v8853_v0  ;;  %v305_v63 = vpack.c.bf16 %v297_v58, %v293_v50  ;;  %v8895_v0 = vld [vmem:[#allocation7 + $0xa24] ss:$16 sps:$4 sm:$0xff]   ;;  %v8946_v58 = vld [vmem:[#allocation7 + $0xb2c] ss:$16 sps:$4 sm:$0xff]   ;;  %v8941_v50 = vld [vmem:[#allocation7 + $0xb20] ss:$16 sps:$4 sm:$0xff]  }
 0x1f1   :  { %3244 = vmatprep.subr.bf16.mxu1 %v8856_v6  ;;  %v259_v6 = vsel %vm247_vm1, %v234_v27, %v238_v23  ;;  %v8904_v27 = vld [vmem:[#allocation7 + $0xa4c] ss:$16 sps:$4 sm:$0xff]   ;;  %v8949_v23 = vld [vmem:[#allocation7 + $0xb44] ss:$16 sps:$4 sm:$0xff]  }
 0x1f2   :  { %v287_v3 = vmul.f32 %v10229_v28, %v259_v6  ;;  %v8964_v6 = vld [vmem:[#allocation7 + $0xb8c] ss:$16 sps:$4 sm:$0xff]  }
 0x1f3   :  { %3139 = vmatpush1.bf16.msra.mxu0 %v8851_v7  ;;  %v8898_v7 = vld [vmem:[#allocation7 + $0xa2c] ss:$16 sps:$4 sm:$0xff]  }
 0x1f4   :  { %3245 = vmatpush1.bf16.msra.mxu1 %v8854_v8  ;;  %3140 = vmatprep.subr.bf16.mxu0 %v8859_v9  ;;  %v296_v8 = vmul.f32 %v10255_v56, %v260_v61  ;;  %v292_v9 = vmul.f32 %v10257_v57, %v248_v62  ;;  %v8950_v61 = vld [vmem:[#allocation7 + $0xb48] ss:$16 sps:$4 sm:$0xff]   ;;  %v8955_v62 = vld [vmem:[#allocation7 + $0xb64] ss:$16 sps:$4 sm:$0xff]  }
 0x1f5   :  { %3246 = vmatprep.subr.bf16.mxu1 %v8862_v10  ;;  %v8893_v10 = vld [vmem:[#allocation7 + $0xa20] ss:$16 sps:$4 sm:$0xff]  }
 0x1f7   :  { %3141 = vmatpush1.bf16.msra.mxu0 %v8857_v16  ;;  %v8901_v16 = vld [vmem:[#allocation7 + $0xa44] ss:$16 sps:$4 sm:$0xff]  }
 0x1f8   :  { %3247 = vmatpush1.bf16.msra.mxu1 %v8860_v17  ;;  %3142 = vmatprep.subr.bf16.mxu0 %v8865_v19  ;;  %v304_v17 = vpack.c.bf16 %v296_v8, %v292_v9  ;;  %v8899_v19 = vld [vmem:[#allocation7 + $0xa40] ss:$16 sps:$4 sm:$0xff]   ;;  %v8962_v8 = vld [vmem:[#allocation7 + $0xb88] ss:$16 sps:$4 sm:$0xff]   ;;  %v8967_v9 = vld [vmem:[#allocation7 + $0xba4] ss:$16 sps:$4 sm:$0xff]  }
 0x1f9   :  { %3248 = vmatprep.subr.bf16.mxu1 %v8868_v20  ;;  %v8902_v20 = vld [vmem:[#allocation7 + $0xa48] ss:$16 sps:$4 sm:$0xff]  }
 0x1fb   :  { %3143 = vmatpush1.bf16.msra.mxu0 %v8863_v21  ;;  %v303_v21 = vpack.c.bf16 %v291_v22, %v287_v3  ;;  %v8965_v22 = vld [vmem:[#allocation7 + $0xba0] ss:$16 sps:$4 sm:$0xff]   ;;  %v8968_v3 = vld [vmem:[#allocation7 + $0xba8] ss:$16 sps:$4 sm:$0xff]  }
 0x1fc   :  { %3249 = vmatpush1.bf16.msra.mxu1 %v8866_v29  ;;  %3144 = vmatprep.subr.bf16.mxu0 %v8871_v30  ;;  %v8907_v29 = vld [vmem:[#allocation7 + $0xa64] ss:$16 sps:$4 sm:$0xff]   ;;  %v8910_v30 = vld [vmem:[#allocation7 + $0xa6c] ss:$16 sps:$4 sm:$0xff]  }
 0x1fd   :  { %3250 = vmatprep.subr.bf16.mxu1 %v8874_v31  ;;  %v8905_v31 = vld [vmem:[#allocation7 + $0xa60] ss:$16 sps:$4 sm:$0xff]  }
 0x1ff   :  { %3145 = vmatpush1.bf16.msra.mxu0 %v8869_v32  ;;  %v8908_v32 = vld [vmem:[#allocation7 + $0xa68] ss:$16 sps:$4 sm:$0xff]  }
 0x200   :  { %3251 = vmatpush1.bf16.msra.mxu1 %v8872_v33  ;;  %3146 = vmatprep.subr.bf16.mxu0 %v8877_v36  ;;  %v8913_v33 = vld [vmem:[#allocation7 + $0xa84] ss:$16 sps:$4 sm:$0xff]   ;;  %v8916_v36 = vld [vmem:[#allocation7 + $0xa8c] ss:$16 sps:$4 sm:$0xff]  }
 0x201   :  { %3252 = vmatprep.subr.bf16.mxu1 %v8880_v42  ;;  %v8922_v42 = vld [vmem:[#allocation7 + $0xaac] ss:$16 sps:$4 sm:$0xff]  }
 0x203   :  { %3147 = vmatpush1.bf16.msra.mxu0 %v8875_v44  ;;  %v8920_v44 = vld [vmem:[#allocation7 + $0xaa8] ss:$16 sps:$4 sm:$0xff]  }
 0x204   :  { %3253 = vmatpush1.bf16.msra.mxu1 %v8878_v45  ;;  %3148 = vmatprep.subr.bf16.mxu0 %v8883_v46  ;;  %v8925_v45 = vld [vmem:[#allocation7 + $0xac4] ss:$16 sps:$4 sm:$0xff]   ;;  %v8928_v46 = vld [vmem:[#allocation7 + $0xacc] ss:$16 sps:$4 sm:$0xff]  }
 0x205   :  { %3254 = vmatprep.subr.bf16.mxu1 %v8886_v4  ;;  %v8931_v4 = vld [vmem:[#allocation7 + $0xae4] ss:$16 sps:$4 sm:$0xff]  }
 0x207   :  { %3149 = vmatpush1.bf16.msra.mxu0 %v8881_v53  ;;  %v8932_v53 = vld [vmem:[#allocation7 + $0xae8] ss:$16 sps:$4 sm:$0xff]  }
 0x208   :  { %3255 = vmatpush1.bf16.msra.mxu1 %v8884_v39  ;;  %3171 = vmatprep.subr.bf16.mxu0 %v8889_v24  ;;  %v8935_v39 = vld [vmem:[#allocation7 + $0xb00] ss:$16 sps:$4 sm:$0xff]   ;;  %v8938_v24 = vld [vmem:[#allocation7 + $0xb08] ss:$16 sps:$4 sm:$0xff]  }
 0x209   :  { %3277 = vmatprep.subr.bf16.mxu1 %v8892_v15  ;;  %v8944_v15 = vld [vmem:[#allocation7 + $0xb28] ss:$16 sps:$4 sm:$0xff]  }
 0x20a   :  { %3151 = vmatmul.mubr.bf16.vlgmr.msra.gmra.mrb[0].mxu0 %v300_v59 }
 0x20b   :  { %3257 = vmatmul.mubr.bf16.vlgmr.msra.gmra.mrb[0].mxu1 %v300_v59  ;;  %3160 = vmatprep.mubr.bf16.mxu0 %v305_v63  ;;  %v8952_v59 = vld [vmem:[#allocation7 + $0xb4c] ss:$16 sps:$4 sm:$0xff]  }
 0x20c   :  { %3172 = vmatpush1.bf16.msra.mxu0 %v8887_v60  ;;  %3266 = vmatprep.mubr.bf16.mxu1 %v305_v63  ;;  %v8947_v60 = vld [vmem:[#allocation7 + $0xb40] ss:$16 sps:$4 sm:$0xff]  }
 0x20d   :  { %3278 = vmatpush1.bf16.msra.mxu1 %v8890_v37  ;;  %3173 = vmatprep.subr.bf16.mxu0 %v8895_v0  ;;  %v8958_v37 = vld [vmem:[#allocation7 + $0xb6c] ss:$16 sps:$4 sm:$0xff]   ;;  %v8953_v63 = vld [vmem:[#allocation7 + $0xb60] ss:$16 sps:$4 sm:$0xff]   ;;  %v8956_v0 = vld [vmem:[#allocation7 + $0xb68] ss:$16 sps:$4 sm:$0xff]  }
 0x20e   :  { %3279 = vmatprep.subr.bf16.mxu1 %v8898_v7  ;;  %v8959_v7 = vld [vmem:[#allocation7 + $0xb80] ss:$16 sps:$4 sm:$0xff]  }
 0x210   :  { %3174 = vmatpush1.bf16.msra.mxu0 %v8893_v10  ;;  %v8970_v10 = vld [vmem:[#allocation7 + $0xbac] ss:$16 sps:$4 sm:$0xff]  }
 0x211   :  { %3280 = vmatpush1.bf16.msra.mxu1 %v8896_v13  ;;  %3175 = vmatprep.subr.bf16.mxu0 %v8901_v16  ;;  %v8973_v13 = vld [vmem:[#allocation7 + $0xbc4] ss:$16 sps:$4 sm:$0xff]   ;;  %v8976_v16 = vld [vmem:[#allocation7 + $0xbcc] ss:$16 sps:$4 sm:$0xff]  }
 0x212   :  { %3161 = vmatmul.mubr.bf16.gmra.mrb[4].mxu0 %v304_v17  ;;  %3281 = vmatprep.subr.bf16.mxu1 %v8904_v27  ;;  %v8971_v27 = vld [vmem:[#allocation7 + $0xbc0] ss:$16 sps:$4 sm:$0xff]  }
 0x213   :  { %3267 = vmatmul.mubr.bf16.gmra.mrb[4].mxu1 %v304_v17  ;;  %3203 = vmatprep.mubr.bf16.mxu0 %v303_v21  ;;  %v8974_v17 = vld [vmem:[#allocation7 + $0xbc8] ss:$16 sps:$4 sm:$0xff]  }
 0x214   :  { %3176 = vmatpush1.bf16.msra.mxu0 %v8899_v19  ;;  %3309 = vmatprep.mubr.bf16.mxu1 %v303_v21  ;;  %v8979_v19 = vld [vmem:[#allocation7 + $0xbe4] ss:$16 sps:$4 sm:$0xff]   ;;  %v8977_v21 = vld [vmem:[#allocation7 + $0xbe0] ss:$16 sps:$4 sm:$0xff]  }
 0x215   :  { %3282 = vmatpush1.bf16.msra.mxu1 %v8902_v20  ;;  %3177 = vmatprep.subr.bf16.mxu0 %v8907_v29  ;;  %v8982_v20 = vld [vmem:[#allocation7 + $0xbec] ss:$16 sps:$4 sm:$0xff]   ;;  %v8980_v29 = vld [vmem:[#allocation7 + $0xbe8] ss:$16 sps:$4 sm:$0xff]  }
 0x216   :  { %3283 = vmatprep.subr.bf16.mxu1 %v8910_v30 }
 0x218   :  { %3178 = vmatpush1.bf16.msra.mxu0 %v8905_v31 }
 0x219   :  { %3284 = vmatpush1.bf16.msra.mxu1 %v8908_v32  ;;  %3179 = vmatprep.subr.bf16.mxu0 %v8913_v33 }
 0x21a   :  { %3285 = vmatprep.subr.bf16.mxu1 %v8916_v36 }
 0x21c   :  { %3180 = vmatpush1.bf16.msra.mxu0 %v8911_v38 }
 0x21d   :  { %3286 = vmatpush1.bf16.msra.mxu1 %v8914_v40  ;;  %3181 = vmatprep.subr.bf16.mxu0 %v8919_v41 }
 0x21e   :  { %3287 = vmatprep.subr.bf16.mxu1 %v8922_v42 }
 0x220   :  { %3182 = vmatpush1.bf16.msra.mxu0 %v8917_v43 }
 0x221   :  { %3288 = vmatpush1.bf16.msra.mxu1 %v8920_v44  ;;  %3183 = vmatprep.subr.bf16.mxu0 %v8925_v45 }
 0x222   :  { %3289 = vmatprep.subr.bf16.mxu1 %v8928_v46 }
 0x224   :  { %3184 = vmatpush1.bf16.msra.mxu0 %v8923_v52  ;;  %v10360_v52 = vmov 0.0  }
 0x225   :  { %3290 = vmatpush1.bf16.msra.mxu1 %v8926_v35  ;;  %3185 = vmatprep.subr.bf16.mxu0 %v8931_v4  ;;  %v10362_v35 = vmov 0.0   ;;  %v10364_v4 = vmov 0.0  }
 0x226   :  { %3291 = vmatprep.subr.bf16.mxu1 %v8934_v54  ;;  %v10366_v54 = vmov 0.0  }
 0x228   :  { %3186 = vmatpush1.bf16.msra.mxu0 %v8929_v34  ;;  %v10368_v34 = vmov 0.0  }
 0x229   :  { %3292 = vmatpush1.bf16.msra.mxu1 %v8932_v53  ;;  %3187 = vmatprep.subr.bf16.mxu0 %v8937_v18  ;;  %v10370_v53 = vmov 0.0   ;;  %v10372_v18 = vmov 0.0  }
 0x22a   :  { %3293 = vmatprep.subr.bf16.mxu1 %v8940_v51  ;;  %v10374_v51 = vmov 0.0  }
 0x22c   :  { %3188 = vmatpush1.bf16.msra.mxu0 %v8935_v39 }
 0x22d   :  { %3294 = vmatpush1.bf16.msra.mxu1 %v8938_v24  ;;  %3189 = vmatprep.subr.bf16.mxu0 %v8943_v25 }
 0x22e   :  { %3295 = vmatprep.subr.bf16.mxu1 %v8946_v58 }
 0x230   :  { %3190 = vmatpush1.bf16.msra.mxu0 %v8941_v50 }
 0x231   :  { %3296 = vmatpush1.bf16.msra.mxu1 %v8944_v15  ;;  %3191 = vmatprep.subr.bf16.mxu0 %v8949_v23 }
 0x232   :  { %3297 = vmatprep.subr.bf16.mxu1 %v8952_v59 }
 0x234   :  { %3192 = vmatpush1.bf16.msra.mxu0 %v8947_v60 }
 0x235   :  { %3298 = vmatpush1.bf16.msra.mxu1 %v8950_v61  ;;  %3193 = vmatprep.subr.bf16.mxu0 %v8955_v62 }
 0x236   :  { %3299 = vmatprep.subr.bf16.mxu1 %v8958_v37 }
 0x238   :  { %3194 = vmatpush1.bf16.msra.mxu0 %v8953_v63 }
 0x239   :  { %3300 = vmatpush1.bf16.msra.mxu1 %v8956_v0  ;;  %3195 = vmatprep.subr.bf16.mxu0 %v8961_v14 }
 0x23a   :  { %3301 = vmatprep.subr.bf16.mxu1 %v8964_v6 }
 0x23c   :  { %3196 = vmatpush1.bf16.msra.mxu0 %v8959_v7 }
 0x23d   :  { %3302 = vmatpush1.bf16.msra.mxu1 %v8962_v8  ;;  %3197 = vmatprep.subr.bf16.mxu0 %v8967_v9 }
 0x23e   :  { %3303 = vmatprep.subr.bf16.mxu1 %v8970_v10 }
 0x240   :  { %3198 = vmatpush1.bf16.msra.mxu0 %v8965_v22 }
 0x241   :  { %3304 = vmatpush1.bf16.msra.mxu1 %v8968_v3  ;;  %3199 = vmatprep.subr.bf16.mxu0 %v8973_v13 }
 0x242   :  { %3305 = vmatprep.subr.bf16.mxu1 %v8976_v16 }
 0x244   :  { %3200 = vmatpush1.bf16.msra.mxu0 %v8971_v27 }
 0x245   :  { %3306 = vmatpush1.bf16.msra.mxu1 %v8974_v17  ;;  %3201 = vmatprep.subr.bf16.mxu0 %v8979_v19 }
 0x246   :  { %3307 = vmatprep.subr.bf16.mxu1 %v8982_v20 }
 0x248   :  { %3202 = vmatpush1.bf16.msra.mxu0 %v8977_v21 }
 0x249   :  { %3308 = vmatpush1.bf16.msra.mxu1 %v8980_v29 }
 0x24b   :  { %3204 = vmatmul.mubr.bf16.vlgmr.msra.gmra.mrb[0].mxu0 %v10253_v55 }
 0x24c   :  { %3310 = vmatmul.mubr.bf16.vlgmr.msra.gmra.mrb[0].mxu1 %v10253_v55  ;;  %3213 = vmatprep.mubr.bf16.mxu0 %v10268_v5 }
 0x24d   :  { %3319 = vmatprep.mubr.bf16.mxu1 %v10268_v5 }
 0x253   :  { %3214 = vmatmul.mubr.bf16.gmra.mrb[4].mxu0 %v10271_v48 }
 0x254   :  { %3320 = vmatmul.mubr.bf16.gmra.mrb[4].mxu1 %v10271_v48 }
 0x31e   :  { %v3205_v30 = vpop.f32.mrb[0].mxu0 }
 0x31f   :  { %3346 = vst [vmem:[#allocation3] sm:$0xff] %v3205_v30  ;;  %v3311_v31 = vpop.f32.mrb[0].mxu1  ;;  %v3207_v32 = vpop.f32.mrb[1].mxu0 }
 0x320   :  { %3348 = vst [vmem:[#allocation3 + $0x10] sm:$0xff] %v3311_v31  ;;  %3347 = vst [vmem:[#allocation3 + $0x8] sm:$0xff] %v3207_v32  ;;  %v3313_v33 = vpop.f32.mrb[1].mxu1  ;;  %v3209_v36 = vpop.f32.mrb[2].mxu0 }
 0x321   :  { %3349 = vst [vmem:[#allocation3 + $0x18] sm:$0xff] %v3313_v33  ;;  %3350 = vst [vmem:[#allocation3 + $0x20] sm:$0xff] %v3209_v36  ;;  %v3315_v38 = vpop.f32.mrb[2].mxu1  ;;  %v3211_v55 = vpop.f32.mrb[3].mxu0 }
 0x322   :  { %3352 = vst [vmem:[#allocation3 + $0x30] sm:$0xff] %v3315_v38  ;;  %3351 = vst [vmem:[#allocation3 + $0x28] sm:$0xff] %v3211_v55  ;;  %v3317_v40 = vpop.f32.mrb[3].mxu1 }
 0x323   :  { %3353 = vst [vmem:[#allocation3 + $0x38] sm:$0xff] %v3317_v40 }
 0x326   :  { %v3215_v5 = vpop.f32.mrb[4].mxu0 }
 0x327   :  { %3354 = vst [vmem:[#allocation3 + $0x40] sm:$0xff] %v3215_v5  ;;  %v3321_v41 = vpop.f32.mrb[4].mxu1  ;;  %v3217_v48 = vpop.f32.mrb[5].mxu0 }
 0x328   :  { %3356 = vst [vmem:[#allocation3 + $0x50] sm:$0xff] %v3321_v41  ;;  %3355 = vst [vmem:[#allocation3 + $0x48] sm:$0xff] %v3217_v48  ;;  %v3323_v42 = vpop.f32.mrb[5].mxu1  ;;  %v3219_v43 = vpop.f32.mrb[6].mxu0 }
 0x329   :  { %3357 = vst [vmem:[#allocation3 + $0x58] sm:$0xff] %v3323_v42  ;;  %3358 = vst [vmem:[#allocation3 + $0x60] sm:$0xff] %v3219_v43  ;;  %v3325_v44 = vpop.f32.mrb[6].mxu1  ;;  %v3221_v45 = vpop.f32.mrb[7].mxu0 }
 0x32a   :  { %3360 = vst [vmem:[#allocation3 + $0x70] sm:$0xff] %v3325_v44  ;;  %3359 = vst [vmem:[#allocation3 + $0x68] sm:$0xff] %v3221_v45  ;;  %v3327_v46 = vpop.f32.mrb[7].mxu1 }
 0x32b   :  { %3361 = vst [vmem:[#allocation3 + $0x78] sm:$0xff] %v3327_v46 }
 0x32c LB: > { %s7664_s18 = sshll.u32 %s9898_s8, 3  ;;  %s3367_s8 = sadd.s32 1, %s9898_s8   ;;  %s9898_s8 = sphi %s10376_s8, %s3367_s8   ;;  %v9894_v51 = vphi %v10374_v51, %v10924_v51   ;;  %v9890_v18 = vphi %v10372_v18, %v10923_v18   ;;  %v9886_v53 = vphi %v10370_v53, %v10922_v53   ;;  %v9882_v34 = vphi %v10368_v34, %v10921_v34   ;;  %v9878_v54 = vphi %v10366_v54, %v10920_v54   ;;  %v9874_v4 = vphi %v10364_v4, %v10919_v4   ;;  %v9870_v35 = vphi %v10362_v35, %v10918_v35   ;;  %v9866_v52 = vphi %v10360_v52, %v10917_v52  }
 0x32d   : > { %s3377_s21 = sshra.s32 %s7664_s18, 3  ;;  %p3364_p0 = scmp.ge.s32.totalorder %s3367_s8, 4  }
 0x32e   : > { %s8063_s23 = sshll.u32 %s3377_s21, 5  ;;  %s9956_s3 = smov (%p3364_p0), 64  }
 0x32f   : > { %s3381_s25 = scalar_lea.vmem [#allocation3], %s8063_s23  ;;  %s10501_s24 = smov (%p3364_p0), 0  }
 0x332   : > { %v3382_v39 = vld [vmem:[%s3381_s25] sm:$0xff]  ;;  %v3383_v24 = vld [vmem:[%s3381_s25 + $0x8] sm:$0xff]  ;;  %v3384_v25 = vld [vmem:[%s3381_s25 + $0x10] sm:$0xff] }
 0x333   : > { %v3385_v58 = vld [vmem:[%s3381_s25 + $0x18] sm:$0xff]  ;;  %v3386_v50 = vrot.slane %v3382_v39, 4  ;;  %v3392_v15 = vrot.slane %v3383_v24, 4  ;;  %v3398_v23 = vrot.slane %v3384_v25, 4  ;;  %v3414_v59 = vmul.f32 %v3382_v39, %v3382_v39 }
 0x334   : > { %v3404_v60 = vrot.slane %v3385_v58, 4  ;;  %v3415_v61 = vmul.f32 %v3383_v24, %v3383_v24  ;;  %v3416_v62 = vmul.f32 %v3384_v25, %v3384_v25  ;;  %v3417_v37 = vmul.f32 %v3385_v58, %v3385_v58 }
 0x335   : > { %v3387_v63 = vadd.f32 %v3386_v50, %v3382_v39  ;;  %v3393_v0 = vadd.f32 %v3392_v15, %v3383_v24  ;;  %v3399_v14 = vadd.f32 %v3398_v23, %v3384_v25  ;;  %v3418_v6 = vrot.slane %v3414_v59, 4 }
 0x336   : > { %v3405_v7 = vadd.f32 %v3404_v60, %v3385_v58  ;;  %v3424_v8 = vrot.slane %v3415_v61, 4  ;;  %v3430_v9 = vrot.slane %v3416_v62, 4  ;;  %v3436_v10 = vrot.slane %v3417_v37, 4 }
 0x337   : > { %v3388_v22 = vrot.slane %v3387_v63, 2  ;;  %v3394_v3 = vrot.slane %v3393_v0, 2  ;;  %v3400_v13 = vrot.slane %v3399_v14, 2  ;;  %v3419_v16 = vadd.f32 %v3418_v6, %v3414_v59 }
 0x338   : > { %v3406_v27 = vrot.slane %v3405_v7, 2  ;;  %v3425_v17 = vadd.f32 %v3424_v8, %v3415_v61  ;;  %v3431_v19 = vadd.f32 %v3430_v9, %v3416_v62  ;;  %v3437_v20 = vadd.f32 %v3436_v10, %v3417_v37 }
 0x339   : > { %v3389_v21 = vadd.f32 %v3388_v22, %v3387_v63  ;;  %v3395_v29 = vadd.f32 %v3394_v3, %v3393_v0  ;;  %v3401_v30 = vadd.f32 %v3400_v13, %v3399_v14  ;;  %v3420_v31 = vrot.slane %v3419_v16, 2 }
 0x33a   : > { %v3407_v32 = vadd.f32 %v3406_v27, %v3405_v7  ;;  %v3426_v33 = vrot.slane %v3425_v17, 2  ;;  %v3432_v36 = vrot.slane %v3431_v19, 2  ;;  %v3438_v38 = vrot.slane %v3437_v20, 2 }
 0x33b   : > { %v3390_v55 = vrot.slane %v3389_v21, 1  ;;  %v3396_v40 = vrot.slane %v3395_v29, 1  ;;  %v3402_v5 = vrot.slane %v3401_v30, 1  ;;  %v3421_v41 = vadd.f32 %v3420_v31, %v3419_v16 }
 0x33c   : > { %v3408_v48 = vrot.slane %v3407_v32, 1  ;;  %v3427_v42 = vadd.f32 %v3426_v33, %v3425_v17  ;;  %v3433_v43 = vadd.f32 %v3432_v36, %v3431_v19  ;;  %v3439_v44 = vadd.f32 %v3438_v38, %v3437_v20 }
 0x33d   : > { %v3391_v45 = vadd.f32 %v3390_v55, %v3389_v21  ;;  %v3397_v46 = vadd.f32 %v3396_v40, %v3395_v29  ;;  %v3403_v39 = vadd.f32 %v3402_v5, %v3401_v30  ;;  %v3422_v24 = vrot.slane %v3421_v41, 1 }
 0x33e   : > { %v3409_v25 = vadd.f32 %v3408_v48, %v3407_v32  ;;  %v3428_v58 = vrot.slane %v3427_v42, 1  ;;  %v3434_v50 = vrot.slane %v3433_v43, 1  ;;  %v3440_v15 = vrot.slane %v3439_v44, 1  ;;  %3366 = sbr.rel (!%p3364_p0) target bundleno = 812 (0x32c), region = 123 }
 0x33f   : > { %v3410_v23 = vadd.f32 %v9894_v51, %v3391_v45   ;;  %v3411_v59 = vadd.f32 %v9890_v18, %v3397_v46   ;;  %v3412_v60 = vadd.f32 %v9886_v53, %v3403_v39   ;;  %v3423_v61 = vadd.f32 %v3422_v24, %v3421_v41 }
 0x340   : > { %v3413_v62 = vadd.f32 %v9882_v34, %v3409_v25   ;;  %v3429_v37 = vadd.f32 %v3428_v58, %v3427_v42  ;;  %v3435_v63 = vadd.f32 %v3434_v50, %v3433_v43  ;;  %v3441_v0 = vadd.f32 %v3440_v15, %v3439_v44 }
 0x341   : > { %v3442_v14 = vadd.f32 %v9878_v54, %v3423_v61   ;;  %v10922_v53 = vmov %v3412_v60  ;;  %v10923_v18 = vmov %v3411_v59  ;;  %v10924_v51 = vmov %v3410_v23  ;;  %3450 = vrot.lane.b32.xlu1 (%p3364_p0), %v3412_v60, %s9951_s26  ;;  %3446 = vrot.lane.b32.xlu0 (%p3364_p0), %v3410_v23, %s9951_s26 }
 0x342   : > { %v3443_v6 = vadd.f32 %v9874_v4, %v3429_v37   ;;  %v3444_v7 = vadd.f32 %v9870_v35, %v3435_v63   ;;  %v3445_v8 = vadd.f32 %v9866_v52, %v3441_v0   ;;  %v10921_v34 = vmov %v3413_v62 }
 0x343   : > { %v10920_v54 = vmov %v3442_v14  ;;  %v10433_v51 = vand.u32 (%p3364_p0), 127, %v168_v11 }
 0x344   : > { %v10917_v52 = vmov %v3445_v8  ;;  %v10918_v35 = vmov %v3444_v7  ;;  %v10919_v4 = vmov %v3443_v6 }
 0x345   :  { %3452 = vrot.lane.b32.xlu1 %v3413_v62, %s9951_s26  ;;  %3448 = vrot.lane.b32.xlu0 %v3411_v59, %s9951_s26  ;;  %vm3456_vm2 = vcmp.lt.s32.totalorder %v10433_v51, 32  ;;  %vm3473_vm3 = vcmp.lt.s32.totalorder %v10433_v51, 64 }
 0x349   :  { %3492 = vrot.lane.b32.xlu1 %v3443_v6, %s9951_s26  ;;  %3490 = vrot.lane.b32.xlu0 %v3442_v14, %s9951_s26 }
 0x34d   :  { %3496 = vrot.lane.b32.xlu1 %v3445_v8, %s9951_s26  ;;  %3494 = vrot.lane.b32.xlu0 %v3444_v7, %s9951_s26 }
 0x3b3   :  { %v3451_v9 = vpop.permute.xlu1 %3450  ;;  %v3447_v52 = vpop.permute.xlu0 %3446 }
 0x3b7   :  { %v3453_v35 = vpop.permute.xlu1 %3452  ;;  %v3449_v4 = vpop.permute.xlu0 %3448 }
 0x3b8   :  { %v3460_v54 = vsel %vm3456_vm2, %v3453_v35, %v3447_v52  ;;  %v3459_v34 = vsel %vm3456_vm2, %v3447_v52, %v3449_v4  ;;  %v3457_v10 = vsel %vm3456_vm2, %v3451_v9, %v3453_v35  ;;  %v3458_v11 = vsel %vm3456_vm2, %v3449_v4, %v3451_v9 }
 0x3b9   :  { %v3461_v53 = vadd.f32 %v3460_v54, %v3410_v23  ;;  %v3462_v18 = vadd.f32 %v3459_v34, %v3411_v59  ;;  %v3464_v13 = vadd.f32 %v3457_v10, %v3413_v62  ;;  %v3463_v16 = vadd.f32 %v3458_v11, %v3412_v60 }
 0x3bb   :  { %v3493_v22 = vpop.permute.xlu1 %3492  ;;  %v3491_v3 = vpop.permute.xlu0 %3490  ;;  %3465 = vrot.lane.b32.xlu0 %v3461_v53, %s9956_s3  ;;  %3467 = vrot.lane.b32.xlu1 %v3462_v18, %s9956_s3 }
 0x3bc   :  { %v3500_v27 = vsel %vm3456_vm2, %v3491_v3, %v3493_v22 }
 0x3bd   :  { %v3503_v21 = vadd.f32 %v3500_v27, %v3443_v6 }
 0x3bf   :  { %v3497_v17 = vpop.permute.xlu1 %3496  ;;  %v3495_v19 = vpop.permute.xlu0 %3494  ;;  %3469 = vrot.lane.b32.xlu0 %v3463_v16, %s9956_s3  ;;  %3471 = vrot.lane.b32.xlu1 %v3464_v13, %s9956_s3 }
 0x3c0   :  { %v3501_v20 = vsel %vm3456_vm2, %v3497_v17, %v3491_v3  ;;  %v3498_v30 = vsel %vm3456_vm2, %v3495_v19, %v3497_v17  ;;  %v3499_v31 = vsel %vm3456_vm2, %v3493_v22, %v3495_v19 }
 0x3c1   :  { %v3502_v29 = vadd.f32 %v3501_v20, %v3442_v14  ;;  %v3504_v32 = vadd.f32 %v3499_v31, %v3444_v7  ;;  %v3505_v33 = vadd.f32 %v3498_v30, %v3445_v8 }
 0x3c3   :  { %3506 = vrot.lane.b32.xlu0 %v3502_v29, %s9956_s3  ;;  %3508 = vrot.lane.b32.xlu1 %v3503_v21, %s9956_s3 }
 0x3c7   :  { %3510 = vrot.lane.b32.xlu0 %v3504_v32, %s9956_s3  ;;  %3512 = vrot.lane.b32.xlu1 %v3505_v33, %s9956_s3 }
 0x42d   :  { %v3466_v36 = vpop.permute.xlu0 %3465  ;;  %v3468_v38 = vpop.permute.xlu1 %3467 }
 0x42e   :  { %v3476_v55 = vsel %vm3473_vm3, %v3466_v36, %v3468_v38 }
 0x42f   :  { %v3479_v43 = vadd.f32 %v3476_v55, %v3462_v18 }
 0x431   :  { %v3470_v40 = vpop.permute.xlu0 %3469  ;;  %v3472_v5 = vpop.permute.xlu1 %3471 }
 0x432   :  { %v3475_v41 = vsel %vm3473_vm3, %v3468_v38, %v3470_v40  ;;  %v3474_v48 = vsel %vm3473_vm3, %v3470_v40, %v3472_v5  ;;  %v3477_v42 = vsel %vm3473_vm3, %v3472_v5, %v3466_v36  ;;  %v3536_v40 = vld [vmem:[#allocation10] sm:$0xf]  ;;  %v10482_v5 = vsub.s32 0, %v10127_v12 }
 0x433   :  { %v3480_v44 = vadd.f32 %v3475_v41, %v3463_v16  ;;  %v3478_v45 = vadd.f32 %v3477_v42, %v3461_v53  ;;  %v3481_v46 = vadd.f32 %v3474_v48, %v3464_v13  ;;  %v10485_v41 = vsub.s32 1, %v10127_v12 }
 0x434   :  { %v10488_v48 = vsub.s32 2, %v10127_v12  ;;  %v10491_v42 = vsub.s32 3, %v10127_v12 }
 0x435   :  { %v3484_v39 = vadd.f32 %v3480_v44, %v3479_v43  ;;  %v3482_v24 = vadd.f32 %v3481_v46, %v3478_v45  ;;  %v3507_v25 = vpop.permute.xlu0 %3506  ;;  %v3509_v58 = vpop.permute.xlu1 %3508  ;;  %v3483_v50 = vadd.f32 %v3479_v43, %v3478_v45  ;;  %v3485_v15 = vadd.f32 %v3481_v46, %v3480_v44 }
 0x436   :  { %v3516_v23 = vsel %vm3473_vm3, %v3507_v25, %v3509_v58 }
 0x437   :  { %v3486_v59 = vadd.f32 %v3484_v39, %v3482_v24  ;;  %v3487_v62 = vadd.f32 %v3485_v15, %v3483_v50  ;;  %v3519_v14 = vadd.f32 %v3516_v23, %v3503_v21  ;;  %v9957_v21 = vmov 1966171168  }
 0x439   :  { %v3511_v60 = vpop.permute.xlu0 %3510  ;;  %v3513_v61 = vpop.permute.xlu1 %3512  ;;  %v3488_v35 = vmul.f32 0.001953125, %v3486_v59  ;;  %v3489_v4 = vmul.f32 0.001953125, %v3487_v62 }
 0x43a   :  { %v3515_v37 = vsel %vm3473_vm3, %v3509_v58, %v3511_v60  ;;  %v3514_v63 = vsel %vm3473_vm3, %v3511_v60, %v3513_v61  ;;  %v3517_v0 = vsel %vm3473_vm3, %v3513_v61, %v3507_v25 }
 0x43b   :  { %v3520_v6 = vadd.f32 %v3515_v37, %v3504_v32  ;;  %v3518_v7 = vadd.f32 %v3517_v0, %v3502_v29  ;;  %v3521_v8 = vadd.f32 %v3514_v63, %v3505_v33  ;;  %v3530_v10 = vmul.f32 %v3488_v35, %v3488_v35  ;;  %v3561_v37 = vld [vmem:[#allocation12] sm:$0xf] }
 0x43c   :  { %v3531_v11 = vmul.f32 %v3489_v4, %v3489_v4  ;;  %v3545_v29 = vunpack.c.l.s4 %v9957_v21 }
 0x43d   :  { %v3524_v9 = vadd.f32 %v3520_v6, %v3519_v14  ;;  %v3523_v52 = vadd.f32 %v3519_v14, %v3518_v7  ;;  %v3522_v54 = vadd.f32 %v3521_v8, %v3518_v7  ;;  %v3525_v34 = vadd.f32 %v3521_v8, %v3520_v6 }
 0x43e   :  { %v3546_v30 = vunpack.c.0.s8 %v3545_v29 }
 0x43f   :  { %v3526_v53 = vadd.f32 %v3524_v9, %v3522_v54  ;;  %v3527_v18 = vadd.f32 %v3525_v34, %v3523_v52 }
 0x440   :  { %v10478_v32 = vsub.s32 %v3546_v30, %v10127_v12 }
 0x441   :  { %v3528_v22 = vmul.f32 0.001953125, %v3526_v53  ;;  %v3529_v3 = vmul.f32 0.001953125, %v3527_v18 }
 0x443   :  { %v3532_v13 = vsub.f32 %v3528_v22, %v3530_v10  ;;  %v3533_v16 = vsub.f32 %v3529_v3, %v3531_v11 }
 0x445   :  { %v3534_v27 = vmax.f32 %v3532_v13, 0.0  ;;  %v3535_v17 = vmax.f32 %v3533_v16, 0.0 }
 0x447   :  { %v3537_v19 = vadd.f32 1e-05, %v3534_v27  ;;  %v3538_v20 = vadd.f32 1e-05, %v3535_v17 }
 0x449   :  { %8999 = vrsqrt.f32 %v3537_v19 }
 0x44a   :  { %9001 = vrsqrt.f32 %v3538_v20 }
 0x453   :  { %v9000_v31 = vpop.eup %8999 }
 0x454   :  { %v9002_v33 = vpop.eup %9001 }
 0x455   :  { %v3543_v36 = vcombine.low %v9000_v31, %v9002_v33 }
 0x457   :  { %v3550_v38 = vrot.slane %v3543_v36, %v10478_v32 }
 0x459   :  { %v3551_v55 = vcombine.low %v3550_v38, %v3550_v38 }
 0x45b   :  { %v3558_v43 = vrot.slane %v3551_v55, %v10478_v32 }
 0x45d   :  { %v3560_v44 = vmul.f32 %v3558_v43, %v3536_v40 }
 0x45f   :  { %v3566_v45 = vrot.slane %v3560_v44, %v10482_v5  ;;  %v3570_v46 = vrot.slane %v3560_v44, %v10485_v41  ;;  %v3574_v39 = vrot.slane %v3560_v44, %v10488_v48  ;;  %v3578_v24 = vrot.slane %v3560_v44, %v10491_v42 }
 0x461   :  { %v3583_v25 = vmul.f32 %v3566_v45, %v3488_v35  ;;  %v3584_v58 = vmul.f32 %v3570_v46, %v3489_v4  ;;  %v3585_v50 = vmul.f32 %v3574_v39, %v3488_v35  ;;  %v3586_v15 = vmul.f32 %v3578_v24, %v3489_v4 }
 0x463   :  { %v3591_v23 = vcombine.low %v3583_v25, %v3584_v58  ;;  %v3592_v59 = vcombine.low %v3585_v50, %v3586_v15 }
 0x465   :  { %v3599_v60 = vrot.slane %v3591_v23, %v10478_v32  ;;  %v3606_v61 = vrot.slane %v3592_v59, %v10478_v32 }
 0x467   :  { %v3607_v62 = vcombine.low %v3599_v60, %v3606_v61 }
 0x469   :  { %v3614_v63 = vrot.slane %v3607_v62, %v10478_v32 }
 0x46b   :  { %v3616_v0 = vsub.f32 %v3561_v37, %v3614_v63 }
 0x46c LB: > { %s7667_s27 = sshll.u32 %s9902_s24, 3  ;;  %s3622_s24 = sadd.s32 1, %s9902_s24   ;;  %s9902_s24 = sphi %s10501_s24, %s3622_s24  }
 0x46d   : > { %s3624_s29 = sshra.s32 %s7667_s27, 3  ;;  %v3641_v14 = vrot.slane %v3616_v0, %v10482_v5  ;;  %v3645_v6 = vrot.slane %v3616_v0, %v10485_v41  ;;  %v3649_v7 = vrot.slane %v3616_v0, %v10488_v48  ;;  %v3653_v35 = vrot.slane %v3616_v0, %v10491_v42  ;;  %p3619_p1 = scmp.ge.s32.totalorder %s3622_s24, 4  }
 0x46e   : > { %s8064_s30 = sshll.u32 %s3624_s29, 5  ;;  %v9003_v19 = vld [vmem:[#allocation9 + $0x4] ss:$16 sps:$4 sm:$0xff] (%p3619_p1)   ;;  %v9005_v20 = vld [vmem:[#allocation9 + $0xc] ss:$16 sps:$4 sm:$0xff] (%p3619_p1)   ;;  %s10774_s0 = smov (%p3619_p1), 0  }
 0x46f   : > { %s3628_s4 = scalar_lea.vmem [#allocation3], %s8064_s30  ;;  %s3667_s22 = scalar_lea.vmem [#allocation2], %s8064_s30  ;;  %4576 = vmatprep.subr.bf16.mxu0 (%p3619_p1), %v9003_v19  ;;  %v9007_v21 = vld [vmem:[#allocation9] ss:$16 sps:$4 sm:$0xff] (%p3619_p1)   ;;  %v9008_v29 = vld [vmem:[#allocation9 + $0x8] ss:$16 sps:$4 sm:$0xff] (%p3619_p1)   ;;  %4682 = vmatprep.subr.bf16.mxu1 (%p3619_p1), %v9005_v20 }
 0x470   : > { %v3629_v8 = vld [vmem:[%s3628_s4] sm:$0xff]  ;;  %v3630_v9 = vld [vmem:[%s3628_s4 + $0x8] sm:$0xff]  ;;  %v3631_v52 = vld [vmem:[%s3628_s4 + $0x10] sm:$0xff]  ;;  %4577 = vmatpush1.bf16.msra.mxu0 (%p3619_p1), %v9007_v21  ;;  %4683 = vmatpush1.bf16.msra.mxu1 (%p3619_p1), %v9008_v29 }
 0x471   : > { %v3633_v4 = vmul.f32 %v3629_v8, %v3566_v45  ;;  %v3634_v54 = vmul.f32 %v3630_v9, %v3570_v46  ;;  %v3635_v34 = vmul.f32 %v3631_v52, %v3574_v39  ;;  %v3632_v53 = vld [vmem:[%s3628_s4 + $0x18] sm:$0xff]  ;;  %v9009_v30 = vld [vmem:[#allocation9 + $0x24] ss:$16 sps:$4 sm:$0xff] (%p3619_p1)   ;;  %v9013_v33 = vld [vmem:[#allocation9 + $0x20] ss:$16 sps:$4 sm:$0xff] (%p3619_p1)  }
 0x472   : > { %v3636_v18 = vmul.f32 %v3632_v53, %v3578_v24  ;;  %3621 = sbr.rel (!%p3619_p1) target bundleno = 1132 (0x46c), region = 134  ;;  %v9011_v31 = vld [vmem:[#allocation9 + $0x2c] ss:$16 sps:$4 sm:$0xff] (%p3619_p1)   ;;  %4578 = vmatprep.subr.bf16.mxu0 (%p3619_p1), %v9009_v30  ;;  %v9014_v36 = vld [vmem:[#allocation9 + $0x28] ss:$16 sps:$4 sm:$0xff] (%p3619_p1)  }
 0x473   : > { %v3658_v10 = vadd.f32 %v3641_v14, %v3633_v4  ;;  %v3659_v11 = vadd.f32 %v3645_v6, %v3634_v54  ;;  %v3660_v22 = vadd.f32 %v3649_v7, %v3635_v34  ;;  %4684 = vmatprep.subr.bf16.mxu1 (%p3619_p1), %v9011_v31  ;;  %v9015_v38 = vld [vmem:[#allocation9 + $0x44] ss:$16 sps:$4 sm:$0xff] (%p3619_p1)   ;;  %v9017_v55 = vld [vmem:[#allocation9 + $0x4c] ss:$16 sps:$4 sm:$0xff] (%p3619_p1)   ;;  %v9019_v40 = vld [vmem:[#allocation9 + $0x40] ss:$16 sps:$4 sm:$0xff] (%p3619_p1)  }
 0x474   : > { %v3661_v3 = vadd.f32 %v3653_v35, %v3636_v18  ;;  %v9020_v43 = vld [vmem:[#allocation9 + $0x48] ss:$16 sps:$4 sm:$0xff] (%p3619_p1)   ;;  %4579 = vmatpush1.bf16.msra.mxu0 (%p3619_p1), %v9013_v33  ;;  %4685 = vmatpush1.bf16.msra.mxu1 (%p3619_p1), %v9014_v36  ;;  %v9021_v44 = vld [vmem:[#allocation9 + $0x64] ss:$16 sps:$4 sm:$0xff] (%p3619_p1)   ;;  %v9023_v45 = vld [vmem:[#allocation9 + $0x6c] ss:$16 sps:$4 sm:$0xff] (%p3619_p1)  }
 0x475   : > { %v3662_v13 = vmax.f32 %v3658_v10, 0.0  ;;  %v3663_v16 = vmax.f32 %v3659_v11, 0.0  ;;  %v3664_v27 = vmax.f32 %v3660_v22, 0.0  ;;  %4580 = vmatprep.subr.bf16.mxu0 (%p3619_p1), %v9015_v38  ;;  %4686 = vmatprep.subr.bf16.mxu1 (%p3619_p1), %v9017_v55  ;;  %v9025_v46 = vld [vmem:[#allocation9 + $0x60] ss:$16 sps:$4 sm:$0xff] (%p3619_p1)  }
 0x476   : > { %v3665_v17 = vmax.f32 %v3661_v3, 0.0  ;;  %v9026_v39 = vld [vmem:[#allocation9 + $0x68] ss:$16 sps:$4 sm:$0xff] (%p3619_p1)   ;;  %v9027_v24 = vld [vmem:[#allocation9 + $0x84] ss:$16 sps:$4 sm:$0xff] (%p3619_p1)  }
 0x477   : > { %3668 = vst [vmem:[%s3667_s22] sm:$0xff] %v3662_v13  ;;  %3669 = vst [vmem:[%s3667_s22 + $0x8] sm:$0xff] %v3663_v16  ;;  %v9029_v25 = vld [vmem:[#allocation9 + $0x8c] ss:$16 sps:$4 sm:$0xff] (%p3619_p1)   ;;  %v9031_v58 = vld [vmem:[#allocation9 + $0x80] ss:$16 sps:$4 sm:$0xff] (%p3619_p1)  }
 0x478   : > { %3670 = vst [vmem:[%s3667_s22 + $0x10] sm:$0xff] %v3664_v27  ;;  %3671 = vst [vmem:[%s3667_s22 + $0x18] sm:$0xff] %v3665_v17  ;;  %4581 = vmatpush1.bf16.msra.mxu0 (%p3619_p1), %v9019_v40  ;;  %4687 = vmatpush1.bf16.msra.mxu1 (%p3619_p1), %v9020_v43  ;;  %v9032_v50 = vld [vmem:[#allocation9 + $0x88] ss:$16 sps:$4 sm:$0xff] (%p3619_p1)   ;;  %v9033_v15 = vld [vmem:[#allocation9 + $0xa4] ss:$16 sps:$4 sm:$0xff] (%p3619_p1)  }
 0x479   :  { %4582 = vmatprep.subr.bf16.mxu0 %v9021_v44  ;;  %4688 = vmatprep.subr.bf16.mxu1 %v9023_v45  ;;  %v9035_v23 = vld [vmem:[#allocation9 + $0xac] ss:$16 sps:$4 sm:$0xff]   ;;  %v9037_v59 = vld [vmem:[#allocation9 + $0xa0] ss:$16 sps:$4 sm:$0xff]   ;;  %v9038_v60 = vld [vmem:[#allocation9 + $0xa8] ss:$16 sps:$4 sm:$0xff]  }
 0x47a   :  { %v9039_v61 = vld [vmem:[#allocation9 + $0xc4] ss:$16 sps:$4 sm:$0xff]   ;;  %v9041_v62 = vld [vmem:[#allocation9 + $0xcc] ss:$16 sps:$4 sm:$0xff]   ;;  %v9043_v37 = vld [vmem:[#allocation9 + $0xc0] ss:$16 sps:$4 sm:$0xff]  }
 0x47b   :  { %v9044_v63 = vld [vmem:[#allocation9 + $0xc8] ss:$16 sps:$4 sm:$0xff]   ;;  %v9045_v0 = vld [vmem:[#allocation9 + $0xe4] ss:$16 sps:$4 sm:$0xff]   ;;  %v9047_v14 = vld [vmem:[#allocation9 + $0xec] ss:$16 sps:$4 sm:$0xff]  }
 0x47c   :  { %4583 = vmatpush1.bf16.msra.mxu0 %v9025_v46  ;;  %4689 = vmatpush1.bf16.msra.mxu1 %v9026_v39  ;;  %v9049_v6 = vld [vmem:[#allocation9 + $0xe0] ss:$16 sps:$4 sm:$0xff]   ;;  %v9050_v7 = vld [vmem:[#allocation9 + $0xe8] ss:$16 sps:$4 sm:$0xff]   ;;  %v9051_v8 = vld [vmem:[#allocation9 + $0x104] ss:$16 sps:$4 sm:$0xff]  }
 0x47d   :  { %4584 = vmatprep.subr.bf16.mxu0 %v9027_v24  ;;  %4690 = vmatprep.subr.bf16.mxu1 %v9029_v25  ;;  %v9053_v9 = vld [vmem:[#allocation9 + $0x10c] ss:$16 sps:$4 sm:$0xff]   ;;  %v9055_v52 = vld [vmem:[#allocation9 + $0x100] ss:$16 sps:$4 sm:$0xff]   ;;  %v9056_v35 = vld [vmem:[#allocation9 + $0x108] ss:$16 sps:$4 sm:$0xff]  }
 0x47e   :  { %v9057_v4 = vld [vmem:[#allocation9 + $0x124] ss:$16 sps:$4 sm:$0xff]   ;;  %v9059_v54 = vld [vmem:[#allocation9 + $0x12c] ss:$16 sps:$4 sm:$0xff]   ;;  %v9061_v34 = vld [vmem:[#allocation9 + $0x120] ss:$16 sps:$4 sm:$0xff]  }
 0x47f   :  { %v9062_v53 = vld [vmem:[#allocation9 + $0x128] ss:$16 sps:$4 sm:$0xff]   ;;  %v9063_v18 = vld [vmem:[#allocation9 + $0x144] ss:$16 sps:$4 sm:$0xff]   ;;  %v9065_v10 = vld [vmem:[#allocation9 + $0x14c] ss:$16 sps:$4 sm:$0xff]  }
 0x480   :  { %4585 = vmatpush1.bf16.msra.mxu0 %v9031_v58  ;;  %4691 = vmatpush1.bf16.msra.mxu1 %v9032_v50  ;;  %v9067_v11 = vld [vmem:[#allocation9 + $0x140] ss:$16 sps:$4 sm:$0xff]   ;;  %v9068_v22 = vld [vmem:[#allocation9 + $0x148] ss:$16 sps:$4 sm:$0xff]   ;;  %v9069_v3 = vld [vmem:[#allocation9 + $0x164] ss:$16 sps:$4 sm:$0xff]  }
 0x481   :  { %4586 = vmatprep.subr.bf16.mxu0 %v9033_v15  ;;  %4692 = vmatprep.subr.bf16.mxu1 %v9035_v23  ;;  %v9071_v13 = vld [vmem:[#allocation9 + $0x16c] ss:$16 sps:$4 sm:$0xff]   ;;  %v9073_v16 = vld [vmem:[#allocation9 + $0x160] ss:$16 sps:$4 sm:$0xff]   ;;  %v9074_v21 = vld [vmem:[#allocation9 + $0x168] ss:$16 sps:$4 sm:$0xff]  }
 0x482   :  { %v10514_v27 = vld [vmem:[#allocation2 + $0x8] sm:$0xff]  ;;  %v9075_v31 = vld [vmem:[#allocation9 + $0x184] ss:$16 sps:$4 sm:$0xff]   ;;  %v9079_v36 = vld [vmem:[#allocation9 + $0x180] ss:$16 sps:$4 sm:$0xff]  }
 0x483   :  { %v10516_v17 = vld [vmem:[#allocation2 + $0x28] sm:$0xff]  ;;  %v3697_v20 = vrot.slane %v10514_v27, 7  ;;  %v9081_v43 = vld [vmem:[#allocation9 + $0x1a4] ss:$16 sps:$4 sm:$0xff]   ;;  %v9085_v50 = vld [vmem:[#allocation9 + $0x1a0] ss:$16 sps:$4 sm:$0xff]  }
 0x484   :  { %4587 = vmatpush1.bf16.msra.mxu0 %v9037_v59  ;;  %4693 = vmatpush1.bf16.msra.mxu1 %v9038_v60  ;;  %v10518_v19 = vld [vmem:[#allocation2 + $0x68] sm:$0xff]  ;;  %v3701_v29 = vrot.slane %v10516_v17, 7  ;;  %v3672_v39 = vld [vmem:[#allocation2] sm:$0xff] }
 0x485   :  { %4588 = vmatprep.subr.bf16.mxu0 %v9039_v61  ;;  %4694 = vmatprep.subr.bf16.mxu1 %v9041_v62  ;;  %v3709_v30 = vrot.slane %v10518_v19, 7  ;;  %v9077_v33 = vld [vmem:[#allocation9 + $0x18c] ss:$16 sps:$4 sm:$0xff]   ;;  %v9080_v38 = vld [vmem:[#allocation9 + $0x188] ss:$16 sps:$4 sm:$0xff]   ;;  %v10533_v25 = vld [vmem:[#allocation2 + $0x20] sm:$0xff] }
 0x486   :  { %v3721_v55 = vsel %vm170_vm0, %v3697_v20, %v3701_v29  ;;  %v9083_v46 = vld [vmem:[#allocation9 + $0x1ac] ss:$16 sps:$4 sm:$0xff]   ;;  %v10535_v58 = vld [vmem:[#allocation2 + $0x60] sm:$0xff]  ;;  %v9086_v15 = vld [vmem:[#allocation9 + $0x1a8] ss:$16 sps:$4 sm:$0xff]   ;;  %v3696_v59 = vrot.slane %v3672_v39, 7 }
 0x487   :  { %v3725_v40 = vsel %vm170_vm0, %v3709_v30, %v3697_v20  ;;  %v3733_v45 = vmul.f32 %v3721_v55, %v10200_v2  ;;  %v9087_v23 = vld [vmem:[#allocation9 + $0x1c4] ss:$16 sps:$4 sm:$0xff]   ;;  %v3700_v60 = vrot.slane %v10533_v25, 7  ;;  %v3708_v61 = vrot.slane %v10535_v58, 7  ;;  %v9089_v62 = vld [vmem:[#allocation9 + $0x1cc] ss:$16 sps:$4 sm:$0xff]  }
 0x488   :  { %4589 = vmatpush1.bf16.msra.mxu0 %v9043_v37  ;;  %4695 = vmatpush1.bf16.msra.mxu1 %v9044_v63  ;;  %v3729_v44 = vmul.f32 %v3725_v40, %v10171_v49  ;;  %v9091_v37 = vld [vmem:[#allocation9 + $0x1c0] ss:$16 sps:$4 sm:$0xff]   ;;  %v9092_v63 = vld [vmem:[#allocation9 + $0x1c8] ss:$16 sps:$4 sm:$0xff]   ;;  %v9116_v20 = vld [vmem:[#allocation9 + $0x24c] ss:$16 sps:$4 sm:$0xff]  }
 0x489   :  { %4590 = vmatprep.subr.bf16.mxu0 %v9045_v0  ;;  %4696 = vmatprep.subr.bf16.mxu1 %v9047_v14  ;;  %v9093_v0 = vld [vmem:[#allocation9 + $0x1e4] ss:$16 sps:$4 sm:$0xff]   ;;  %v3720_v14 = vsel %vm170_vm0, %v3696_v59, %v3700_v60  ;;  %v9120_v55 = vld [vmem:[#allocation9 + $0x268] ss:$16 sps:$4 sm:$0xff]   ;;  %v9146_v19 = vld [vmem:[#allocation9 + $0x2ec] ss:$16 sps:$4 sm:$0xff]  }
 0x48a   :  { %v3745_v24 = vpack.c.bf16 %v3733_v45, %v3729_v44  ;;  %v9125_v40 = vld [vmem:[#allocation9 + $0x284] ss:$16 sps:$4 sm:$0xff]   ;;  %v9123_v44 = vld [vmem:[#allocation9 + $0x280] ss:$16 sps:$4 sm:$0xff]   ;;  %v9126_v45 = vld [vmem:[#allocation9 + $0x288] ss:$16 sps:$4 sm:$0xff]  }
 0x48c   :  { %4591 = vmatpush1.bf16.msra.mxu0 %v9049_v6  ;;  %4697 = vmatpush1.bf16.msra.mxu1 %v9050_v7  ;;  %v3724_v6 = vsel %vm170_vm0, %v3708_v61, %v3696_v59  ;;  %v9095_v7 = vld [vmem:[#allocation9 + $0x1ec] ss:$16 sps:$4 sm:$0xff]   ;;  %v9137_v59 = vld [vmem:[#allocation9 + $0x2c4] ss:$16 sps:$4 sm:$0xff]  }
 0x48d   :  { %4592 = vmatprep.subr.bf16.mxu0 %v9051_v8  ;;  %4698 = vmatprep.subr.bf16.mxu1 %v9053_v9  ;;  %v9097_v8 = vld [vmem:[#allocation9 + $0x1e0] ss:$16 sps:$4 sm:$0xff]   ;;  %v3728_v9 = vmul.f32 %v3724_v6, %v10171_v49 }
 0x48e   :  { %4608 = vmatprep.mubr.bf16.mxu0 %v3745_v24  ;;  %4714 = vmatprep.mubr.bf16.mxu1 %v3745_v24  ;;  %v10552_v24 = vld [vmem:[#allocation2 + $0x48] sm:$0xff] }
 0x490   :  { %4593 = vmatpush1.bf16.msra.mxu0 %v9055_v52  ;;  %4699 = vmatpush1.bf16.msra.mxu1 %v9056_v35  ;;  %v3732_v52 = vmul.f32 %v3720_v14, %v10200_v2  ;;  %v9098_v35 = vld [vmem:[#allocation9 + $0x1e8] ss:$16 sps:$4 sm:$0xff]   ;;  %v9135_v14 = vld [vmem:[#allocation9 + $0x2c0] ss:$16 sps:$4 sm:$0xff]  }
 0x491   :  { %4594 = vmatprep.subr.bf16.mxu0 %v9057_v4  ;;  %4700 = vmatprep.subr.bf16.mxu1 %v9059_v54  ;;  %v9101_v4 = vld [vmem:[#allocation9 + $0x204] ss:$16 sps:$4 sm:$0xff]   ;;  %v9104_v54 = vld [vmem:[#allocation9 + $0x20c] ss:$16 sps:$4 sm:$0xff]  }
 0x494   :  { %4595 = vmatpush1.bf16.msra.mxu0 %v9061_v34  ;;  %4701 = vmatpush1.bf16.msra.mxu1 %v9062_v53  ;;  %v9099_v34 = vld [vmem:[#allocation9 + $0x200] ss:$16 sps:$4 sm:$0xff]   ;;  %v3744_v53 = vpack.c.bf16 %v3732_v52, %v3728_v9  ;;  %v9138_v9 = vld [vmem:[#allocation9 + $0x2c8] ss:$16 sps:$4 sm:$0xff]   ;;  %v9143_v52 = vld [vmem:[#allocation9 + $0x2e4] ss:$16 sps:$4 sm:$0xff]  }
 0x495   :  { %4596 = vmatprep.subr.bf16.mxu0 %v9063_v18  ;;  %4702 = vmatprep.subr.bf16.mxu1 %v9065_v10  ;;  %v9102_v18 = vld [vmem:[#allocation9 + $0x208] ss:$16 sps:$4 sm:$0xff]   ;;  %v9107_v10 = vld [vmem:[#allocation9 + $0x224] ss:$16 sps:$4 sm:$0xff]  }
 0x498   :  { %4597 = vmatpush1.bf16.msra.mxu0 %v9067_v11  ;;  %4703 = vmatpush1.bf16.msra.mxu1 %v9068_v22  ;;  %v9110_v11 = vld [vmem:[#allocation9 + $0x22c] ss:$16 sps:$4 sm:$0xff]   ;;  %v10550_v22 = vpack.c.bf16 %v10533_v25, %v3672_v39 }
 0x499   :  { %4598 = vmatprep.subr.bf16.mxu0 %v9069_v3  ;;  %4704 = vmatprep.subr.bf16.mxu1 %v9071_v13  ;;  %v9105_v3 = vld [vmem:[#allocation9 + $0x220] ss:$16 sps:$4 sm:$0xff]   ;;  %v9108_v13 = vld [vmem:[#allocation9 + $0x228] ss:$16 sps:$4 sm:$0xff]   ;;  %v9134_v39 = vld [vmem:[#allocation9 + $0x2ac] ss:$16 sps:$4 sm:$0xff]  }
 0x49c   :  { %4599 = vmatpush1.bf16.msra.mxu0 %v9073_v16  ;;  %4705 = vmatpush1.bf16.msra.mxu1 %v9074_v21  ;;  %v9113_v16 = vld [vmem:[#allocation9 + $0x244] ss:$16 sps:$4 sm:$0xff]   ;;  %v9111_v21 = vld [vmem:[#allocation9 + $0x240] ss:$16 sps:$4 sm:$0xff]  }
 0x49d   :  { %4600 = vmatprep.subr.bf16.mxu0 %v9075_v31  ;;  %4706 = vmatprep.subr.bf16.mxu1 %v9077_v33  ;;  %v9114_v31 = vld [vmem:[#allocation9 + $0x248] ss:$16 sps:$4 sm:$0xff]   ;;  %v9119_v33 = vld [vmem:[#allocation9 + $0x264] ss:$16 sps:$4 sm:$0xff]  }
 0x4a0   :  { %4601 = vmatpush1.bf16.msra.mxu0 %v9079_v36  ;;  %4707 = vmatpush1.bf16.msra.mxu1 %v9080_v38  ;;  %v9122_v36 = vld [vmem:[#allocation9 + $0x26c] ss:$16 sps:$4 sm:$0xff]   ;;  %v9117_v38 = vld [vmem:[#allocation9 + $0x260] ss:$16 sps:$4 sm:$0xff]  }
 0x4a1   :  { %4602 = vmatprep.subr.bf16.mxu0 %v9081_v43  ;;  %4708 = vmatprep.subr.bf16.mxu1 %v9083_v46  ;;  %v9128_v43 = vld [vmem:[#allocation9 + $0x28c] ss:$16 sps:$4 sm:$0xff]   ;;  %v9131_v46 = vld [vmem:[#allocation9 + $0x2a4] ss:$16 sps:$4 sm:$0xff]  }
 0x4a4   :  { %4603 = vmatpush1.bf16.msra.mxu0 %v9085_v50  ;;  %4709 = vmatpush1.bf16.msra.mxu1 %v9086_v15  ;;  %v9129_v50 = vld [vmem:[#allocation9 + $0x2a0] ss:$16 sps:$4 sm:$0xff]   ;;  %v9132_v15 = vld [vmem:[#allocation9 + $0x2a8] ss:$16 sps:$4 sm:$0xff]  }
 0x4a5   :  { %4604 = vmatprep.subr.bf16.mxu0 %v9087_v23  ;;  %4710 = vmatprep.subr.bf16.mxu1 %v9089_v62  ;;  %v3705_v23 = vrot.slane %v10552_v24, 7  ;;  %v9140_v62 = vld [vmem:[#allocation9 + $0x2cc] ss:$16 sps:$4 sm:$0xff]  }
 0x4a8   :  { %4605 = vmatpush1.bf16.msra.mxu0 %v9091_v37  ;;  %4711 = vmatpush1.bf16.msra.mxu1 %v9092_v63  ;;  %v3713_v37 = vsel %vm170_vm0, %v3705_v23, %v3709_v30  ;;  %v3717_v63 = vsel %vm170_vm0, %v3701_v29, %v3705_v23  ;;  %v9170_v23 = vld [vmem:[#allocation9 + $0x36c] ss:$16 sps:$4 sm:$0xff]  }
 0x4a9   :  { %4606 = vmatprep.subr.bf16.mxu0 %v9093_v0  ;;  %4712 = vmatprep.subr.bf16.mxu1 %v9095_v7  ;;  %v10563_v0 = vld [vmem:[#allocation2 + $0x40] sm:$0xff]  ;;  %v3737_v6 = vmul.f32 %v3717_v63, %v10168_v47  ;;  %v3741_v7 = vmul.f32 %v3713_v37, %v10198_v1  ;;  %v9176_v63 = vld [vmem:[#allocation9 + $0x38c] ss:$16 sps:$4 sm:$0xff]  }
 0x4aa   :  { %v9173_v37 = vld [vmem:[#allocation9 + $0x384] ss:$16 sps:$4 sm:$0xff]  }
 0x4ab   :  { %v3749_v30 = vpack.c.bf16 %v3741_v7, %v3737_v6  ;;  %v9174_v6 = vld [vmem:[#allocation9 + $0x388] ss:$16 sps:$4 sm:$0xff]   ;;  %v9179_v7 = vld [vmem:[#allocation9 + $0x3a4] ss:$16 sps:$4 sm:$0xff]  }
 0x4ac   :  { %4607 = vmatpush1.bf16.msra.mxu0 %v9097_v8  ;;  %4713 = vmatpush1.bf16.msra.mxu1 %v9098_v35  ;;  %v3704_v8 = vrot.slane %v10563_v0, 7 }
 0x4ad   :  { %4629 = vmatprep.subr.bf16.mxu0 %v9101_v4  ;;  %4735 = vmatprep.subr.bf16.mxu1 %v9104_v54  ;;  %v10576_v4 = vld [vmem:[#allocation2 + $0x18] sm:$0xff] }
 0x4ae   :  { %v3712_v29 = vsel %vm170_vm0, %v3704_v8, %v3708_v61  ;;  %v3716_v35 = vsel %vm170_vm0, %v3700_v60, %v3704_v8  ;;  %v10578_v54 = vld [vmem:[#allocation2 + $0x38] sm:$0xff]  ;;  %v3699_v58 = vrot.slane %v10576_v4, 7  ;;  %v9141_v60 = vld [vmem:[#allocation9 + $0x2e0] ss:$16 sps:$4 sm:$0xff]  }
 0x4af   :  { %4609 = vmatmul.mubr.bf16.vlgmr.msra.gmra.mrb[8].mxu0 %v3744_v53  ;;  %4715 = vmatmul.mubr.bf16.vlgmr.msra.gmra.mrb[8].mxu1 %v3744_v53  ;;  %v3740_v53 = vmul.f32 %v3712_v29, %v10198_v1  ;;  %v3703_v61 = vrot.slane %v10578_v54, 7  ;;  %v9182_v8 = vld [vmem:[#allocation9 + $0x3ac] ss:$16 sps:$4 sm:$0xff]   ;;  %v9180_v29 = vld [vmem:[#allocation9 + $0x3a8] ss:$16 sps:$4 sm:$0xff]  }
 0x4b0   :  { %4630 = vmatpush1.bf16.msra.mxu0 %v9099_v34  ;;  %4736 = vmatpush1.bf16.msra.mxu1 %v9102_v18  ;;  %v3736_v34 = vmul.f32 %v3716_v35, %v10168_v47  ;;  %v10582_v18 = vld [vmem:[#allocation2 + $0x78] sm:$0xff]  ;;  %v9185_v35 = vld [vmem:[#allocation9 + $0x3c4] ss:$16 sps:$4 sm:$0xff]  }
 0x4b1   :  { %4631 = vmatprep.subr.bf16.mxu0 %v9107_v10  ;;  %4737 = vmatprep.subr.bf16.mxu1 %v9110_v11  ;;  %v3711_v25 = vrot.slane %v10582_v18, 7  ;;  %v3723_v11 = vsel %vm170_vm0, %v3699_v58, %v3703_v61  ;;  %v9204_v18 = vld [vmem:[#allocation9 + $0x428] ss:$16 sps:$4 sm:$0xff]  }
 0x4b2   :  { %4618 = vmatprep.mubr.bf16.mxu0 %v3749_v30  ;;  %4724 = vmatprep.mubr.bf16.mxu1 %v3749_v30  ;;  %v3748_v10 = vpack.c.bf16 %v3740_v53, %v3736_v34  ;;  %v9177_v30 = vld [vmem:[#allocation9 + $0x3a0] ss:$16 sps:$4 sm:$0xff]  }
 0x4b4   :  { %4632 = vmatpush1.bf16.msra.mxu0 %v9105_v3  ;;  %4738 = vmatpush1.bf16.msra.mxu1 %v9108_v13  ;;  %v9144_v3 = vld [vmem:[#allocation9 + $0x2e8] ss:$16 sps:$4 sm:$0xff]   ;;  %v9149_v13 = vld [vmem:[#allocation9 + $0x304] ss:$16 sps:$4 sm:$0xff]  }
 0x4b5   :  { %4633 = vmatprep.subr.bf16.mxu0 %v9113_v16  ;;  %4739 = vmatprep.subr.bf16.mxu1 %v9116_v20  ;;  %v9152_v16 = vld [vmem:[#allocation9 + $0x30c] ss:$16 sps:$4 sm:$0xff]   ;;  %v3727_v20 = vsel %vm170_vm0, %v3711_v25, %v3699_v58 }
 0x4b7   :  { %4619 = vmatmul.mubr.bf16.gmra.mrb[12].mxu0 %v3748_v10  ;;  %4725 = vmatmul.mubr.bf16.gmra.mrb[12].mxu1 %v3748_v10  ;;  %v9183_v10 = vld [vmem:[#allocation9 + $0x3c0] ss:$16 sps:$4 sm:$0xff]  }
 0x4b8   :  { %4634 = vmatpush1.bf16.msra.mxu0 %v9111_v21  ;;  %4740 = vmatpush1.bf16.msra.mxu1 %v9114_v31  ;;  %v3735_v21 = vmul.f32 %v3723_v11, %v10200_v2  ;;  %v3731_v31 = vmul.f32 %v3727_v20, %v10171_v49  ;;  %v9186_v11 = vld [vmem:[#allocation9 + $0x3c8] ss:$16 sps:$4 sm:$0xff]   ;;  %v9194_v20 = vld [vmem:[#allocation9 + $0x3ec] ss:$16 sps:$4 sm:$0xff]  }
 0x4b9   :  { %4635 = vmatprep.subr.bf16.mxu0 %v9119_v33  ;;  %4741 = vmatprep.subr.bf16.mxu1 %v9122_v36  ;;  %v9147_v33 = vld [vmem:[#allocation9 + $0x300] ss:$16 sps:$4 sm:$0xff]  }
 0x4ba   :  { %v3747_v36 = vpack.c.bf16 %v3735_v21, %v3731_v31  ;;  %v9189_v21 = vld [vmem:[#allocation9 + $0x3e0] ss:$16 sps:$4 sm:$0xff]  }
 0x4bc   :  { %4636 = vmatpush1.bf16.msra.mxu0 %v9117_v38  ;;  %4742 = vmatpush1.bf16.msra.mxu1 %v9120_v55  ;;  %v9150_v38 = vld [vmem:[#allocation9 + $0x308] ss:$16 sps:$4 sm:$0xff]   ;;  %v9155_v55 = vld [vmem:[#allocation9 + $0x324] ss:$16 sps:$4 sm:$0xff]  }
 0x4bd   :  { %4637 = vmatprep.subr.bf16.mxu0 %v9125_v40  ;;  %4743 = vmatprep.subr.bf16.mxu1 %v9128_v43  ;;  %v9158_v40 = vld [vmem:[#allocation9 + $0x32c] ss:$16 sps:$4 sm:$0xff]   ;;  %v9153_v43 = vld [vmem:[#allocation9 + $0x320] ss:$16 sps:$4 sm:$0xff]  }
 0x4be   :  { %4661 = vmatprep.mubr.bf16.mxu0 %v3747_v36  ;;  %4767 = vmatprep.mubr.bf16.mxu1 %v3747_v36  ;;  %v9192_v36 = vld [vmem:[#allocation9 + $0x3e8] ss:$16 sps:$4 sm:$0xff]  }
 0x4c0   :  { %4638 = vmatpush1.bf16.msra.mxu0 %v9123_v44  ;;  %4744 = vmatpush1.bf16.msra.mxu1 %v9126_v45  ;;  %v9156_v44 = vld [vmem:[#allocation9 + $0x328] ss:$16 sps:$4 sm:$0xff]   ;;  %v9161_v45 = vld [vmem:[#allocation9 + $0x344] ss:$16 sps:$4 sm:$0xff]  }
 0x4c1   :  { %4639 = vmatprep.subr.bf16.mxu0 %v9131_v46  ;;  %4745 = vmatprep.subr.bf16.mxu1 %v9134_v39  ;;  %v9164_v46 = vld [vmem:[#allocation9 + $0x34c] ss:$16 sps:$4 sm:$0xff]   ;;  %v9159_v39 = vld [vmem:[#allocation9 + $0x340] ss:$16 sps:$4 sm:$0xff]  }
 0x4c4   :  { %4640 = vmatpush1.bf16.msra.mxu0 %v9129_v50  ;;  %4746 = vmatpush1.bf16.msra.mxu1 %v9132_v15  ;;  %v9162_v50 = vld [vmem:[#allocation9 + $0x348] ss:$16 sps:$4 sm:$0xff]   ;;  %v9167_v15 = vld [vmem:[#allocation9 + $0x364] ss:$16 sps:$4 sm:$0xff]  }
 0x4c5   :  { %4641 = vmatprep.subr.bf16.mxu0 %v9137_v59  ;;  %4747 = vmatprep.subr.bf16.mxu1 %v9140_v62  ;;  %v9165_v59 = vld [vmem:[#allocation9 + $0x360] ss:$16 sps:$4 sm:$0xff]   ;;  %v9168_v62 = vld [vmem:[#allocation9 + $0x368] ss:$16 sps:$4 sm:$0xff]  }
 0x4c8   :  { %4642 = vmatpush1.bf16.msra.mxu0 %v9135_v14  ;;  %4748 = vmatpush1.bf16.msra.mxu1 %v9138_v9  ;;  %v9171_v14 = vld [vmem:[#allocation9 + $0x380] ss:$16 sps:$4 sm:$0xff]  }
 0x4c9   :  { %4643 = vmatprep.subr.bf16.mxu0 %v9143_v52  ;;  %4749 = vmatprep.subr.bf16.mxu1 %v9146_v19  ;;  %v3674_v9 = vld [vmem:[#allocation2 + $0x10] sm:$0xff] }
 0x4ca   :  { %v10597_v52 = vld [vmem:[#allocation2 + $0x30] sm:$0xff]  ;;  %v3698_v34 = vrot.slane %v3674_v9, 7 }
 0x4cb   :  { %v3686_v19 = vld [vmem:[#allocation2 + $0x70] sm:$0xff]  ;;  %v3702_v53 = vrot.slane %v10597_v52, 7  ;;  %v9210_v52 = vld [vmem:[#allocation9 + $0x448] ss:$16 sps:$4 sm:$0xff]  }
 0x4cc   :  { %4644 = vmatpush1.bf16.msra.mxu0 %v9141_v60  ;;  %4750 = vmatpush1.bf16.msra.mxu1 %v9144_v3  ;;  %v3710_v58 = vrot.slane %v3686_v19, 7  ;;  %v9188_v60 = vld [vmem:[#allocation9 + $0x3cc] ss:$16 sps:$4 sm:$0xff]   ;;  %v9191_v3 = vld [vmem:[#allocation9 + $0x3e4] ss:$16 sps:$4 sm:$0xff]  }
 0x4cd   :  { %4645 = vmatprep.subr.bf16.mxu0 %v9149_v13  ;;  %4751 = vmatprep.subr.bf16.mxu1 %v9152_v16  ;;  %v3722_v13 = vsel %vm170_vm0, %v3698_v34, %v3702_v53  ;;  %v9207_v9 = vld [vmem:[#allocation9 + $0x440] ss:$16 sps:$4 sm:$0xff]  }
 0x4ce   :  { %v3726_v16 = vsel %vm170_vm0, %v3710_v58, %v3698_v34  ;;  %v9213_v34 = vld [vmem:[#allocation9 + $0x460] ss:$16 sps:$4 sm:$0xff]  }
 0x4cf   :  { %v3730_v31 = vmul.f32 %v3726_v16, %v10171_v49  ;;  %v9206_v49 = vld [vmem:[#allocation9 + $0x42c] ss:$16 sps:$4 sm:$0xff]   ;;  %v9231_v16 = vld [vmem:[#allocation9 + $0x4c0] ss:$16 sps:$4 sm:$0xff]  }
 0x4d0   :  { %4646 = vmatpush1.bf16.msra.mxu0 %v9147_v33  ;;  %4752 = vmatpush1.bf16.msra.mxu1 %v9150_v38  ;;  %v3734_v33 = vmul.f32 %v3722_v13, %v10200_v2  ;;  %v9197_v38 = vld [vmem:[#allocation9 + $0x404] ss:$16 sps:$4 sm:$0xff]   ;;  %v9236_v13 = vld [vmem:[#allocation9 + $0x4cc] ss:$16 sps:$4 sm:$0xff]  }
 0x4d1   :  { %4647 = vmatprep.subr.bf16.mxu0 %v9155_v55  ;;  %4753 = vmatprep.subr.bf16.mxu1 %v9158_v40  ;;  %v9200_v55 = vld [vmem:[#allocation9 + $0x40c] ss:$16 sps:$4 sm:$0xff]   ;;  %v9195_v40 = vld [vmem:[#allocation9 + $0x400] ss:$16 sps:$4 sm:$0xff]  }
 0x4d4   :  { %4648 = vmatpush1.bf16.msra.mxu0 %v9153_v43  ;;  %4754 = vmatpush1.bf16.msra.mxu1 %v9156_v44  ;;  %v9198_v43 = vld [vmem:[#allocation9 + $0x408] ss:$16 sps:$4 sm:$0xff]   ;;  %v3746_v44 = vpack.c.bf16 %v3734_v33, %v3730_v31  ;;  %v9242_v31 = vld [vmem:[#allocation9 + $0x4ec] ss:$16 sps:$4 sm:$0xff]   ;;  %v9237_v33 = vld [vmem:[#allocation9 + $0x4e0] ss:$16 sps:$4 sm:$0xff]  }
 0x4d5   :  { %4649 = vmatprep.subr.bf16.mxu0 %v9161_v45  ;;  %4755 = vmatprep.subr.bf16.mxu1 %v9164_v46  ;;  %v10606_v45 = vld [vmem:[#allocation2 + $0x58] sm:$0xff]  ;;  %v9203_v46 = vld [vmem:[#allocation9 + $0x424] ss:$16 sps:$4 sm:$0xff]  }
 0x4d8   :  { %4650 = vmatpush1.bf16.msra.mxu0 %v9159_v39  ;;  %4756 = vmatpush1.bf16.msra.mxu1 %v9162_v50  ;;  %v3707_v39 = vrot.slane %v10606_v45, 7 }
 0x4d9   :  { %4651 = vmatprep.subr.bf16.mxu0 %v9167_v15  ;;  %4757 = vmatprep.subr.bf16.mxu1 %v9170_v23  ;;  %v3682_v15 = vld [vmem:[#allocation2 + $0x50] sm:$0xff] }
 0x4da   :  { %v3715_v2 = vsel %vm170_vm0, %v3707_v39, %v3711_v25  ;;  %v3719_v50 = vsel %vm170_vm0, %v3703_v61, %v3707_v39  ;;  %v9201_v23 = vld [vmem:[#allocation9 + $0x420] ss:$16 sps:$4 sm:$0xff]   ;;  %v9209_v25 = vld [vmem:[#allocation9 + $0x444] ss:$16 sps:$4 sm:$0xff]  }
 0x4db   :  { %v9249_v39 = vld [vmem:[#allocation9 + $0x520] ss:$16 sps:$4 sm:$0xff]  }
 0x4dc   :  { %4652 = vmatpush1.bf16.msra.mxu0 %v9165_v59  ;;  %4758 = vmatpush1.bf16.msra.mxu1 %v9168_v62  ;;  %v3739_v59 = vmul.f32 %v3719_v50, %v10168_v47  ;;  %v3743_v62 = vmul.f32 %v3715_v2, %v10198_v1  ;;  %v9257_v2 = vld [vmem:[#allocation9 + $0x544] ss:$16 sps:$4 sm:$0xff]   ;;  %v9260_v50 = vld [vmem:[#allocation9 + $0x54c] ss:$16 sps:$4 sm:$0xff]  }
 0x4dd   :  { %4653 = vmatprep.subr.bf16.mxu0 %v9173_v37  ;;  %4759 = vmatprep.subr.bf16.mxu1 %v9176_v63  ;;  %v3706_v37 = vrot.slane %v3682_v15, 7  ;;  %v9212_v63 = vld [vmem:[#allocation9 + $0x44c] ss:$16 sps:$4 sm:$0xff]   ;;  %v9255_v15 = vld [vmem:[#allocation9 + $0x540] ss:$16 sps:$4 sm:$0xff]  }
 0x4df   :  { %v3714_v61 = vsel %vm170_vm0, %v3706_v37, %v3710_v58  ;;  %v9219_v58 = vld [vmem:[#allocation9 + $0x480] ss:$16 sps:$4 sm:$0xff]  }
 0x4e0   :  { %4654 = vmatpush1.bf16.msra.mxu0 %v9171_v14  ;;  %4760 = vmatpush1.bf16.msra.mxu1 %v9174_v6  ;;  %v3751_v14 = vpack.c.bf16 %v3743_v62, %v3739_v59  ;;  %v3718_v6 = vsel %vm170_vm0, %v3702_v53, %v3706_v37  ;;  %v9224_v53 = vld [vmem:[#allocation9 + $0x48c] ss:$16 sps:$4 sm:$0xff]   ;;  %v9263_v59 = vld [vmem:[#allocation9 + $0x564] ss:$16 sps:$4 sm:$0xff]   ;;  %v9261_v37 = vld [vmem:[#allocation9 + $0x560] ss:$16 sps:$4 sm:$0xff]  }
 0x4e1   :  { %4655 = vmatprep.subr.bf16.mxu0 %v9179_v7  ;;  %4761 = vmatprep.subr.bf16.mxu1 %v9182_v8  ;;  %v3738_v7 = vmul.f32 %v3718_v6, %v10168_v47  ;;  %v3742_v8 = vmul.f32 %v3714_v61, %v10198_v1  ;;  %v9216_v47 = vld [vmem:[#allocation9 + $0x468] ss:$16 sps:$4 sm:$0xff]   ;;  %v9221_v1 = vld [vmem:[#allocation9 + $0x484] ss:$16 sps:$4 sm:$0xff]   ;;  %v9266_v62 = vld [vmem:[#allocation9 + $0x56c] ss:$16 sps:$4 sm:$0xff]  }
 0x4e2   :  { %v9270_v61 = vld [vmem:[#allocation9 + $0x588] ss:$16 sps:$4 sm:$0xff]   ;;  %v9275_v6 = vld [vmem:[#allocation9 + $0x5a4] ss:$16 sps:$4 sm:$0xff]  }
 0x4e3   :  { %v3750_v19 = vpack.c.bf16 %v3742_v8, %v3738_v7  ;;  %v9278_v7 = vld [vmem:[#allocation9 + $0x5ac] ss:$16 sps:$4 sm:$0xff]   ;;  %v9273_v8 = vld [vmem:[#allocation9 + $0x5a0] ss:$16 sps:$4 sm:$0xff]  }
 0x4e4   :  { %4656 = vmatpush1.bf16.msra.mxu0 %v9177_v30  ;;  %4762 = vmatpush1.bf16.msra.mxu1 %v9180_v29  ;;  %v9215_v30 = vld [vmem:[#allocation9 + $0x464] ss:$16 sps:$4 sm:$0xff]   ;;  %v9218_v29 = vld [vmem:[#allocation9 + $0x46c] ss:$16 sps:$4 sm:$0xff]  }
 0x4e5   :  { %4657 = vmatprep.subr.bf16.mxu0 %v9185_v35  ;;  %4763 = vmatprep.subr.bf16.mxu1 %v9188_v60  ;;  %v3689_v35 = vpack.c.bf16 %v10516_v17, %v10514_v27  ;;  %v9222_v60 = vld [vmem:[#allocation9 + $0x488] ss:$16 sps:$4 sm:$0xff]   ;;  %v9230_v27 = vld [vmem:[#allocation9 + $0x4ac] ss:$16 sps:$4 sm:$0xff]   ;;  %v9225_v17 = vld [vmem:[#allocation9 + $0x4a0] ss:$16 sps:$4 sm:$0xff]  }
 0x4e8   :  { %4658 = vmatpush1.bf16.msra.mxu0 %v9183_v10  ;;  %4764 = vmatpush1.bf16.msra.mxu1 %v9186_v11  ;;  %v9227_v10 = vld [vmem:[#allocation9 + $0x4a4] ss:$16 sps:$4 sm:$0xff]   ;;  %v9228_v11 = vld [vmem:[#allocation9 + $0x4a8] ss:$16 sps:$4 sm:$0xff]  }
 0x4e9   :  { %4659 = vmatprep.subr.bf16.mxu0 %v9191_v3  ;;  %4765 = vmatprep.subr.bf16.mxu1 %v9194_v20  ;;  %v9233_v3 = vld [vmem:[#allocation9 + $0x4c4] ss:$16 sps:$4 sm:$0xff]   ;;  %v9234_v20 = vld [vmem:[#allocation9 + $0x4c8] ss:$16 sps:$4 sm:$0xff]  }
 0x4ec   :  { %4660 = vmatpush1.bf16.msra.mxu0 %v9189_v21  ;;  %4766 = vmatpush1.bf16.msra.mxu1 %v9192_v36  ;;  %v9239_v21 = vld [vmem:[#allocation9 + $0x4e4] ss:$16 sps:$4 sm:$0xff]   ;;  %v9240_v36 = vld [vmem:[#allocation9 + $0x4e8] ss:$16 sps:$4 sm:$0xff]  }
 0x4ed   :  { %5589 = vmatprep.subr.bf16.mxu0 %v9197_v38  ;;  %5695 = vmatprep.subr.bf16.mxu1 %v9200_v55  ;;  %v9245_v38 = vld [vmem:[#allocation9 + $0x504] ss:$16 sps:$4 sm:$0xff]   ;;  %v9248_v55 = vld [vmem:[#allocation9 + $0x50c] ss:$16 sps:$4 sm:$0xff]  }
 0x4ef   :  { %4662 = vmatmul.mubr.bf16.vlgmr.msra.gmra.mrb[8].mxu0 %v3746_v44  ;;  %4768 = vmatmul.mubr.bf16.vlgmr.msra.gmra.mrb[8].mxu1 %v3746_v44  ;;  %v9251_v44 = vld [vmem:[#allocation9 + $0x524] ss:$16 sps:$4 sm:$0xff]  }
 0x4f0   :  { %5590 = vmatpush1.bf16.msra.mxu0 %v9195_v40  ;;  %5696 = vmatpush1.bf16.msra.mxu1 %v9198_v43  ;;  %v9243_v40 = vld [vmem:[#allocation9 + $0x500] ss:$16 sps:$4 sm:$0xff]   ;;  %v9246_v43 = vld [vmem:[#allocation9 + $0x508] ss:$16 sps:$4 sm:$0xff]  }
 0x4f1   :  { %5591 = vmatprep.subr.bf16.mxu0 %v9203_v46  ;;  %5697 = vmatprep.subr.bf16.mxu1 %v9206_v49  ;;  %v9254_v46 = vld [vmem:[#allocation9 + $0x52c] ss:$16 sps:$4 sm:$0xff]   ;;  %v9252_v49 = vld [vmem:[#allocation9 + $0x528] ss:$16 sps:$4 sm:$0xff]  }
 0x4f2   :  { %4671 = vmatprep.mubr.bf16.mxu0 %v3751_v14  ;;  %4777 = vmatprep.mubr.bf16.mxu1 %v3751_v14  ;;  %v9267_v14 = vld [vmem:[#allocation9 + $0x580] ss:$16 sps:$4 sm:$0xff]  }
 0x4f4   :  { %5592 = vmatpush1.bf16.msra.mxu0 %v9201_v23  ;;  %5698 = vmatpush1.bf16.msra.mxu1 %v9204_v18  ;;  %v9258_v23 = vld [vmem:[#allocation9 + $0x548] ss:$16 sps:$4 sm:$0xff]  }
 0x4f5   :  { %5593 = vmatprep.subr.bf16.mxu0 %v9209_v25  ;;  %5699 = vmatprep.subr.bf16.mxu1 %v9212_v63  ;;  %v9264_v18 = vld [vmem:[#allocation9 + $0x568] ss:$16 sps:$4 sm:$0xff]   ;;  %v9269_v25 = vld [vmem:[#allocation9 + $0x584] ss:$16 sps:$4 sm:$0xff]   ;;  %v9272_v63 = vld [vmem:[#allocation9 + $0x58c] ss:$16 sps:$4 sm:$0xff]  }
 0x4f7   :  { %4672 = vmatmul.mubr.bf16.gmra.mrb[12].mxu0 %v3750_v19  ;;  %4778 = vmatmul.mubr.bf16.gmra.mrb[12].mxu1 %v3750_v19  ;;  %v9284_v19 = vld [vmem:[#allocation9 + $0x5cc] ss:$16 sps:$4 sm:$0xff]  }
 0x4f8   :  { %5594 = vmatpush1.bf16.msra.mxu0 %v9207_v9  ;;  %5700 = vmatpush1.bf16.msra.mxu1 %v9210_v52  ;;  %v9276_v9 = vld [vmem:[#allocation9 + $0x5a8] ss:$16 sps:$4 sm:$0xff]   ;;  %v9281_v52 = vld [vmem:[#allocation9 + $0x5c4] ss:$16 sps:$4 sm:$0xff]  }
 0x4f9   :  { %5595 = vmatprep.subr.bf16.mxu0 %v9215_v30  ;;  %5701 = vmatprep.subr.bf16.mxu1 %v9218_v29  ;;  %v9279_v30 = vld [vmem:[#allocation9 + $0x5c0] ss:$16 sps:$4 sm:$0xff]   ;;  %v9282_v29 = vld [vmem:[#allocation9 + $0x5c8] ss:$16 sps:$4 sm:$0xff]  }
 0x4fa   :  { %5621 = vmatprep.mubr.bf16.mxu0 %v3689_v35  ;;  %5727 = vmatprep.mubr.bf16.mxu1 %v3689_v35  ;;  %v9287_v35 = vld [vmem:[#allocation9 + $0x5e4] ss:$16 sps:$4 sm:$0xff]  }
 0x4fc   :  { %5596 = vmatpush1.bf16.msra.mxu0 %v9213_v34  ;;  %5702 = vmatpush1.bf16.msra.mxu1 %v9216_v47  ;;  %v9290_v34 = vld [vmem:[#allocation9 + $0x5ec] ss:$16 sps:$4 sm:$0xff]   ;;  %v10627_v47 = vld [vmem:[#allocation2] sm:$0xff] }
 0x4fd   :  { %5597 = vmatprep.subr.bf16.mxu0 %v9221_v1  ;;  %5703 = vmatprep.subr.bf16.mxu1 %v9224_v53  ;;  %v3752_v1 = vrot.slane %v10627_v47, 1  ;;  %v9580_v53 = vld [vmem:[#allocation2 + $0x20] sm:$0xff]  ;;  %v9384_v47 = vld [vmem:[#allocation9 + $0x7e8] ss:$16 sps:$4 sm:$0xff]  }
 0x500   :  { %5598 = vmatpush1.bf16.msra.mxu0 %v9219_v58  ;;  %5704 = vmatpush1.bf16.msra.mxu1 %v9222_v60  ;;  %v3756_v58 = vrot.slane %v9580_v53, 1  ;;  %v3760_v60 = vrot.slane %v10563_v0, 1  ;;  %v9339_v53 = vld [vmem:[#allocation9 + $0x700] ss:$16 sps:$4 sm:$0xff]  }
 0x501   :  { %5599 = vmatprep.subr.bf16.mxu0 %v9227_v10  ;;  %5705 = vmatprep.subr.bf16.mxu1 %v9230_v27  ;;  %v9285_v10 = vld [vmem:[#allocation9 + $0x5e0] ss:$16 sps:$4 sm:$0xff]   ;;  %v9288_v27 = vld [vmem:[#allocation9 + $0x5e8] ss:$16 sps:$4 sm:$0xff]  }
 0x504   :  { %5600 = vmatpush1.bf16.msra.mxu0 %v9225_v17  ;;  %5706 = vmatpush1.bf16.msra.mxu1 %v9228_v11  ;;  %v9293_v17 = vld [vmem:[#allocation9 + $0x604] ss:$16 sps:$4 sm:$0xff]   ;;  %v9296_v11 = vld [vmem:[#allocation9 + $0x60c] ss:$16 sps:$4 sm:$0xff]  }
 0x505   :  { %5601 = vmatprep.subr.bf16.mxu0 %v9233_v3  ;;  %5707 = vmatprep.subr.bf16.mxu1 %v9236_v13  ;;  %v9291_v3 = vld [vmem:[#allocation9 + $0x600] ss:$16 sps:$4 sm:$0xff]   ;;  %v3772_v13 = vsel %vm247_vm1, %v3756_v58, %v3760_v60 }
 0x508   :  { %5602 = vmatpush1.bf16.msra.mxu0 %v9231_v16  ;;  %5708 = vmatpush1.bf16.msra.mxu1 %v9234_v20  ;;  %v3776_v16 = vsel %vm247_vm1, %v3752_v1, %v3756_v58  ;;  %v9294_v20 = vld [vmem:[#allocation9 + $0x608] ss:$16 sps:$4 sm:$0xff]  }
 0x509   :  { %5603 = vmatprep.subr.bf16.mxu0 %v9239_v21  ;;  %5709 = vmatprep.subr.bf16.mxu1 %v9242_v31  ;;  %v3784_v21 = vmul.f32 %v3776_v16, %v10229_v28  ;;  %v3788_v31 = vmul.f32 %v3772_v13, %v10226_v26  ;;  %v9342_v58 = vld [vmem:[#allocation9 + $0x708] ss:$16 sps:$4 sm:$0xff]   ;;  %v9356_v13 = vld [vmem:[#allocation9 + $0x74c] ss:$16 sps:$4 sm:$0xff]   ;;  %v9351_v16 = vld [vmem:[#allocation9 + $0x740] ss:$16 sps:$4 sm:$0xff]  }
 0x50c   :  { %5604 = vmatpush1.bf16.msra.mxu0 %v9237_v33  ;;  %5710 = vmatpush1.bf16.msra.mxu1 %v9240_v36  ;;  %v9299_v33 = vld [vmem:[#allocation9 + $0x624] ss:$16 sps:$4 sm:$0xff]   ;;  %v9302_v36 = vld [vmem:[#allocation9 + $0x62c] ss:$16 sps:$4 sm:$0xff]  }
 0x50d   :  { %5605 = vmatprep.subr.bf16.mxu0 %v9245_v38  ;;  %5711 = vmatprep.subr.bf16.mxu1 %v9248_v55  ;;  %v10641_v38 = vld [vmem:[#allocation2 + $0x68] sm:$0xff] }
 0x50e   :  { %v3693_v55 = vpack.c.bf16 %v10641_v38, %v10552_v24 }
 0x510   :  { %5606 = vmatpush1.bf16.msra.mxu0 %v9243_v40  ;;  %5712 = vmatpush1.bf16.msra.mxu1 %v9246_v43  ;;  %v10645_v40 = vpack.c.bf16 %v3788_v31, %v3784_v21  ;;  %v9297_v43 = vld [vmem:[#allocation9 + $0x620] ss:$16 sps:$4 sm:$0xff]   ;;  %v9359_v21 = vld [vmem:[#allocation9 + $0x764] ss:$16 sps:$4 sm:$0xff]   ;;  %v9362_v31 = vld [vmem:[#allocation9 + $0x76c] ss:$16 sps:$4 sm:$0xff]  }
 0x511   :  { %5607 = vmatprep.subr.bf16.mxu0 %v9251_v44  ;;  %5713 = vmatprep.subr.bf16.mxu1 %v9254_v46  ;;  %v9300_v44 = vld [vmem:[#allocation9 + $0x628] ss:$16 sps:$4 sm:$0xff]   ;;  %v9305_v46 = vld [vmem:[#allocation9 + $0x644] ss:$16 sps:$4 sm:$0xff]  }
 0x514   :  { %5608 = vmatpush1.bf16.msra.mxu0 %v9249_v39  ;;  %5714 = vmatpush1.bf16.msra.mxu1 %v9252_v49  ;;  %v9308_v39 = vld [vmem:[#allocation9 + $0x64c] ss:$16 sps:$4 sm:$0xff]   ;;  %v9303_v49 = vld [vmem:[#allocation9 + $0x640] ss:$16 sps:$4 sm:$0xff]  }
 0x515   :  { %5609 = vmatprep.subr.bf16.mxu0 %v9257_v2  ;;  %5715 = vmatprep.subr.bf16.mxu1 %v9260_v50  ;;  %v10649_v2 = vld [vmem:[#allocation2 + $0x60] sm:$0xff]  ;;  %v9306_v50 = vld [vmem:[#allocation9 + $0x648] ss:$16 sps:$4 sm:$0xff]  }
 0x516   :  { %v3692_v24 = vpack.c.bf16 %v10649_v2, %v10563_v0  ;;  %v9386_v0 = vld [vmem:[#allocation9 + $0x7ec] ss:$16 sps:$4 sm:$0xff]  }
 0x518   :  { %5610 = vmatpush1.bf16.msra.mxu0 %v9255_v15  ;;  %5716 = vmatpush1.bf16.msra.mxu1 %v9258_v23  ;;  %v9314_v15 = vld [vmem:[#allocation9 + $0x66c] ss:$16 sps:$4 sm:$0xff]   ;;  %v3691_v23 = vpack.c.bf16 %v10578_v54, %v10576_v4  ;;  %v9321_v54 = vld [vmem:[#allocation9 + $0x6a0] ss:$16 sps:$4 sm:$0xff]  }
 0x519   :  { %5611 = vmatprep.subr.bf16.mxu0 %v9263_v59  ;;  %5717 = vmatprep.subr.bf16.mxu1 %v9266_v62  ;;  %v9309_v59 = vld [vmem:[#allocation9 + $0x660] ss:$16 sps:$4 sm:$0xff]   ;;  %v9312_v62 = vld [vmem:[#allocation9 + $0x668] ss:$16 sps:$4 sm:$0xff]   ;;  %v9326_v4 = vld [vmem:[#allocation9 + $0x6ac] ss:$16 sps:$4 sm:$0xff]  }
 0x51c   :  { %5612 = vmatpush1.bf16.msra.mxu0 %v9261_v37  ;;  %5718 = vmatpush1.bf16.msra.mxu1 %v9264_v18  ;;  %v9317_v37 = vld [vmem:[#allocation9 + $0x684] ss:$16 sps:$4 sm:$0xff]   ;;  %v9320_v18 = vld [vmem:[#allocation9 + $0x68c] ss:$16 sps:$4 sm:$0xff]  }
 0x51d   :  { %5613 = vmatprep.subr.bf16.mxu0 %v9269_v25  ;;  %5719 = vmatprep.subr.bf16.mxu1 %v9272_v63  ;;  %v9315_v25 = vld [vmem:[#allocation9 + $0x680] ss:$16 sps:$4 sm:$0xff]   ;;  %v9318_v63 = vld [vmem:[#allocation9 + $0x688] ss:$16 sps:$4 sm:$0xff]  }
 0x520   :  { %5614 = vmatpush1.bf16.msra.mxu0 %v9267_v14  ;;  %5720 = vmatpush1.bf16.msra.mxu1 %v9270_v61  ;;  %v9323_v14 = vld [vmem:[#allocation9 + $0x6a4] ss:$16 sps:$4 sm:$0xff]   ;;  %v9324_v61 = vld [vmem:[#allocation9 + $0x6a8] ss:$16 sps:$4 sm:$0xff]  }
 0x521   :  { %5615 = vmatprep.subr.bf16.mxu0 %v9275_v6  ;;  %5721 = vmatprep.subr.bf16.mxu1 %v9278_v7  ;;  %v9329_v6 = vld [vmem:[#allocation9 + $0x6c4] ss:$16 sps:$4 sm:$0xff]   ;;  %v9332_v7 = vld [vmem:[#allocation9 + $0x6cc] ss:$16 sps:$4 sm:$0xff]  }
 0x524   :  { %5616 = vmatpush1.bf16.msra.mxu0 %v9273_v8  ;;  %5722 = vmatpush1.bf16.msra.mxu1 %v9276_v9  ;;  %v9327_v8 = vld [vmem:[#allocation9 + $0x6c0] ss:$16 sps:$4 sm:$0xff]   ;;  %v9330_v9 = vld [vmem:[#allocation9 + $0x6c8] ss:$16 sps:$4 sm:$0xff]  }
 0x525   :  { %5617 = vmatprep.subr.bf16.mxu0 %v9281_v52  ;;  %5723 = vmatprep.subr.bf16.mxu1 %v9284_v19  ;;  %v9335_v52 = vld [vmem:[#allocation9 + $0x6e4] ss:$16 sps:$4 sm:$0xff]   ;;  %v9338_v19 = vld [vmem:[#allocation9 + $0x6ec] ss:$16 sps:$4 sm:$0xff]  }
 0x528   :  { %5618 = vmatpush1.bf16.msra.mxu0 %v9279_v30  ;;  %5724 = vmatpush1.bf16.msra.mxu1 %v9282_v29  ;;  %v9333_v30 = vld [vmem:[#allocation9 + $0x6e0] ss:$16 sps:$4 sm:$0xff]   ;;  %v9336_v29 = vld [vmem:[#allocation9 + $0x6e8] ss:$16 sps:$4 sm:$0xff]  }
 0x529   :  { %5619 = vmatprep.subr.bf16.mxu0 %v9287_v35  ;;  %5725 = vmatprep.subr.bf16.mxu1 %v9290_v34  ;;  %v9341_v35 = vld [vmem:[#allocation9 + $0x704] ss:$16 sps:$4 sm:$0xff]   ;;  %v9344_v34 = vld [vmem:[#allocation9 + $0x70c] ss:$16 sps:$4 sm:$0xff]  }
 0x52c   :  { %5620 = vmatpush1.bf16.msra.mxu0 %v9285_v10  ;;  %5726 = vmatpush1.bf16.msra.mxu1 %v9288_v27  ;;  %v9347_v10 = vld [vmem:[#allocation9 + $0x724] ss:$16 sps:$4 sm:$0xff]   ;;  %v9350_v27 = vld [vmem:[#allocation9 + $0x72c] ss:$16 sps:$4 sm:$0xff]  }
 0x52d   :  { %5642 = vmatprep.subr.bf16.mxu0 %v9293_v17  ;;  %5748 = vmatprep.subr.bf16.mxu1 %v9296_v11  ;;  %v9345_v17 = vld [vmem:[#allocation9 + $0x720] ss:$16 sps:$4 sm:$0xff]   ;;  %v9348_v11 = vld [vmem:[#allocation9 + $0x728] ss:$16 sps:$4 sm:$0xff]  }
 0x52f   :  { %5622 = vmatmul.mubr.bf16.vlgmr.msra.gmra.mrb[8].mxu0 %v10550_v22  ;;  %5728 = vmatmul.mubr.bf16.vlgmr.msra.gmra.mrb[8].mxu1 %v10550_v22  ;;  %v9311_v22 = vld [vmem:[#allocation9 + $0x664] ss:$16 sps:$4 sm:$0xff]  }
 0x530   :  { %5643 = vmatpush1.bf16.msra.mxu0 %v9291_v3  ;;  %5749 = vmatpush1.bf16.msra.mxu1 %v9294_v20  ;;  %v9353_v3 = vld [vmem:[#allocation9 + $0x744] ss:$16 sps:$4 sm:$0xff]   ;;  %v9354_v20 = vld [vmem:[#allocation9 + $0x748] ss:$16 sps:$4 sm:$0xff]  }
 0x531   :  { %5644 = vmatprep.subr.bf16.mxu0 %v9299_v33  ;;  %5750 = vmatprep.subr.bf16.mxu1 %v9302_v36  ;;  %v9357_v33 = vld [vmem:[#allocation9 + $0x760] ss:$16 sps:$4 sm:$0xff]   ;;  %v9360_v36 = vld [vmem:[#allocation9 + $0x768] ss:$16 sps:$4 sm:$0xff]  }
 0x532   :  { %5631 = vmatprep.mubr.bf16.mxu0 %v3693_v55  ;;  %5737 = vmatprep.mubr.bf16.mxu1 %v3693_v55  ;;  %v9365_v55 = vld [vmem:[#allocation9 + $0x784] ss:$16 sps:$4 sm:$0xff]  }
 0x534   :  { %5645 = vmatpush1.bf16.msra.mxu0 %v9297_v43  ;;  %5751 = vmatpush1.bf16.msra.mxu1 %v9300_v44  ;;  %v9368_v43 = vld [vmem:[#allocation9 + $0x78c] ss:$16 sps:$4 sm:$0xff]   ;;  %v9363_v44 = vld [vmem:[#allocation9 + $0x780] ss:$16 sps:$4 sm:$0xff]  }
 0x535   :  { %5646 = vmatprep.subr.bf16.mxu0 %v9305_v46  ;;  %5752 = vmatprep.subr.bf16.mxu1 %v9308_v39  ;;  %v9366_v46 = vld [vmem:[#allocation9 + $0x788] ss:$16 sps:$4 sm:$0xff]   ;;  %v9371_v39 = vld [vmem:[#allocation9 + $0x7a4] ss:$16 sps:$4 sm:$0xff]  }
 0x537   :  { %5632 = vmatmul.mubr.bf16.gmra.mrb[12].mxu0 %v3692_v24  ;;  %5738 = vmatmul.mubr.bf16.gmra.mrb[12].mxu1 %v3692_v24  ;;  %v9369_v24 = vld [vmem:[#allocation9 + $0x7a0] ss:$16 sps:$4 sm:$0xff]  }
 0x538   :  { %5647 = vmatpush1.bf16.msra.mxu0 %v9303_v49  ;;  %5753 = vmatpush1.bf16.msra.mxu1 %v9306_v50  ;;  %v9374_v49 = vld [vmem:[#allocation9 + $0x7ac] ss:$16 sps:$4 sm:$0xff]   ;;  %v9372_v50 = vld [vmem:[#allocation9 + $0x7a8] ss:$16 sps:$4 sm:$0xff]  }
 0x539   :  { %5648 = vmatprep.subr.bf16.mxu0 %v9311_v22  ;;  %5754 = vmatprep.subr.bf16.mxu1 %v9314_v15  ;;  %v3764_v22 = vrot.slane %v10649_v2, 1  ;;  %v9377_v15 = vld [vmem:[#allocation9 + $0x7c4] ss:$16 sps:$4 sm:$0xff]   ;;  %v9378_v2 = vld [vmem:[#allocation9 + $0x7c8] ss:$16 sps:$4 sm:$0xff]  }
 0x53a   :  { %5674 = vmatprep.mubr.bf16.mxu0 %v3691_v23  ;;  %5780 = vmatprep.mubr.bf16.mxu1 %v3691_v23  ;;  %v9380_v23 = vld [vmem:[#allocation9 + $0x7cc] ss:$16 sps:$4 sm:$0xff]  }
 0x53c   :  { %5649 = vmatpush1.bf16.msra.mxu0 %v9309_v59  ;;  %5755 = vmatpush1.bf16.msra.mxu1 %v9312_v62  ;;  %v3768_v59 = vsel %vm247_vm1, %v3760_v60, %v3764_v22  ;;  %v3780_v62 = vsel %vm247_vm1, %v3764_v22, %v3752_v1  ;;  %v9381_v60 = vld [vmem:[#allocation9 + $0x7e0] ss:$16 sps:$4 sm:$0xff]   ;;  %v9389_v1 = vld [vmem:[#allocation9 + $0x804] ss:$16 sps:$4 sm:$0xff]  }
 0x53d   :  { %5650 = vmatprep.subr.bf16.mxu0 %v9317_v37  ;;  %5756 = vmatprep.subr.bf16.mxu1 %v9320_v18  ;;  %v9375_v37 = vld [vmem:[#allocation9 + $0x7c0] ss:$16 sps:$4 sm:$0xff]   ;;  %v3792_v18 = vmul.f32 %v3768_v59, %v10257_v57  ;;  %v9422_v59 = vld [vmem:[#allocation9 + $0x8ac] ss:$16 sps:$4 sm:$0xff]  }
 0x53e   :  { %v9411_v22 = vld [vmem:[#allocation9 + $0x880] ss:$16 sps:$4 sm:$0xff]  }
 0x540   :  { %5651 = vmatpush1.bf16.msra.mxu0 %v9315_v25  ;;  %5757 = vmatpush1.bf16.msra.mxu1 %v9318_v63  ;;  %v3796_v25 = vmul.f32 %v3780_v62, %v10255_v56  ;;  %v9383_v63 = vld [vmem:[#allocation9 + $0x7e4] ss:$16 sps:$4 sm:$0xff]   ;;  %v9417_v62 = vld [vmem:[#allocation9 + $0x8a0] ss:$16 sps:$4 sm:$0xff]  }
 0x541   :  { %5652 = vmatprep.subr.bf16.mxu0 %v9323_v14  ;;  %5758 = vmatprep.subr.bf16.mxu1 %v9326_v4  ;;  %v9392_v4 = vld [vmem:[#allocation9 + $0x80c] ss:$16 sps:$4 sm:$0xff]  }
 0x542   :  { %v10666_v14 = vpack.c.bf16 %v3796_v25, %v3792_v18  ;;  %v9425_v18 = vld [vmem:[#allocation9 + $0x8c4] ss:$16 sps:$4 sm:$0xff]   ;;  %v9428_v25 = vld [vmem:[#allocation9 + $0x8cc] ss:$16 sps:$4 sm:$0xff]  }
 0x544   :  { %5653 = vmatpush1.bf16.msra.mxu0 %v9321_v54  ;;  %5759 = vmatpush1.bf16.msra.mxu1 %v9324_v61  ;;  %v9387_v54 = vld [vmem:[#allocation9 + $0x800] ss:$16 sps:$4 sm:$0xff]  }
 0x545   :  { %5654 = vmatprep.subr.bf16.mxu0 %v9329_v6  ;;  %5760 = vmatprep.subr.bf16.mxu1 %v9332_v7  ;;  %v10668_v61 = vld [vmem:[#allocation2 + $0x10] sm:$0xff] }
 0x546   :  { %v10670_v6 = vld [vmem:[#allocation2 + $0x30] sm:$0xff] }
 0x547   :  { %v3690_v7 = vpack.c.bf16 %v10670_v6, %v10668_v61 }
 0x548   :  { %5655 = vmatpush1.bf16.msra.mxu0 %v9327_v8  ;;  %5761 = vmatpush1.bf16.msra.mxu1 %v9330_v9  ;;  %v10674_v8 = vld [vmem:[#allocation2 + $0x8] sm:$0xff] }
 0x549   :  { %5656 = vmatprep.subr.bf16.mxu0 %v9335_v52  ;;  %5762 = vmatprep.subr.bf16.mxu1 %v9338_v19  ;;  %v3753_v9 = vrot.slane %v10674_v8, 1  ;;  %v9586_v52 = vld [vmem:[#allocation2 + $0x28] sm:$0xff]  ;;  %v9592_v8 = vld [vmem:[#allocation2 + $0x38] sm:$0xff] }
 0x54a   :  { %v3757_v19 = vrot.slane %v9586_v52, 1  ;;  %v9438_v52 = vld [vmem:[#allocation9 + $0x908] ss:$16 sps:$4 sm:$0xff]  }
 0x54c   :  { %5657 = vmatpush1.bf16.msra.mxu0 %v9333_v30  ;;  %5763 = vmatpush1.bf16.msra.mxu1 %v9336_v29  ;;  %v10677_v30 = vld [vmem:[#allocation2 + $0x48] sm:$0xff] }
 0x54d   :  { %5658 = vmatprep.subr.bf16.mxu0 %v9341_v35  ;;  %5764 = vmatprep.subr.bf16.mxu1 %v9344_v34  ;;  %v3761_v29 = vrot.slane %v10677_v30, 1  ;;  %v9390_v35 = vld [vmem:[#allocation9 + $0x808] ss:$16 sps:$4 sm:$0xff]   ;;  %v9395_v34 = vld [vmem:[#allocation9 + $0x824] ss:$16 sps:$4 sm:$0xff]  }
 0x550   :  { %5659 = vmatpush1.bf16.msra.mxu0 %v9339_v53  ;;  %5765 = vmatpush1.bf16.msra.mxu1 %v9342_v58  ;;  %v9398_v53 = vld [vmem:[#allocation9 + $0x82c] ss:$16 sps:$4 sm:$0xff]  }
 0x551   :  { %5660 = vmatprep.subr.bf16.mxu0 %v9347_v10  ;;  %5766 = vmatprep.subr.bf16.mxu1 %v9350_v27  ;;  %v10680_v58 = vld [vmem:[#allocation2 + $0x78] sm:$0xff]  ;;  %v9393_v27 = vld [vmem:[#allocation9 + $0x820] ss:$16 sps:$4 sm:$0xff]  }
 0x552   :  { %v3695_v10 = vpack.c.bf16 %v10680_v58, %v10606_v45  ;;  %v9404_v45 = vld [vmem:[#allocation9 + $0x84c] ss:$16 sps:$4 sm:$0xff]  }
 0x554   :  { %5661 = vmatpush1.bf16.msra.mxu0 %v9345_v17  ;;  %5767 = vmatpush1.bf16.msra.mxu1 %v9348_v11  ;;  %v3773_v17 = vsel %vm247_vm1, %v3757_v19, %v3761_v29  ;;  %v3777_v11 = vsel %vm247_vm1, %v3753_v9, %v3757_v19  ;;  %v9443_v19 = vld [vmem:[#allocation9 + $0x924] ss:$16 sps:$4 sm:$0xff]  }
 0x555   :  { %5662 = vmatprep.subr.bf16.mxu0 %v9353_v3  ;;  %5768 = vmatprep.subr.bf16.mxu1 %v9356_v13  ;;  %v9396_v3 = vld [vmem:[#allocation9 + $0x828] ss:$16 sps:$4 sm:$0xff]   ;;  %v9401_v13 = vld [vmem:[#allocation9 + $0x844] ss:$16 sps:$4 sm:$0xff]  }
 0x558   :  { %5663 = vmatpush1.bf16.msra.mxu0 %v9351_v16  ;;  %5769 = vmatpush1.bf16.msra.mxu1 %v9354_v20  ;;  %v3785_v16 = vmul.f32 %v3777_v11, %v10229_v28  ;;  %v3789_v20 = vmul.f32 %v3773_v17, %v10226_v26  ;;  %v9447_v17 = vld [vmem:[#allocation9 + $0x940] ss:$16 sps:$4 sm:$0xff]   ;;  %v9450_v11 = vld [vmem:[#allocation9 + $0x948] ss:$16 sps:$4 sm:$0xff]  }
 0x559   :  { %5664 = vmatprep.subr.bf16.mxu0 %v9359_v21  ;;  %5770 = vmatprep.subr.bf16.mxu1 %v9362_v31  ;;  %v10694_v21 = vld [vmem:[#allocation2 + $0x70] sm:$0xff] }
 0x55a   :  { %v10696_v31 = vld [vmem:[#allocation2 + $0x50] sm:$0xff] }
 0x55c   :  { %5665 = vmatpush1.bf16.msra.mxu0 %v9357_v33  ;;  %5771 = vmatpush1.bf16.msra.mxu1 %v9360_v36  ;;  %v3694_v33 = vpack.c.bf16 %v10694_v21, %v10696_v31  ;;  %v9399_v36 = vld [vmem:[#allocation9 + $0x840] ss:$16 sps:$4 sm:$0xff]  }
 0x55d   :  { %5666 = vmatprep.subr.bf16.mxu0 %v9365_v55  ;;  %5772 = vmatprep.subr.bf16.mxu1 %v9368_v43  ;;  %v9402_v55 = vld [vmem:[#allocation9 + $0x848] ss:$16 sps:$4 sm:$0xff]   ;;  %v9407_v43 = vld [vmem:[#allocation9 + $0x864] ss:$16 sps:$4 sm:$0xff]  }
 0x560   :  { %5667 = vmatpush1.bf16.msra.mxu0 %v9363_v44  ;;  %5773 = vmatpush1.bf16.msra.mxu1 %v9366_v46  ;;  %v9410_v44 = vld [vmem:[#allocation9 + $0x86c] ss:$16 sps:$4 sm:$0xff]   ;;  %v3801_v46 = vpack.c.bf16 %v3789_v20, %v3785_v16  ;;  %v9456_v16 = vld [vmem:[#allocation9 + $0x968] ss:$16 sps:$4 sm:$0xff]   ;;  %v9461_v20 = vld [vmem:[#allocation9 + $0x984] ss:$16 sps:$4 sm:$0xff]  }
 0x561   :  { %5668 = vmatprep.subr.bf16.mxu0 %v9371_v39  ;;  %5774 = vmatprep.subr.bf16.mxu1 %v9374_v49  ;;  %v9405_v39 = vld [vmem:[#allocation9 + $0x860] ss:$16 sps:$4 sm:$0xff]   ;;  %v9408_v49 = vld [vmem:[#allocation9 + $0x868] ss:$16 sps:$4 sm:$0xff]  }
 0x564   :  { %5669 = vmatpush1.bf16.msra.mxu0 %v9369_v24  ;;  %5775 = vmatpush1.bf16.msra.mxu1 %v9372_v50  ;;  %v9413_v24 = vld [vmem:[#allocation9 + $0x884] ss:$16 sps:$4 sm:$0xff]   ;;  %v9416_v50 = vld [vmem:[#allocation9 + $0x88c] ss:$16 sps:$4 sm:$0xff]  }
 0x565   :  { %5670 = vmatprep.subr.bf16.mxu0 %v9377_v15  ;;  %5776 = vmatprep.subr.bf16.mxu1 %v9380_v23  ;;  %v9414_v15 = vld [vmem:[#allocation9 + $0x888] ss:$16 sps:$4 sm:$0xff]   ;;  %v9419_v23 = vld [vmem:[#allocation9 + $0x8a4] ss:$16 sps:$4 sm:$0xff]  }
 0x568   :  { %5671 = vmatpush1.bf16.msra.mxu0 %v9375_v37  ;;  %5777 = vmatpush1.bf16.msra.mxu1 %v9378_v2  ;;  %v9420_v37 = vld [vmem:[#allocation9 + $0x8a8] ss:$16 sps:$4 sm:$0xff]   ;;  %v9423_v2 = vld [vmem:[#allocation9 + $0x8c0] ss:$16 sps:$4 sm:$0xff]  }
 0x569   :  { %5672 = vmatprep.subr.bf16.mxu0 %v9383_v63  ;;  %5778 = vmatprep.subr.bf16.mxu1 %v9386_v0  ;;  %v9426_v63 = vld [vmem:[#allocation9 + $0x8c8] ss:$16 sps:$4 sm:$0xff]   ;;  %v9431_v0 = vld [vmem:[#allocation9 + $0x8e4] ss:$16 sps:$4 sm:$0xff]  }
 0x56c   :  { %5673 = vmatpush1.bf16.msra.mxu0 %v9381_v60  ;;  %5779 = vmatpush1.bf16.msra.mxu1 %v9384_v47  ;;  %v9434_v60 = vld [vmem:[#allocation9 + $0x8ec] ss:$16 sps:$4 sm:$0xff]   ;;  %v9429_v47 = vld [vmem:[#allocation9 + $0x8e0] ss:$16 sps:$4 sm:$0xff]  }
 0x56d   :  { %6618 = vmatprep.subr.bf16.mxu0 %v9389_v1  ;;  %6724 = vmatprep.subr.bf16.mxu1 %v9392_v4  ;;  %v9432_v1 = vld [vmem:[#allocation9 + $0x8e8] ss:$16 sps:$4 sm:$0xff]   ;;  %v9437_v4 = vld [vmem:[#allocation9 + $0x904] ss:$16 sps:$4 sm:$0xff]  }
 0x56f   :  { %5675 = vmatmul.mubr.bf16.vlgmr.msra.gmra.mrb[8].mxu0 %v3690_v7  ;;  %5781 = vmatmul.mubr.bf16.vlgmr.msra.gmra.mrb[8].mxu1 %v3690_v7  ;;  %v9435_v7 = vld [vmem:[#allocation9 + $0x900] ss:$16 sps:$4 sm:$0xff]  }
 0x570   :  { %6619 = vmatpush1.bf16.msra.mxu0 %v9387_v54  ;;  %6725 = vmatpush1.bf16.msra.mxu1 %v9390_v35  ;;  %v9440_v54 = vld [vmem:[#allocation9 + $0x90c] ss:$16 sps:$4 sm:$0xff]  }
 0x571   :  { %6620 = vmatprep.subr.bf16.mxu0 %v9395_v34  ;;  %6726 = vmatprep.subr.bf16.mxu1 %v9398_v53  ;;  %v9446_v35 = vld [vmem:[#allocation9 + $0x92c] ss:$16 sps:$4 sm:$0xff]   ;;  %v9441_v34 = vld [vmem:[#allocation9 + $0x920] ss:$16 sps:$4 sm:$0xff]   ;;  %v9444_v53 = vld [vmem:[#allocation9 + $0x928] ss:$16 sps:$4 sm:$0xff]  }
 0x572   :  { %5684 = vmatprep.mubr.bf16.mxu0 %v3695_v10  ;;  %5790 = vmatprep.mubr.bf16.mxu1 %v3695_v10  ;;  %v9449_v10 = vld [vmem:[#allocation9 + $0x944] ss:$16 sps:$4 sm:$0xff]  }
 0x574   :  { %6621 = vmatpush1.bf16.msra.mxu0 %v9393_v27  ;;  %6727 = vmatpush1.bf16.msra.mxu1 %v9396_v3  ;;  %v9452_v27 = vld [vmem:[#allocation9 + $0x94c] ss:$16 sps:$4 sm:$0xff]   ;;  %v9455_v3 = vld [vmem:[#allocation9 + $0x964] ss:$16 sps:$4 sm:$0xff]  }
 0x575   :  { %6622 = vmatprep.subr.bf16.mxu0 %v9401_v13  ;;  %6728 = vmatprep.subr.bf16.mxu1 %v9404_v45  ;;  %v9458_v13 = vld [vmem:[#allocation9 + $0x96c] ss:$16 sps:$4 sm:$0xff]   ;;  %v9453_v45 = vld [vmem:[#allocation9 + $0x960] ss:$16 sps:$4 sm:$0xff]  }
 0x577   :  { %5685 = vmatmul.mubr.bf16.gmra.mrb[12].mxu0 %v3694_v33  ;;  %5791 = vmatmul.mubr.bf16.gmra.mrb[12].mxu1 %v3694_v33  ;;  %v9464_v33 = vld [vmem:[#allocation9 + $0x98c] ss:$16 sps:$4 sm:$0xff]  }
 0x578   :  { %6623 = vmatpush1.bf16.msra.mxu0 %v9399_v36  ;;  %6729 = vmatpush1.bf16.msra.mxu1 %v9402_v55  ;;  %v9459_v36 = vld [vmem:[#allocation9 + $0x980] ss:$16 sps:$4 sm:$0xff]   ;;  %v9462_v55 = vld [vmem:[#allocation9 + $0x988] ss:$16 sps:$4 sm:$0xff]  }
 0x579   :  { %6624 = vmatprep.subr.bf16.mxu0 %v9407_v43  ;;  %6730 = vmatprep.subr.bf16.mxu1 %v9410_v44  ;;  %v9467_v43 = vld [vmem:[#allocation9 + $0x9a4] ss:$16 sps:$4 sm:$0xff]   ;;  %v9470_v44 = vld [vmem:[#allocation9 + $0x9ac] ss:$16 sps:$4 sm:$0xff]  }
 0x57a   :  { %6650 = vmatprep.mubr.bf16.mxu0 %v3801_v46  ;;  %6756 = vmatprep.mubr.bf16.mxu1 %v3801_v46  ;;  %v9465_v46 = vld [vmem:[#allocation9 + $0x9a0] ss:$16 sps:$4 sm:$0xff]  }
 0x57c   :  { %6625 = vmatpush1.bf16.msra.mxu0 %v9405_v39  ;;  %6731 = vmatpush1.bf16.msra.mxu1 %v9408_v49  ;;  %v9468_v39 = vld [vmem:[#allocation9 + $0x9a8] ss:$16 sps:$4 sm:$0xff]   ;;  %v9473_v49 = vld [vmem:[#allocation9 + $0x9c4] ss:$16 sps:$4 sm:$0xff]  }
 0x57d   :  { %6626 = vmatprep.subr.bf16.mxu0 %v9413_v24  ;;  %6732 = vmatprep.subr.bf16.mxu1 %v9416_v50  ;;  %v9476_v24 = vld [vmem:[#allocation9 + $0x9cc] ss:$16 sps:$4 sm:$0xff]   ;;  %v3765_v50 = vrot.slane %v10641_v38, 1  ;;  %v9477_v38 = vld [vmem:[#allocation9 + $0x9e0] ss:$16 sps:$4 sm:$0xff]  }
 0x580   :  { %6627 = vmatpush1.bf16.msra.mxu0 %v9411_v22  ;;  %6733 = vmatpush1.bf16.msra.mxu1 %v9414_v15  ;;  %v9471_v22 = vld [vmem:[#allocation9 + $0x9c0] ss:$16 sps:$4 sm:$0xff]   ;;  %v9474_v15 = vld [vmem:[#allocation9 + $0x9c8] ss:$16 sps:$4 sm:$0xff]  }
 0x581   :  { %6628 = vmatprep.subr.bf16.mxu0 %v9419_v23  ;;  %6734 = vmatprep.subr.bf16.mxu1 %v9422_v59  ;;  %v9479_v23 = vld [vmem:[#allocation9 + $0x9e4] ss:$16 sps:$4 sm:$0xff]   ;;  %v9482_v59 = vld [vmem:[#allocation9 + $0x9ec] ss:$16 sps:$4 sm:$0xff]  }
 0x584   :  { %6629 = vmatpush1.bf16.msra.mxu0 %v9417_v62  ;;  %6735 = vmatpush1.bf16.msra.mxu1 %v9420_v37  ;;  %v3769_v62 = vsel %vm247_vm1, %v3761_v29, %v3765_v50  ;;  %v3781_v37 = vsel %vm247_vm1, %v3765_v50, %v3753_v9  ;;  %v9524_v50 = vld [vmem:[#allocation9 + $0xacc] ss:$16 sps:$4 sm:$0xff]  }
 0x585   :  { %6630 = vmatprep.subr.bf16.mxu0 %v9425_v18  ;;  %6736 = vmatprep.subr.bf16.mxu1 %v9428_v25  ;;  %v9480_v18 = vld [vmem:[#allocation9 + $0x9e8] ss:$16 sps:$4 sm:$0xff]   ;;  %v9485_v25 = vld [vmem:[#allocation9 + $0xa04] ss:$16 sps:$4 sm:$0xff]   ;;  %v3797_v30 = vmul.f32 %v3781_v37, %v10255_v56 }
 0x586   :  { %v9528_v37 = vld [vmem:[#allocation9 + $0xae8] ss:$16 sps:$4 sm:$0xff]  }
 0x588   :  { %6631 = vmatpush1.bf16.msra.mxu0 %v9423_v2  ;;  %6737 = vmatpush1.bf16.msra.mxu1 %v9426_v63  ;;  %v9488_v2 = vld [vmem:[#allocation9 + $0xa0c] ss:$16 sps:$4 sm:$0xff]   ;;  %v3793_v63 = vmul.f32 %v3769_v62, %v10257_v57  ;;  %v9525_v62 = vld [vmem:[#allocation9 + $0xae0] ss:$16 sps:$4 sm:$0xff]  }
 0x589   :  { %6632 = vmatprep.subr.bf16.mxu0 %v9431_v0  ;;  %6738 = vmatprep.subr.bf16.mxu1 %v9434_v60  ;;  %v10711_v0 = vld [vmem:[#allocation2 + $0x18] sm:$0xff]  ;;  %v3759_v60 = vrot.slane %v9592_v8, 1  ;;  %v9537_v8 = vld [vmem:[#allocation9 + $0xb20] ss:$16 sps:$4 sm:$0xff]  }
 0x58a   :  { %v3755_v29 = vrot.slane %v10711_v0, 1 }
 0x58c   :  { %6633 = vmatpush1.bf16.msra.mxu0 %v9429_v47  ;;  %6739 = vmatpush1.bf16.msra.mxu1 %v9432_v1  ;;  %v10714_v47 = vld [vmem:[#allocation2 + $0x58] sm:$0xff]  ;;  %v9483_v1 = vld [vmem:[#allocation9 + $0xa00] ss:$16 sps:$4 sm:$0xff]  }
 0x58d   :  { %6634 = vmatprep.subr.bf16.mxu0 %v9437_v4  ;;  %6740 = vmatprep.subr.bf16.mxu1 %v9440_v54  ;;  %v3763_v9 = vrot.slane %v10714_v47, 1  ;;  %v9486_v4 = vld [vmem:[#allocation9 + $0xa08] ss:$16 sps:$4 sm:$0xff]   ;;  %v9491_v54 = vld [vmem:[#allocation9 + $0xa24] ss:$16 sps:$4 sm:$0xff]  }
 0x590   :  { %6635 = vmatpush1.bf16.msra.mxu0 %v9435_v7  ;;  %6741 = vmatpush1.bf16.msra.mxu1 %v9438_v52  ;;  %v9494_v7 = vld [vmem:[#allocation9 + $0xa2c] ss:$16 sps:$4 sm:$0xff]   ;;  %v3805_v52 = vpack.c.bf16 %v3797_v30, %v3793_v63  ;;  %v9539_v63 = vld [vmem:[#allocation9 + $0xb24] ss:$16 sps:$4 sm:$0xff]  }
 0x591   :  { %6636 = vmatprep.subr.bf16.mxu0 %v9443_v19  ;;  %6742 = vmatprep.subr.bf16.mxu1 %v9446_v35  ;;  %v3775_v19 = vsel %vm247_vm1, %v3759_v60, %v3763_v9  ;;  %v3779_v35 = vsel %vm247_vm1, %v3755_v29, %v3759_v60  ;;  %v9542_v30 = vld [vmem:[#allocation9 + $0xb2c] ss:$16 sps:$4 sm:$0xff]   ;;  %v9540_v60 = vld [vmem:[#allocation9 + $0xb28] ss:$16 sps:$4 sm:$0xff]  }
 0x594   :  { %6637 = vmatpush1.bf16.msra.mxu0 %v9441_v34  ;;  %6743 = vmatpush1.bf16.msra.mxu1 %v9444_v53  ;;  %v9489_v34 = vld [vmem:[#allocation9 + $0xa20] ss:$16 sps:$4 sm:$0xff]   ;;  %v9492_v53 = vld [vmem:[#allocation9 + $0xa28] ss:$16 sps:$4 sm:$0xff]  }
 0x595   :  { %6638 = vmatprep.subr.bf16.mxu0 %v9449_v10  ;;  %6744 = vmatprep.subr.bf16.mxu1 %v9452_v27  ;;  %v9497_v10 = vld [vmem:[#allocation9 + $0xa44] ss:$16 sps:$4 sm:$0xff]   ;;  %v9500_v27 = vld [vmem:[#allocation9 + $0xa4c] ss:$16 sps:$4 sm:$0xff]  }
 0x598   :  { %6639 = vmatpush1.bf16.msra.mxu0 %v9447_v17  ;;  %6745 = vmatpush1.bf16.msra.mxu1 %v9450_v11  ;;  %v3791_v17 = vmul.f32 %v3775_v19, %v10226_v26  ;;  %v9495_v11 = vld [vmem:[#allocation9 + $0xa40] ss:$16 sps:$4 sm:$0xff]   ;;  %v9554_v19 = vld [vmem:[#allocation9 + $0xb6c] ss:$16 sps:$4 sm:$0xff]  }
 0x599   :  { %6640 = vmatprep.subr.bf16.mxu0 %v9455_v3  ;;  %6746 = vmatprep.subr.bf16.mxu1 %v9458_v13  ;;  %v9498_v3 = vld [vmem:[#allocation9 + $0xa48] ss:$16 sps:$4 sm:$0xff]   ;;  %v9503_v13 = vld [vmem:[#allocation9 + $0xa64] ss:$16 sps:$4 sm:$0xff]  }
 0x59c   :  { %6641 = vmatpush1.bf16.msra.mxu0 %v9453_v45  ;;  %6747 = vmatpush1.bf16.msra.mxu1 %v9456_v16  ;;  %v9506_v45 = vld [vmem:[#allocation9 + $0xa6c] ss:$16 sps:$4 sm:$0xff]  }
 0x59d   :  { %6642 = vmatprep.subr.bf16.mxu0 %v9461_v20  ;;  %6748 = vmatprep.subr.bf16.mxu1 %v9464_v33  ;;  %v9501_v20 = vld [vmem:[#allocation9 + $0xa60] ss:$16 sps:$4 sm:$0xff]   ;;  %v9504_v33 = vld [vmem:[#allocation9 + $0xa68] ss:$16 sps:$4 sm:$0xff]  }
 0x5a0   :  { %6643 = vmatpush1.bf16.msra.mxu0 %v9459_v36  ;;  %6749 = vmatpush1.bf16.msra.mxu1 %v9462_v55  ;;  %v9509_v36 = vld [vmem:[#allocation9 + $0xa84] ss:$16 sps:$4 sm:$0xff]   ;;  %v9512_v55 = vld [vmem:[#allocation9 + $0xa8c] ss:$16 sps:$4 sm:$0xff]  }
 0x5a1   :  { %6644 = vmatprep.subr.bf16.mxu0 %v9467_v43  ;;  %6750 = vmatprep.subr.bf16.mxu1 %v9470_v44  ;;  %v9507_v43 = vld [vmem:[#allocation9 + $0xa80] ss:$16 sps:$4 sm:$0xff]   ;;  %v9510_v44 = vld [vmem:[#allocation9 + $0xa88] ss:$16 sps:$4 sm:$0xff]  }
 0x5a4   :  { %6645 = vmatpush1.bf16.msra.mxu0 %v9465_v46  ;;  %6751 = vmatpush1.bf16.msra.mxu1 %v9468_v39  ;;  %v9515_v46 = vld [vmem:[#allocation9 + $0xaa4] ss:$16 sps:$4 sm:$0xff]   ;;  %v9518_v39 = vld [vmem:[#allocation9 + $0xaac] ss:$16 sps:$4 sm:$0xff]  }
 0x5a5   :  { %6646 = vmatprep.subr.bf16.mxu0 %v9473_v49  ;;  %6752 = vmatprep.subr.bf16.mxu1 %v9476_v24  ;;  %v9516_v49 = vld [vmem:[#allocation9 + $0xaa8] ss:$16 sps:$4 sm:$0xff]   ;;  %v9521_v24 = vld [vmem:[#allocation9 + $0xac4] ss:$16 sps:$4 sm:$0xff]  }
 0x5a8   :  { %6647 = vmatpush1.bf16.msra.mxu0 %v9471_v22  ;;  %6753 = vmatpush1.bf16.msra.mxu1 %v9474_v15  ;;  %v9519_v22 = vld [vmem:[#allocation9 + $0xac0] ss:$16 sps:$4 sm:$0xff]   ;;  %v9522_v15 = vld [vmem:[#allocation9 + $0xac8] ss:$16 sps:$4 sm:$0xff]  }
 0x5a9   :  { %6648 = vmatprep.subr.bf16.mxu0 %v9479_v23  ;;  %6754 = vmatprep.subr.bf16.mxu1 %v9482_v59  ;;  %v9527_v23 = vld [vmem:[#allocation9 + $0xae4] ss:$16 sps:$4 sm:$0xff]   ;;  %v9530_v59 = vld [vmem:[#allocation9 + $0xaec] ss:$16 sps:$4 sm:$0xff]  }
 0x5ac   :  { %6649 = vmatpush1.bf16.msra.mxu0 %v9477_v38  ;;  %6755 = vmatpush1.bf16.msra.mxu1 %v9480_v18  ;;  %v9533_v38 = vld [vmem:[#allocation9 + $0xb04] ss:$16 sps:$4 sm:$0xff]   ;;  %v9536_v18 = vld [vmem:[#allocation9 + $0xb0c] ss:$16 sps:$4 sm:$0xff]  }
 0x5ad   :  { %6671 = vmatprep.subr.bf16.mxu0 %v9485_v25  ;;  %6777 = vmatprep.subr.bf16.mxu1 %v9488_v2  ;;  %v9531_v25 = vld [vmem:[#allocation9 + $0xb00] ss:$16 sps:$4 sm:$0xff]   ;;  %v9534_v2 = vld [vmem:[#allocation9 + $0xb08] ss:$16 sps:$4 sm:$0xff]  }
 0x5af   :  { %6651 = vmatmul.mubr.bf16.vlgmr.msra.gmra.mrb[8].mxu0 %v10645_v40  ;;  %6757 = vmatmul.mubr.bf16.vlgmr.msra.gmra.mrb[8].mxu1 %v10645_v40  ;;  %v3787_v40 = vmul.f32 %v3779_v35, %v10229_v28  ;;  %v9549_v35 = vld [vmem:[#allocation9 + $0xb60] ss:$16 sps:$4 sm:$0xff]  }
 0x5b0   :  { %6672 = vmatpush1.bf16.msra.mxu0 %v9483_v1  ;;  %6778 = vmatpush1.bf16.msra.mxu1 %v9486_v4  ;;  %v9545_v1 = vld [vmem:[#allocation9 + $0xb44] ss:$16 sps:$4 sm:$0xff]   ;;  %v9548_v4 = vld [vmem:[#allocation9 + $0xb4c] ss:$16 sps:$4 sm:$0xff]  }
 0x5b1   :  { %6673 = vmatprep.subr.bf16.mxu0 %v9491_v54  ;;  %6779 = vmatprep.subr.bf16.mxu1 %v9494_v7  ;;  %v3803_v16 = vpack.c.bf16 %v3791_v17, %v3787_v40  ;;  %v9543_v54 = vld [vmem:[#allocation9 + $0xb40] ss:$16 sps:$4 sm:$0xff]   ;;  %v9546_v7 = vld [vmem:[#allocation9 + $0xb48] ss:$16 sps:$4 sm:$0xff]   ;;  %v9563_v17 = vld [vmem:[#allocation9 + $0xba4] ss:$16 sps:$4 sm:$0xff]  }
 0x5b2   :  { %6660 = vmatprep.mubr.bf16.mxu0 %v3805_v52  ;;  %6766 = vmatprep.mubr.bf16.mxu1 %v3805_v52  ;;  %v9551_v52 = vld [vmem:[#allocation9 + $0xb64] ss:$16 sps:$4 sm:$0xff]   ;;  %v9558_v40 = vld [vmem:[#allocation9 + $0xb88] ss:$16 sps:$4 sm:$0xff]  }
 0x5b4   :  { %6674 = vmatpush1.bf16.msra.mxu0 %v9489_v34  ;;  %6780 = vmatpush1.bf16.msra.mxu1 %v9492_v53  ;;  %v9552_v34 = vld [vmem:[#allocation9 + $0xb68] ss:$16 sps:$4 sm:$0xff]   ;;  %v9557_v53 = vld [vmem:[#allocation9 + $0xb84] ss:$16 sps:$4 sm:$0xff]  }
 0x5b5   :  { %6675 = vmatprep.subr.bf16.mxu0 %v9497_v10  ;;  %6781 = vmatprep.subr.bf16.mxu1 %v9500_v27  ;;  %v9560_v10 = vld [vmem:[#allocation9 + $0xb8c] ss:$16 sps:$4 sm:$0xff]   ;;  %v9555_v27 = vld [vmem:[#allocation9 + $0xb80] ss:$16 sps:$4 sm:$0xff]  }
 0x5b7   :  { %6661 = vmatmul.mubr.bf16.gmra.mrb[12].mxu0 %v10666_v14  ;;  %6767 = vmatmul.mubr.bf16.gmra.mrb[12].mxu1 %v10666_v14  ;;  %v9513_v14 = vld [vmem:[#allocation9 + $0xaa0] ss:$16 sps:$4 sm:$0xff]  }
 0x5b8   :  { %6676 = vmatpush1.bf16.msra.mxu0 %v9495_v11  ;;  %6782 = vmatpush1.bf16.msra.mxu1 %v9498_v3  ;;  %v9566_v11 = vld [vmem:[#allocation9 + $0xbac] ss:$16 sps:$4 sm:$0xff]   ;;  %v3762_v3 = vrot.slane %v10696_v31, 1 }
 0x5b9   :  { %6677 = vmatprep.subr.bf16.mxu0 %v9503_v13  ;;  %6783 = vmatprep.subr.bf16.mxu1 %v9506_v45  ;;  %v9561_v13 = vld [vmem:[#allocation9 + $0xba0] ss:$16 sps:$4 sm:$0xff]   ;;  %v9564_v45 = vld [vmem:[#allocation9 + $0xba8] ss:$16 sps:$4 sm:$0xff]  }
 0x5ba   :  { %6703 = vmatprep.mubr.bf16.mxu0 %v3803_v16  ;;  %6809 = vmatprep.mubr.bf16.mxu1 %v3803_v16  ;;  %v3754_v16 = vrot.slane %v10668_v61, 1  ;;  %v9575_v61 = vld [vmem:[#allocation9 + $0xbe4] ss:$16 sps:$4 sm:$0xff]  }
 0x5bc   :  { %6678 = vmatpush1.bf16.msra.mxu0 %v9501_v20  ;;  %6784 = vmatpush1.bf16.msra.mxu1 %v9504_v33  ;;  %v3758_v20 = vrot.slane %v10670_v6, 1  ;;  %v9569_v33 = vld [vmem:[#allocation9 + $0xbc4] ss:$16 sps:$4 sm:$0xff]   ;;  %v9578_v6 = vld [vmem:[#allocation9 + $0xbec] ss:$16 sps:$4 sm:$0xff]  }
 0x5bd   :  { %6679 = vmatprep.subr.bf16.mxu0 %v9509_v36  ;;  %6785 = vmatprep.subr.bf16.mxu1 %v9512_v55  ;;  %v9572_v36 = vld [vmem:[#allocation9 + $0xbcc] ss:$16 sps:$4 sm:$0xff]   ;;  %v3767_v55 = vrot.slane %v10680_v58, 1 }
 0x5be   :  { %v3774_v31 = vsel %vm247_vm1, %v3758_v20, %v3762_v3 }
 0x5bf   :  { %v3783_v58 = vsel %vm247_vm1, %v3767_v55, %v3755_v29 }
 0x5c0   :  { %6680 = vmatpush1.bf16.msra.mxu0 %v9507_v43  ;;  %6786 = vmatpush1.bf16.msra.mxu1 %v9510_v44  ;;  %v9567_v43 = vld [vmem:[#allocation9 + $0xbc0] ss:$16 sps:$4 sm:$0xff]   ;;  %v9570_v44 = vld [vmem:[#allocation9 + $0xbc8] ss:$16 sps:$4 sm:$0xff]   ;;  %v3799_v47 = vmul.f32 %v3783_v58, %v10255_v56 }
 0x5c1   :  { %6681 = vmatprep.subr.bf16.mxu0 %v9515_v46  ;;  %6787 = vmatprep.subr.bf16.mxu1 %v9518_v39  ;;  %v3778_v46 = vsel %vm247_vm1, %v3754_v16, %v3758_v20  ;;  %v3771_v39 = vsel %vm247_vm1, %v3763_v9, %v3767_v55 }
 0x5c4   :  { %6682 = vmatpush1.bf16.msra.mxu0 %v9513_v14  ;;  %6788 = vmatpush1.bf16.msra.mxu1 %v9516_v49  ;;  %v3786_v14 = vmul.f32 %v3778_v46, %v10229_v28  ;;  %v3790_v49 = vmul.f32 %v3774_v31, %v10226_v26 }
 0x5c5   :  { %6683 = vmatprep.subr.bf16.mxu0 %v9521_v24  ;;  %6789 = vmatprep.subr.bf16.mxu1 %v9524_v50  ;;  %v9573_v24 = vld [vmem:[#allocation9 + $0xbe0] ss:$16 sps:$4 sm:$0xff]   ;;  %v9576_v50 = vld [vmem:[#allocation9 + $0xbe8] ss:$16 sps:$4 sm:$0xff]  }
 0x5c6   :  { %v3802_v0 = vpack.c.bf16 %v3790_v49, %v3786_v14 }
 0x5c8   :  { %6684 = vmatpush1.bf16.msra.mxu0 %v9519_v22  ;;  %6790 = vmatpush1.bf16.msra.mxu1 %v9522_v15  ;;  %v3795_v22 = vmul.f32 %v3771_v39, %v10257_v57  ;;  %v3766_v15 = vrot.slane %v10694_v21, 1 }
 0x5c9   :  { %6685 = vmatprep.subr.bf16.mxu0 %v9527_v23  ;;  %6791 = vmatprep.subr.bf16.mxu1 %v9530_v59 }
 0x5ca   :  { %v3807_v29 = vpack.c.bf16 %v3799_v47, %v3795_v22  ;;  %v3770_v28 = vsel %vm247_vm1, %v3762_v3, %v3766_v15  ;;  %v3782_v26 = vsel %vm247_vm1, %v3766_v15, %v3754_v16 }
 0x5cb   :  { %v3794_v9 = vmul.f32 %v3770_v28, %v10257_v57  ;;  %v3798_v23 = vmul.f32 %v3782_v26, %v10255_v56 }
 0x5cc   :  { %6686 = vmatpush1.bf16.msra.mxu0 %v9525_v62  ;;  %6792 = vmatpush1.bf16.msra.mxu1 %v9528_v37 }
 0x5cd   :  { %6687 = vmatprep.subr.bf16.mxu0 %v9533_v38  ;;  %6793 = vmatprep.subr.bf16.mxu1 %v9536_v18  ;;  %v3806_v21 = vpack.c.bf16 %v3798_v23, %v3794_v9 }
 0x5d0   :  { %6688 = vmatpush1.bf16.msra.mxu0 %v9531_v25  ;;  %6794 = vmatpush1.bf16.msra.mxu1 %v9534_v2 }
 0x5d1   :  { %6689 = vmatprep.subr.bf16.mxu0 %v9539_v63  ;;  %6795 = vmatprep.subr.bf16.mxu1 %v9542_v30 }
 0x5d4   :  { %6690 = vmatpush1.bf16.msra.mxu0 %v9537_v8  ;;  %6796 = vmatpush1.bf16.msra.mxu1 %v9540_v60 }
 0x5d5   :  { %6691 = vmatprep.subr.bf16.mxu0 %v9545_v1  ;;  %6797 = vmatprep.subr.bf16.mxu1 %v9548_v4 }
 0x5d8   :  { %6692 = vmatpush1.bf16.msra.mxu0 %v9543_v54  ;;  %6798 = vmatpush1.bf16.msra.mxu1 %v9546_v7  ;;  %v10758_v54 = vmov 0.0   ;;  %v10760_v7 = vmov 0.0  }
 0x5d9   :  { %6693 = vmatprep.subr.bf16.mxu0 %v9551_v52  ;;  %6799 = vmatprep.subr.bf16.mxu1 %v9554_v19  ;;  %v10762_v52 = vmov 0.0   ;;  %v10764_v19 = vmov 0.0  }
 0x5dc   :  { %6694 = vmatpush1.bf16.msra.mxu0 %v9549_v35  ;;  %6800 = vmatpush1.bf16.msra.mxu1 %v9552_v34  ;;  %v10766_v35 = vmov 0.0   ;;  %v10768_v34 = vmov 0.0  }
 0x5dd   :  { %6695 = vmatprep.subr.bf16.mxu0 %v9557_v53  ;;  %6801 = vmatprep.subr.bf16.mxu1 %v9560_v10  ;;  %v10770_v53 = vmov 0.0   ;;  %v10772_v10 = vmov 0.0  }
 0x5e0   :  { %6696 = vmatpush1.bf16.msra.mxu0 %v9555_v27  ;;  %6802 = vmatpush1.bf16.msra.mxu1 %v9558_v40 }
 0x5e1   :  { %6697 = vmatprep.subr.bf16.mxu0 %v9563_v17  ;;  %6803 = vmatprep.subr.bf16.mxu1 %v9566_v11 }
 0x5e4   :  { %6698 = vmatpush1.bf16.msra.mxu0 %v9561_v13  ;;  %6804 = vmatpush1.bf16.msra.mxu1 %v9564_v45 }
 0x5e5   :  { %6699 = vmatprep.subr.bf16.mxu0 %v9569_v33  ;;  %6805 = vmatprep.subr.bf16.mxu1 %v9572_v36 }
 0x5e8   :  { %6700 = vmatpush1.bf16.msra.mxu0 %v9567_v43  ;;  %6806 = vmatpush1.bf16.msra.mxu1 %v9570_v44 }
 0x5e9   :  { %6701 = vmatprep.subr.bf16.mxu0 %v9575_v61  ;;  %6807 = vmatprep.subr.bf16.mxu1 %v9578_v6 }
 0x5ec   :  { %6702 = vmatpush1.bf16.msra.mxu0 %v9573_v24  ;;  %6808 = vmatpush1.bf16.msra.mxu1 %v9576_v50 }
 0x5ef   :  { %6704 = vmatmul.mubr.bf16.vlgmr.msra.gmra.mrb[8].mxu0 %v3802_v0  ;;  %6810 = vmatmul.mubr.bf16.vlgmr.msra.gmra.mrb[8].mxu1 %v3802_v0 }
 0x5f0   :  { %6713 = vmatprep.mubr.bf16.mxu0 %v3807_v29  ;;  %6819 = vmatprep.mubr.bf16.mxu1 %v3807_v29 }
 0x5f7   :  { %6714 = vmatmul.mubr.bf16.gmra.mrb[12].mxu0 %v3806_v21  ;;  %6820 = vmatmul.mubr.bf16.gmra.mrb[12].mxu1 %v3806_v21 }
 0x6c2   :  { %v6705_v59 = vpop.f32.mrb[8].mxu0  ;;  %v6811_v62 = vpop.f32.mrb[8].mxu1 }
 0x6c3   :  { %6846 = vst [vmem:[#allocation3] sm:$0xff] %v6705_v59  ;;  %6848 = vst [vmem:[#allocation3 + $0x10] sm:$0xff] %v6811_v62  ;;  %v6707_v37 = vpop.f32.mrb[9].mxu0  ;;  %v6813_v38 = vpop.f32.mrb[9].mxu1 }
 0x6c4   :  { %6847 = vst [vmem:[#allocation3 + $0x8] sm:$0xff] %v6707_v37  ;;  %6849 = vst [vmem:[#allocation3 + $0x18] sm:$0xff] %v6813_v38  ;;  %v6709_v12 = vpop.f32.mrb[10].mxu0  ;;  %v6815_v18 = vpop.f32.mrb[10].mxu1 }
 0x6c5   :  { %6850 = vst [vmem:[#allocation3 + $0x20] sm:$0xff] %v6709_v12  ;;  %6852 = vst [vmem:[#allocation3 + $0x30] sm:$0xff] %v6815_v18  ;;  %v6711_v57 = vpop.f32.mrb[11].mxu0  ;;  %v6817_v25 = vpop.f32.mrb[11].mxu1 }
 0x6c6   :  { %6851 = vst [vmem:[#allocation3 + $0x28] sm:$0xff] %v6711_v57  ;;  %6853 = vst [vmem:[#allocation3 + $0x38] sm:$0xff] %v6817_v25 }
 0x6ca   :  { %v6715_v56 = vpop.f32.mrb[12].mxu0  ;;  %v6821_v2 = vpop.f32.mrb[12].mxu1 }
 0x6cb   :  { %6854 = vst [vmem:[#allocation3 + $0x40] sm:$0xff] %v6715_v56  ;;  %6856 = vst [vmem:[#allocation3 + $0x50] sm:$0xff] %v6821_v2  ;;  %v6717_v63 = vpop.f32.mrb[13].mxu0  ;;  %v6823_v30 = vpop.f32.mrb[13].mxu1 }
 0x6cc   :  { %6855 = vst [vmem:[#allocation3 + $0x48] sm:$0xff] %v6717_v63  ;;  %6857 = vst [vmem:[#allocation3 + $0x58] sm:$0xff] %v6823_v30  ;;  %v6719_v8 = vpop.f32.mrb[14].mxu0  ;;  %v6825_v60 = vpop.f32.mrb[14].mxu1 }
 0x6cd   :  { %6858 = vst [vmem:[#allocation3 + $0x60] sm:$0xff] %v6719_v8  ;;  %6860 = vst [vmem:[#allocation3 + $0x70] sm:$0xff] %v6825_v60  ;;  %v6721_v1 = vpop.f32.mrb[15].mxu0  ;;  %v6827_v4 = vpop.f32.mrb[15].mxu1 }
 0x6ce   :  { %6859 = vst [vmem:[#allocation3 + $0x68] sm:$0xff] %v6721_v1  ;;  %6861 = vst [vmem:[#allocation3 + $0x78] sm:$0xff] %v6827_v4 }
 0x6cf LB: > { %s8055_s28 = sshll.u32 %s9938_s0, 3  ;;  %s6867_s0 = sadd.s32 1, %s9938_s0   ;;  %s9938_s0 = sphi %s10774_s0, %s6867_s0   ;;  %v9934_v10 = vphi %v10772_v10, %v10932_v10   ;;  %v9930_v53 = vphi %v10770_v53, %v10931_v53   ;;  %v9926_v34 = vphi %v10768_v34, %v10930_v34   ;;  %v9922_v35 = vphi %v10766_v35, %v10929_v35   ;;  %v9918_v19 = vphi %v10764_v19, %v10928_v19   ;;  %v9914_v52 = vphi %v10762_v52, %v10927_v52   ;;  %v9910_v7 = vphi %v10760_v7, %v10926_v7   ;;  %v9906_v54 = vphi %v10758_v54, %v10925_v54  }
 0x6d0   : > { %s6877_s11 = sshra.s32 %s8055_s28, 3  ;;  %p6864_p2 = scmp.ge.s32.totalorder %s6867_s0, 4  }
 0x6d1   : > { %s8066_s12 = sshll.u32 %s6877_s11, 5  ;;  %s10879_s13 = smov (%p6864_p2), 0  }
 0x6d2   : > { %s6881_s6 = scalar_lea.vmem [#allocation3], %s8066_s12 }
 0x6d5   : > { %v6882_v27 = vld [vmem:[%s6881_s6] sm:$0xff]  ;;  %v6883_v40 = vld [vmem:[%s6881_s6 + $0x8] sm:$0xff]  ;;  %v6884_v17 = vld [vmem:[%s6881_s6 + $0x10] sm:$0xff] }
 0x6d6   : > { %v6885_v11 = vld [vmem:[%s6881_s6 + $0x18] sm:$0xff]  ;;  %v6886_v3 = vrot.slane %v6882_v27, 4  ;;  %v6892_v13 = vrot.slane %v6883_v40, 4  ;;  %v6898_v45 = vrot.slane %v6884_v17, 4  ;;  %v6914_v16 = vmul.f32 %v6882_v27, %v6882_v27 }
 0x6d7   : > { %v6904_v20 = vrot.slane %v6885_v11, 4  ;;  %v6915_v33 = vmul.f32 %v6883_v40, %v6883_v40  ;;  %v6916_v36 = vmul.f32 %v6884_v17, %v6884_v17  ;;  %v6917_v55 = vmul.f32 %v6885_v11, %v6885_v11 }
 0x6d8   : > { %v6887_v43 = vadd.f32 %v6886_v3, %v6882_v27  ;;  %v6893_v44 = vadd.f32 %v6892_v13, %v6883_v40  ;;  %v6899_v31 = vadd.f32 %v6898_v45, %v6884_v17  ;;  %v6918_v46 = vrot.slane %v6914_v16, 4 }
 0x6d9   : > { %v6905_v61 = vadd.f32 %v6904_v20, %v6885_v11  ;;  %v6924_v6 = vrot.slane %v6915_v33, 4  ;;  %v6930_v39 = vrot.slane %v6916_v36, 4  ;;  %v6936_v58 = vrot.slane %v6917_v55, 4 }
 0x6da   : > { %v6888_v14 = vrot.slane %v6887_v43, 2  ;;  %v6894_v49 = vrot.slane %v6893_v44, 2  ;;  %v6900_v24 = vrot.slane %v6899_v31, 2  ;;  %v6919_v50 = vadd.f32 %v6918_v46, %v6914_v16 }
 0x6db   : > { %v6906_v22 = vrot.slane %v6905_v61, 2  ;;  %v6925_v47 = vadd.f32 %v6924_v6, %v6915_v33  ;;  %v6931_v15 = vadd.f32 %v6930_v39, %v6916_v36  ;;  %v6937_v0 = vadd.f32 %v6936_v58, %v6917_v55 }
 0x6dc   : > { %v6889_v29 = vadd.f32 %v6888_v14, %v6887_v43  ;;  %v6895_v28 = vadd.f32 %v6894_v49, %v6893_v44  ;;  %v6901_v26 = vadd.f32 %v6900_v24, %v6899_v31  ;;  %v6920_v9 = vrot.slane %v6919_v50, 2 }
 0x6dd   : > { %v6907_v23 = vadd.f32 %v6906_v22, %v6905_v61  ;;  %v6926_v21 = vrot.slane %v6925_v47, 2  ;;  %v6932_v59 = vrot.slane %v6931_v15, 2  ;;  %v6938_v62 = vrot.slane %v6937_v0, 2 }
 0x6de   : > { %v6890_v37 = vrot.slane %v6889_v29, 1  ;;  %v6896_v38 = vrot.slane %v6895_v28, 1  ;;  %v6902_v12 = vrot.slane %v6901_v26, 1  ;;  %v6921_v18 = vadd.f32 %v6920_v9, %v6919_v50 }
 0x6df   : > { %v6908_v57 = vrot.slane %v6907_v23, 1  ;;  %v6927_v25 = vadd.f32 %v6926_v21, %v6925_v47  ;;  %v6933_v56 = vadd.f32 %v6932_v59, %v6931_v15  ;;  %v6939_v2 = vadd.f32 %v6938_v62, %v6937_v0 }
 0x6e0   : > { %v6891_v63 = vadd.f32 %v6890_v37, %v6889_v29  ;;  %v6897_v30 = vadd.f32 %v6896_v38, %v6895_v28  ;;  %v6903_v8 = vadd.f32 %v6902_v12, %v6901_v26  ;;  %v6922_v60 = vrot.slane %v6921_v18, 1 }
 0x6e1   : > { %v6909_v1 = vadd.f32 %v6908_v57, %v6907_v23  ;;  %v6928_v4 = vrot.slane %v6927_v25, 1  ;;  %v6934_v27 = vrot.slane %v6933_v56, 1  ;;  %v6940_v40 = vrot.slane %v6939_v2, 1  ;;  %6866 = sbr.rel (!%p6864_p2) target bundleno = 1743 (0x6cf), region = 145 }
 0x6e2   : > { %v6910_v17 = vadd.f32 %v9934_v10, %v6891_v63   ;;  %v6911_v11 = vadd.f32 %v9930_v53, %v6897_v30   ;;  %v6912_v3 = vadd.f32 %v9926_v34, %v6903_v8   ;;  %v6923_v13 = vadd.f32 %v6922_v60, %v6921_v18 }
 0x6e3   : > { %v6913_v45 = vadd.f32 %v9922_v35, %v6909_v1   ;;  %v6929_v16 = vadd.f32 %v6928_v4, %v6927_v25  ;;  %v6935_v20 = vadd.f32 %v6934_v27, %v6933_v56  ;;  %v6941_v33 = vadd.f32 %v6940_v40, %v6939_v2 }
 0x6e4   : > { %v6942_v36 = vadd.f32 %v9918_v19, %v6923_v13   ;;  %v10930_v34 = vmov %v6912_v3  ;;  %v10931_v53 = vmov %v6911_v11  ;;  %v10932_v10 = vmov %v6910_v17  ;;  %6950 = vrot.lane.b32.xlu1 (%p6864_p2), %v6912_v3, %s9951_s26  ;;  %6946 = vrot.lane.b32.xlu0 (%p6864_p2), %v6910_v17, %s9951_s26 }
 0x6e5   : > { %v6943_v55 = vadd.f32 %v9914_v52, %v6929_v16   ;;  %v6944_v43 = vadd.f32 %v9910_v7, %v6935_v20   ;;  %v6945_v44 = vadd.f32 %v9906_v54, %v6941_v33   ;;  %v10929_v35 = vmov %v6913_v45 }
 0x6e6   : > { %v10928_v19 = vmov %v6942_v36 }
 0x6e7   : > { %v10925_v54 = vmov %v6945_v44  ;;  %v10926_v7 = vmov %v6944_v43  ;;  %v10927_v52 = vmov %v6943_v55 }
 0x6e8   :  { %6952 = vrot.lane.b32.xlu1 %v6913_v45, %s9951_s26  ;;  %6948 = vrot.lane.b32.xlu0 %v6911_v11, %s9951_s26 }
 0x6ec   :  { %6988 = vrot.lane.b32.xlu1 %v6943_v55, %s9951_s26  ;;  %6986 = vrot.lane.b32.xlu0 %v6942_v36, %s9951_s26 }
 0x6f0   :  { %6992 = vrot.lane.b32.xlu1 %v6945_v44, %s9951_s26  ;;  %6990 = vrot.lane.b32.xlu0 %v6944_v43, %s9951_s26 }
 0x756   :  { %v6951_v10 = vpop.permute.xlu1 %6950  ;;  %v6947_v31 = vpop.permute.xlu0 %6946 }
 0x75a   :  { %v6953_v46 = vpop.permute.xlu1 %6952  ;;  %v6949_v61 = vpop.permute.xlu0 %6948 }
 0x75b   :  { %v6957_v54 = vsel %vm3456_vm2, %v6953_v46, %v6947_v31  ;;  %v6956_v7 = vsel %vm3456_vm2, %v6947_v31, %v6949_v61  ;;  %v6954_v35 = vsel %vm3456_vm2, %v6951_v10, %v6953_v46  ;;  %v6955_v34 = vsel %vm3456_vm2, %v6949_v61, %v6951_v10 }
 0x75c   :  { %v6958_v52 = vadd.f32 %v6957_v54, %v6910_v17  ;;  %v6959_v19 = vadd.f32 %v6956_v7, %v6911_v11  ;;  %v6961_v39 = vadd.f32 %v6954_v35, %v6913_v45  ;;  %v6960_v58 = vadd.f32 %v6955_v34, %v6912_v3 }
 0x75e   :  { %v6989_v53 = vpop.permute.xlu1 %6988  ;;  %6962 = vrot.lane.b32.xlu0 %v6958_v52, %s9956_s3  ;;  %6964 = vrot.lane.b32.xlu1 %v6959_v19, %s9956_s3  ;;  %v6987_v6 = vpop.permute.xlu0 %6986 }
 0x75f   :  { %v6996_v14 = vsel %vm3456_vm2, %v6987_v6, %v6989_v53 }
 0x760   :  { %v6999_v47 = vadd.f32 %v6996_v14, %v6943_v55 }
 0x762   :  { %v6993_v49 = vpop.permute.xlu1 %6992  ;;  %6968 = vrot.lane.b32.xlu1 %v6961_v39, %s9956_s3  ;;  %6966 = vrot.lane.b32.xlu0 %v6960_v58, %s9956_s3  ;;  %v6991_v24 = vpop.permute.xlu0 %6990 }
 0x763   :  { %v6997_v50 = vsel %vm3456_vm2, %v6993_v49, %v6987_v6  ;;  %v6995_v15 = vsel %vm3456_vm2, %v6989_v53, %v6991_v24  ;;  %v6994_v0 = vsel %vm3456_vm2, %v6991_v24, %v6993_v49 }
 0x764   :  { %v6998_v22 = vadd.f32 %v6997_v50, %v6942_v36  ;;  %v7000_v29 = vadd.f32 %v6995_v15, %v6944_v43  ;;  %v7001_v28 = vadd.f32 %v6994_v0, %v6945_v44 }
 0x766   :  { %7002 = vrot.lane.b32.xlu0 %v6998_v22, %s9956_s3  ;;  %7004 = vrot.lane.b32.xlu1 %v6999_v47, %s9956_s3 }
 0x76a   :  { %7006 = vrot.lane.b32.xlu0 %v7000_v29, %s9956_s3  ;;  %7008 = vrot.lane.b32.xlu1 %v7001_v28, %s9956_s3 }
 0x7d0   :  { %v6965_v26 = vpop.permute.xlu1 %6964  ;;  %v6963_v9 = vpop.permute.xlu0 %6962 }
 0x7d1   :  { %v6972_v23 = vsel %vm3473_vm3, %v6963_v9, %v6965_v26 }
 0x7d2   :  { %v6975_v12 = vadd.f32 %v6972_v23, %v6959_v19 }
 0x7d4   :  { %v6969_v21 = vpop.permute.xlu1 %6968  ;;  %v6967_v59 = vpop.permute.xlu0 %6966 }
 0x7d5   :  { %v6973_v62 = vsel %vm3473_vm3, %v6969_v21, %v6963_v9  ;;  %v6970_v37 = vsel %vm3473_vm3, %v6967_v59, %v6969_v21  ;;  %v6971_v38 = vsel %vm3473_vm3, %v6965_v26, %v6967_v59 }
 0x7d6   :  { %v6974_v18 = vadd.f32 %v6973_v62, %v6958_v52  ;;  %v6976_v57 = vadd.f32 %v6971_v38, %v6960_v58  ;;  %v6977_v25 = vadd.f32 %v6970_v37, %v6961_v39 }
 0x7d8   :  { %v6978_v56 = vadd.f32 %v6977_v25, %v6974_v18  ;;  %v6980_v2 = vadd.f32 %v6976_v57, %v6975_v12  ;;  %v7005_v63 = vpop.permute.xlu1 %7004  ;;  %v7003_v30 = vpop.permute.xlu0 %7002  ;;  %v6979_v8 = vadd.f32 %v6975_v12, %v6974_v18  ;;  %v6981_v60 = vadd.f32 %v6977_v25, %v6976_v57  ;;  %v7057_v57 = vld [vmem:[#allocation15] sm:$0xf] }
 0x7d9   :  { %v7012_v1 = vsel %vm3473_vm3, %v7003_v30, %v7005_v63 }
 0x7da   :  { %v6982_v4 = vadd.f32 %v6980_v2, %v6978_v56  ;;  %v6983_v17 = vadd.f32 %v6981_v60, %v6979_v8  ;;  %v7015_v45 = vadd.f32 %v7012_v1, %v6999_v47 }
 0x7dc   :  { %v7009_v27 = vpop.permute.xlu1 %7008  ;;  %v7007_v40 = vpop.permute.xlu0 %7006  ;;  %v6984_v43 = vmul.f32 0.001953125, %v6982_v4  ;;  %v6985_v44 = vmul.f32 0.001953125, %v6983_v17 }
 0x7dd   :  { %v7013_v11 = vsel %vm3473_vm3, %v7009_v27, %v7003_v30  ;;  %v7010_v3 = vsel %vm3473_vm3, %v7007_v40, %v7009_v27  ;;  %v7011_v13 = vsel %vm3473_vm3, %v7005_v63, %v7007_v40 }
 0x7de   :  { %v7014_v16 = vadd.f32 %v7013_v11, %v6998_v22  ;;  %v7016_v20 = vadd.f32 %v7011_v13, %v7000_v29  ;;  %v7017_v33 = vadd.f32 %v7010_v3, %v7001_v28  ;;  %v7026_v54 = vmul.f32 %v6984_v43, %v6984_v43  ;;  %v7032_v22 = vld [vmem:[#allocation13] sm:$0xf] }
 0x7df   :  { %v7027_v7 = vmul.f32 %v6985_v44, %v6985_v44 }
 0x7e0   :  { %v7019_v36 = vadd.f32 %v7015_v45, %v7014_v16  ;;  %v7020_v55 = vadd.f32 %v7016_v20, %v7015_v45  ;;  %v7018_v10 = vadd.f32 %v7017_v33, %v7014_v16  ;;  %v7021_v31 = vadd.f32 %v7017_v33, %v7016_v20 }
 0x7e2   :  { %v7022_v46 = vadd.f32 %v7020_v55, %v7018_v10  ;;  %v7023_v61 = vadd.f32 %v7021_v31, %v7019_v36 }
 0x7e4   :  { %v7024_v52 = vmul.f32 0.001953125, %v7022_v46  ;;  %v7025_v19 = vmul.f32 0.001953125, %v7023_v61 }
 0x7e6   :  { %v7028_v35 = vsub.f32 %v7024_v52, %v7026_v54  ;;  %v7029_v34 = vsub.f32 %v7025_v19, %v7027_v7 }
 0x7e8   :  { %v7030_v51 = vmax.f32 %v7028_v35, 0.0  ;;  %v7031_v53 = vmax.f32 %v7029_v34, 0.0 }
 0x7ea   :  { %v7033_v6 = vadd.f32 1e-05, %v7030_v51  ;;  %v7034_v39 = vadd.f32 1e-05, %v7031_v53 }
 0x7ec   :  { %9594 = vrsqrt.f32 %v7033_v6 }
 0x7ed   :  { %9596 = vrsqrt.f32 %v7034_v39 }
 0x7f6   :  { %v9595_v58 = vpop.eup %9594 }
 0x7f7   :  { %v9597_v14 = vpop.eup %9596 }
 0x7f8   :  { %v7039_v49 = vcombine.low %v9595_v58, %v9597_v14 }
 0x7fa   :  { %v7046_v24 = vrot.slane %v7039_v49, %v10478_v32 }
 0x7fc   :  { %v7047_v50 = vcombine.low %v7046_v24, %v7046_v24 }
 0x7fe   :  { %v7054_v47 = vrot.slane %v7047_v50, %v10478_v32 }
 0x800   :  { %v7056_v15 = vmul.f32 %v7054_v47, %v7032_v22 }
 0x802   :  { %v7062_v0 = vrot.slane %v7056_v15, %v10482_v5  ;;  %v7066_v29 = vrot.slane %v7056_v15, %v10485_v41  ;;  %v7070_v28 = vrot.slane %v7056_v15, %v10488_v48  ;;  %v7074_v26 = vrot.slane %v7056_v15, %v10491_v42 }
 0x804   :  { %v7079_v9 = vmul.f32 %v7062_v0, %v6984_v43  ;;  %v7080_v23 = vmul.f32 %v7066_v29, %v6985_v44  ;;  %v7081_v21 = vmul.f32 %v7070_v28, %v6984_v43  ;;  %v7082_v59 = vmul.f32 %v7074_v26, %v6985_v44 }
 0x806   :  { %v7087_v62 = vcombine.low %v7079_v9, %v7080_v23  ;;  %v7088_v37 = vcombine.low %v7081_v21, %v7082_v59 }
 0x808   :  { %v7095_v38 = vrot.slane %v7087_v62, %v10478_v32  ;;  %v7102_v12 = vrot.slane %v7088_v37, %v10478_v32 }
 0x80a   :  { %v7103_v18 = vcombine.low %v7095_v38, %v7102_v12 }
 0x80c   :  { %v7110_v25 = vrot.slane %v7103_v18, %v10478_v32 }
 0x80e   :  { %v7112_v56 = vsub.f32 %v7057_v57, %v7110_v25 }
 0x80f LB: > { %s8058_s1 = sshll.u32 %s9942_s13, 3  ;;  %s7118_s13 = sadd.s32 1, %s9942_s13   ;;  %s9942_s13 = sphi %s10879_s13, %s7118_s13  }
 0x810   : > { %s7120_s10 = sshra.s32 %s8058_s1, 3  ;;  %v7143_v2 = vrot.slane %v7112_v56, %v10482_v5  ;;  %v7147_v63 = vrot.slane %v7112_v56, %v10485_v41  ;;  %v7151_v32 = vrot.slane %v7112_v56, %v10488_v48  ;;  %v7155_v27 = vrot.slane %v7112_v56, %v10491_v42  ;;  %p7115_p3 = scmp.ge.s32.totalorder %s7118_s13, 4  }
 0x811   : > { %s8067_s14 = sshll.u32 %s7120_s10, 5  ;;  %s9958_s7 = smov (%p7115_p3), [#allocation16]  }
 0x812   : > { %s7124_s15 = scalar_lea.vmem [#allocation3], %s8067_s14  ;;  %s7130_s16 = scalar_lea.vmem [#allocation4], %s8067_s14 }
 0x813   : > { %v7125_v30 = vld [vmem:[%s7124_s15] sm:$0xff]  ;;  %v7126_v8 = vld [vmem:[%s7124_s15 + $0x8] sm:$0xff]  ;;  %v7127_v4 = vld [vmem:[%s7124_s15 + $0x10] sm:$0xff]  ;;  %s7173_s17 = scalar_lea.vmem [#allocation16], %s8067_s14  ;;  %s7183_s2 = sshll.u32 (%p7115_p3), %s9958_s7, 4  ;;  %s7184_s2 = int_to_ptr.vmem [resolvable:$true] %s7183_s2 }
 0x814   : > { %v7135_v60 = vmul.f32 %v7125_v30, %v7062_v0  ;;  %v7136_v1 = vmul.f32 %v7126_v8, %v7066_v29  ;;  %v7131_v40 = vld [vmem:[%s7130_s16] sm:$0xff]  ;;  %v7132_v17 = vld [vmem:[%s7130_s16 + $0x8] sm:$0xff]  ;;  %v7137_v11 = vmul.f32 %v7127_v4, %v7070_v28  ;;  %v7128_v3 = vld [vmem:[%s7124_s15 + $0x18] sm:$0xff]  ;;  %s9752_s19 = scalar_lea.vmem (%p7115_p3), %s7184_s2, 2048  ;;  %p9757_p5 = scmp.lt.s32.totalorder (%p7115_p3), %s7184_s2, %s7184_s2 }
 0x815   : > { %v7133_v16 = vld [vmem:[%s7130_s16 + $0x10] sm:$0xff]  ;;  %v7138_v20 = vmul.f32 %v7128_v3, %v7074_v26  ;;  %v7134_v36 = vld [vmem:[%s7130_s16 + $0x18] sm:$0xff]  ;;  %p9753_p4 = scmp.ne.s32.totalorder (%p7115_p3), %s7184_s2, %s9752_s19  ;;  %p9758_p6 = scmp.lt.s32.totalorder (%p7115_p3), %s9752_s19, %s9752_s19 }
 0x816   : > { %v7160_v13 = vadd.f32 %v7143_v2, %v7135_v60  ;;  %v7161_v45 = vadd.f32 %v7147_v63, %v7136_v1  ;;  %v7162_v33 = vadd.f32 %v7151_v32, %v7137_v11 }
 0x817   : > { %v7163_v44 = vadd.f32 %v7155_v27, %v7138_v20  ;;  %7117 = sbr.rel (!%p7115_p3) target bundleno = 2063 (0x80f), region = 156  ;;  %p9759_p7 = por (%p7115_p3), %p9758_p6, %p9757_p5 }
 0x818   : > { %v7164_v55 = vadd.f32 %v7160_v13, %v7131_v40  ;;  %v7165_v43 = vadd.f32 %v7161_v45, %v7132_v17  ;;  %v7166_v10 = vadd.f32 %v7162_v33, %v7133_v16 }
 0x819   : > { %v7167_v61 = vadd.f32 %v7163_v44, %v7134_v36  ;;  %p9760_p8 = pnand (%p7115_p3), %p9759_p7, %p9753_p4 }
 0x81a   : > { %v7168_v31 = vmax.f32 %v7164_v55, 0.0  ;;  %v7169_v46 = vmax.f32 %v7165_v43, 0.0  ;;  %v7170_v54 = vmax.f32 %v7166_v10, 0.0 }
 0x81b   : > { %v7171_v7 = vmax.f32 %v7167_v61, 0.0 }
 0x81c   : > { %7174 = vst [vmem:[%s7173_s17] sm:$0xff] %v7168_v31  ;;  %7175 = vst [vmem:[%s7173_s17 + $0x8] sm:$0xff] %v7169_v46 }
 0x81d   : > { %7176 = vst [vmem:[%s7173_s17 + $0x10] sm:$0xff] %v7170_v54  ;;  %7177 = vst [vmem:[%s7173_s17 + $0x18] sm:$0xff] %v7171_v7 }
 0x81e   :  { %9763 = shalt.err (!%p9760_p8)
}
 0x81f   :  { %s9764_s18 = scalar_lea.hbm %s10916_s9, 2048 }
 0x820   :  { %p9765_p9 = scmp.ne.s32.totalorder %s10916_s9, %s9764_s18  ;;  %p9768_p10 = scmp.lt.u32.totalorder %s9764_s18, %s10916_s9 }
 0x822   :  { %p9770_p11 = pnand %p9768_p10, %p9765_p9 }
 0x824   :  { %9773 = shalt.err (!%p9770_p11)
}
 0x825   :  { %7189 = dma.vmem_to_hbm [thread:$0]  %s7184_s2, 2048, %s10916_s9, [#allocation6], %s9950_s5, %s9950_s5, %s9951_s26  }
 0x826   :  { %9862 = dma.done.wait [#allocation6], 2048  }
 0x827   :  { %9863 = vsyncadd [#allocation6], 4294965248 }
 0x828   :  { %7193 = vsyncpa [#allocation5], 1 }
 0x829   :  { %7194 = vsyncpa [#allocation8], 1 }
 0x82a   :  { %7195 = vsyncpa [#allocation11], 1 }
 0x82b   :  { %7196 = vsyncpa [#allocation14], 1 }
 0x82c   :  { %7197 = vsyncpa [#allocation6], 1 }

</bundles_post_ra>
